<compile_context>
chip_gen: v5e
topology: v5e:2x2
jax: 0.10.0
libtpu: 0.0.40
codegen_flags: <defaults>
</compile_context>

<pallas_src>
import functools

import jax
import jax.numpy as jnp
from jax.experimental import pallas as pl
from jax.experimental.pallas import tpu as pltpu

EPS = 1e-5          # nn.BatchNorm3d default eps
NEG_SLOPE = 0.01    # nn.LeakyReLU default negative_slope


def _round_up(n, m):
    return (n + m - 1) // m * m


# ---------------------------------------------------------------------------
# Pallas kernels
# ---------------------------------------------------------------------------
def _transform_plane(p, scale_ref, shift_ref, apply_act):
    """Fused normalize (folded BN affine of the previous layer) + LeakyReLU."""
    if apply_act:
        p = p * scale_ref[...] + shift_ref[...]
        p = jnp.where(p >= 0.0, p, NEG_SLOPE * p)
    return p


def _conv27(planes, w_ref, cout, wp, lout, margin):
    """3x3x3 replicate-padded conv for one output depth-plane.

    planes: 3 arrays (cin, lext) for depth taps d-1, d, d+1 (already
            activation-transformed).  In-plane taps are static lane slices at
            offsets (kh-1)*Wp + (kw-1) around `margin`.
    Returns (cout, lout) f32 (garbage at halo / lane-pad positions, which the
    caller masks / discards).
    """
    acc = jnp.zeros((cout, lout), jnp.float32)
    for kd in range(3):
        for kh in range(3):
            for kw in range(3):
                off = (kh - 1) * wp + (kw - 1)
                start = margin + off
                tap = planes[kd][:, start:start + lout]            # (cin, lout)
                w_tap = w_ref[kd * 9 + kh * 3 + kw]                # (cout, cin)
                acc = acc + jnp.dot(w_tap, tap,
                                    preferred_element_type=jnp.float32)
    return acc


def _conv_bn_stats_kernel(scale_ref, shift_ref, mask_ref, w_ref,
                          pm1_ref, p0_ref, pp1_ref,
                          y_ref, stats_ref,
                          *, cout, wp, lout, margin, apply_act):
    """conv (with previous layer's BN+LeakyReLU fused on the inputs) +
    per-plane partial BN statistics (sum, sum of squares over the interior)."""
    planes = [_transform_plane(r[...], scale_ref, shift_ref, apply_act)
              for r in (pm1_ref, p0_ref, pp1_ref)]
    acc = _conv27(planes, w_ref, cout, wp, lout, margin)
    y_ref[...] = acc
    ym = acc * mask_ref[...]                                # zero out halo / pad
    s1 = jnp.sum(ym, axis=1, keepdims=True)                 # (cout, 1)
    s2 = jnp.sum(ym * acc, axis=1, keepdims=True)           # (cout, 1)
    col = jax.lax.broadcasted_iota(jnp.int32, (cout, 2), 1)
    stats_ref[...] = jnp.where(col == 0, s1, s2)            # [:,0]=sum, [:,1]=sumsq


def _conv_residual_kernel(scale_ref, shift_ref, w_ref, b_ref, res_ref,
                          pm1_ref, p0_ref, pp1_ref,
                          y_ref,
                          *, cout, wp, lout, margin, apply_act):
    """Final plain conv: previous BN+LeakyReLU fused on inputs, bias + residual
    add fused on the output."""
    planes = [_transform_plane(r[...], scale_ref, shift_ref, apply_act)
              for r in (pm1_ref, p0_ref, pp1_ref)]
    acc = _conv27(planes, w_ref, cout, wp, lout, margin)
    res = res_ref[...][:cout, margin:margin + lout]          # first C channels = x
    y_ref[...] = acc + b_ref[...] + res


# ---------------------------------------------------------------------------
# pallas_call wrappers
# ---------------------------------------------------------------------------
def _plane_spec(kd, cin, lext, D):
    # Same activation array, three different (clamped) depth planes ->
    # replicate padding along D without materializing it.
    return pl.BlockSpec(
        (None, None, cin, lext),
        lambda b, d, kd=kd: (b, jnp.clip(d + kd - 1, 0, D - 1), 0, 0))


def conv_bn_stats_call(a_ext, w27, scale, shift, mask,
                       *, apply_act, wp, lout, margin):
    B, D, cin, lext = a_ext.shape
    cout = w27.shape[1]
    kernel = functools.partial(_conv_bn_stats_kernel, cout=cout, wp=wp,
                               lout=lout, margin=margin, apply_act=apply_act)
    return pl.pallas_call(
        kernel,
        grid=(B, D),
        in_specs=[
            pl.BlockSpec((cin, 1), lambda b, d: (0, 0)),              # scale
            pl.BlockSpec((cin, 1), lambda b, d: (0, 0)),              # shift
            pl.BlockSpec((1, lout), lambda b, d: (0, 0)),             # interior mask
            pl.BlockSpec((27, cout, cin), lambda b, d: (0, 0, 0)),    # weights (resident)
            _plane_spec(0, cin, lext, D),
            _plane_spec(1, cin, lext, D),
            _plane_spec(2, cin, lext, D),
        ],
        out_specs=(
            pl.BlockSpec((None, None, cout, lout), lambda b, d: (b, d, 0, 0)),
            pl.BlockSpec((None, None, cout, 2), lambda b, d: (b, d, 0, 0)),
        ),
        out_shape=(
            jax.ShapeDtypeStruct((B, D, cout, lout), jnp.float32),
            jax.ShapeDtypeStruct((B, D, cout, 2), jnp.float32),
        ),
        compiler_params=pltpu.CompilerParams(
            dimension_semantics=("parallel", "parallel")),
    )(scale, shift, mask, w27, a_ext, a_ext, a_ext)


def conv_residual_call(a_ext, w27, b, scale, shift, res_ext,
                       *, wp, lout, margin):
    B, D, cin, lext = a_ext.shape
    cout = w27.shape[1]
    cres = res_ext.shape[2]
    kernel = functools.partial(_conv_residual_kernel, cout=cout, wp=wp,
                               lout=lout, margin=margin, apply_act=True)
    return pl.pallas_call(
        kernel,
        grid=(B, D),
        in_specs=[
            pl.BlockSpec((cin, 1), lambda b, d: (0, 0)),              # scale
            pl.BlockSpec((cin, 1), lambda b, d: (0, 0)),              # shift
            pl.BlockSpec((27, cout, cin), lambda b, d: (0, 0, 0)),    # weights
            pl.BlockSpec((cout, 1), lambda b, d: (0, 0)),             # bias
            pl.BlockSpec((None, None, cres, lext),                    # residual (x ++ depth)
                         lambda b, d: (b, d, 0, 0)),
            _plane_spec(0, cin, lext, D),
            _plane_spec(1, cin, lext, D),
            _plane_spec(2, cin, lext, D),
        ],
        out_specs=pl.BlockSpec((None, None, cout, lout),
                               lambda b, d: (b, d, 0, 0)),
        out_shape=jax.ShapeDtypeStruct((B, D, cout, lout), jnp.float32),
        compiler_params=pltpu.CompilerParams(
            dimension_semantics=("parallel", "parallel")),
    )(scale, shift, w27, b, res_ext, a_ext, a_ext, a_ext)


# ---------------------------------------------------------------------------
# JAX glue: layout helpers, weight reordering, full forward
# ---------------------------------------------------------------------------
def _reorder_weight(w):
    """(Cout, Cin, 3, 3, 3) -> (27, Cout, Cin); tap index = kd*9 + kh*3 + kw."""
    cout, cin = w.shape[0], w.shape[1]
    return jnp.transpose(w, (2, 3, 4, 0, 1)).reshape(27, cout, cin)


def _to_ext(a, margin, lext):
    """(B, D, C, H, W) -> (B, D, C, Lext): replicate-pad H/W, flatten, embed
    the Hp*Wp plane behind a zero `margin` (so in-plane taps are in-bounds
    static slices)."""
    B, D, C, H, W = a.shape
    ap = jnp.pad(a, ((0, 0), (0, 0), (0, 0), (1, 1), (1, 1)), mode="edge")
    flat = ap.reshape(B, D, C, (H + 2) * (W + 2))
    return jnp.pad(flat, ((0, 0), (0, 0), (0, 0),
                          (margin, lext - margin - (H + 2) * (W + 2))))


def _interior(y, H, W):
    """(B, D, C, Lout) padded-frame conv output -> (B, D, C, H, W) valid part."""
    B, D, C, _ = y.shape
    Hp, Wp = H + 2, W + 2
    return y[..., :Hp * Wp].reshape(B, D, C, Hp, Wp)[..., 1:H + 1, 1:W + 1]


def refine_net_pallas(x, ray_depths, params):
    x = x.astype(jnp.float32)
    ray_depths = ray_depths.astype(jnp.float32)
    B, C, nv, nu, H, W = x.shape
    D = nv * nu
    Hp, Wp = H + 2, W + 2
    Lout = _round_up(Hp * Wp, 128)        # lane-aligned output plane length
    margin = Wp + 1                       # max |in-plane tap offset|
    Lext = _round_up(Lout + 2 * margin, 128)
    count = jnp.float32(B * D * H * W)    # valid elements per channel for BN

    # cat([x, ray_depths.unsqueeze(1)], dim=1); merge (nv, nu) -> D.
    x2 = jnp.concatenate([x, ray_depths[:, None]], axis=1)          # (B, C+1, nv, nu, H, W)
    x2 = jnp.transpose(x2.reshape(B, C + 1, D, H, W), (0, 2, 1, 3, 4))  # (B, D, C+1, H, W)
    a0 = _to_ext(x2, margin, Lext)                                   # (B, D, C+1, Lext)

    # interior mask in the padded-flattened output frame
    mask = jnp.pad(jnp.ones((H, W), jnp.float32), ((1, 1), (1, 1)))
    mask = jnp.pad(mask.reshape(1, Hp * Wp), ((0, 0), (0, Lout - Hp * Wp)))

    h_ext = a0
    scale = jnp.ones((C + 1, 1), jnp.float32)    # identity transform for layer 0
    shift = jnp.zeros((C + 1, 1), jnp.float32)
    apply_act = False

    for p in params[:-1]:
        w27 = _reorder_weight(p["w"])
        y, stats = conv_bn_stats_call(h_ext, w27, scale, shift, mask,
                                      apply_act=apply_act, wp=Wp,
                                      lout=Lout, margin=margin)
        # BN training-mode batch statistics (bias dropped: it cancels exactly).
        s = jnp.sum(stats, axis=(0, 1))                              # (cout, 2)
        mean = s[:, 0] / count
        var = s[:, 1] / count - mean * mean                          # biased variance
        inv = jax.lax.rsqrt(var + EPS)
        scale = (p["gamma"] * inv)[:, None]                          # folded BN affine,
        shift = (p["beta"] - mean * p["gamma"] * inv)[:, None]       # applied in next conv
        h_ext = _to_ext(_interior(y, H, W), margin, Lext)            # re-pad raw conv out
        apply_act = True

    p = params[-1]
    w27 = _reorder_weight(p["w"])
    y = conv_residual_call(h_ext, w27, p["b"].reshape(-1, 1), scale, shift, a0,
                           wp=Wp, lout=Lout, margin=margin)
    out = _interior(y, H, W)                                         # (B, D, C, H, W)
    return jnp.transpose(out, (0, 2, 1, 3, 4)).reshape(B, C, nv, nu, H, W)


# ---------------------------------------------------------------------------
# Pure-JAX reference (lax.conv) for correctness checking
# ---------------------------------------------------------------------------
def refine_net_reference(x, ray_depths, params):
    B, C, nv, nu, H, W = x.shape
    D = nv * nu
    x2 = jnp.concatenate([x, ray_depths[:, None]], axis=1).reshape(B, C + 1, D, H, W)
    h = x2
    n_layers = len(params)
    for i, p in enumerate(params):
        hp = jnp.pad(h, ((0, 0), (0, 0), (1, 1), (1, 1), (1, 1)), mode="edge")
        y = jax.lax.conv_general_dilated(
            hp, p["w"], window_strides=(1, 1, 1), padding="VALID",
            dimension_numbers=("NCDHW", "OIDHW", "NCDHW"))
        y = y + p["b"][None, :, None, None, None]
        if i < n_layers - 1:
            mean = jnp.mean(y, axis=(0, 2, 3, 4), keepdims=True)
            var = jnp.mean(jnp.square(y - mean), axis=(0, 2, 3, 4), keepdims=True)
            y = (y - mean) / jnp.sqrt(var + EPS)
            y = y * p["gamma"][None, :, None, None, None] + p["beta"][None, :, None, None, None]
            y = jnp.where(y >= 0.0, y, NEG_SLOPE * y)
        h = y
    return x + h.reshape(B, C, nv, nu, H, W)


# ---------------------------------------------------------------------------
# Deterministic parameter init (shapes from refineNet.__init__)
# ---------------------------------------------------------------------------
def init_params(key):
    cfgs = [(4, 8), (8, 8), (8, 8), (8, 8), (8, 3)]   # last layer is plain conv
    params = []
    for cin, cout in cfgs:
        key, k1, k2, k3, k4 = jax.random.split(key, 5)
        w = jax.random.normal(k1, (cout, cin, 3, 3, 3), jnp.float32)
        w = w * (1.0 / jnp.sqrt(27.0 * cin))
        b = 0.05 * jax.random.normal(k2, (cout,), jnp.float32)
        gamma = 1.0 + 0.1 * jax.random.normal(k3, (cout,), jnp.float32)
        beta = 0.05 * jax.random.normal(k4, (cout,), jnp.float32)
        params.append(dict(w=w, b=b, gamma=gamma, beta=beta))
    return params


if __name__ == "__main__":
    key = jax.random.PRNGKey(0)
    kx, kd, kp = jax.random.split(key, 3)

    B, C, nv, nu, H, W = 2, 3, 2, 2, 8, 8
    x = jax.random.normal(kx, (B, C, nv, nu, H, W), jnp.float32)
    ray_depths = jax.random.normal(kd, (B, nv, nu, H, W), jnp.float32)
    params = init_params(kp)

    fwd = jax.jit(functools.partial(refine_net_pallas, params=params))
    out = jax.block_until_ready(fwd(x, ray_depths))

    ref = jax.block_until_ready(refine_net_reference(x, ray_depths, params))

    assert out.shape == (B, C, nv, nu, H, W), out.shape
    err = jnp.max(jnp.abs(out - ref))
    assert jnp.allclose(out, ref, atol=2e-4, rtol=2e-4), f"max abs err = {err}"

    print("KERNEL_OK")
</pallas_src>

<mosaic_0001>
module attributes {stable_mosaic.version = 11 : i64} {
  func.func @_conv_bn_stats_kernel(%arg0: i32, %arg1: i32, %arg2: memref<4x1xf32, #tpu.memory_space<vmem>>, %arg3: memref<4x1xf32, #tpu.memory_space<vmem>>, %arg4: memref<1x128xf32, #tpu.memory_space<vmem>>, %arg5: memref<27x8x4xf32, #tpu.memory_space<vmem>>, %arg6: memref<1x1x4x256xf32, #tpu.memory_space<vmem>>, %arg7: memref<1x1x4x256xf32, #tpu.memory_space<vmem>>, %arg8: memref<1x1x4x256xf32, #tpu.memory_space<vmem>>, %arg9: memref<1x1x8x128xf32, #tpu.memory_space<vmem>>, %arg10: memref<1x1x8x2xf32, #tpu.memory_space<vmem>>) attributes {dimension_semantics = [#tpu.dimension_semantics<parallel>, #tpu.dimension_semantics<parallel>], iteration_bounds = array<i64: 2, 4>, scalar_prefetch = 0 : i64, scratch_operands = 0 : i64, tpu.core_type = #tpu.core_type<tc>, window_params = [{pipeline_mode = #tpu.pipeline_mode<synchronous>, transform_indices = @transform_0, window_bounds = array<i64: 4, 1>}, {pipeline_mode = #tpu.pipeline_mode<synchronous>, transform_indices = @transform_1, window_bounds = array<i64: 4, 1>}, {pipeline_mode = #tpu.pipeline_mode<synchronous>, transform_indices = @transform_2, window_bounds = array<i64: 1, 128>}, {pipeline_mode = #tpu.pipeline_mode<synchronous>, transform_indices = @transform_3, window_bounds = array<i64: 27, 8, 4>}, {transform_indices = @transform_4, window_bounds = array<i64: 1, 1, 4, 256>}, {transform_indices = @transform_5, window_bounds = array<i64: 1, 1, 4, 256>}, {transform_indices = @transform_6, window_bounds = array<i64: 1, 1, 4, 256>}, {transform_indices = @transform_7, window_bounds = array<i64: 1, 1, 8, 128>}, {transform_indices = @transform_8, window_bounds = array<i64: 1, 1, 8, 2>}]} {
    %c0 = arith.constant 0 : index
    %c0_0 = arith.constant 0 : index
    %c0_1 = arith.constant 0 : index
    %c0_2 = arith.constant 0 : index
    %0 = vector.load %arg6[%c0, %c0_0, %c0_1, %c0_2] : memref<1x1x4x256xf32, #tpu.memory_space<vmem>>, vector<1x1x4x256xf32>
    %1 = vector.shape_cast %0 : vector<1x1x4x256xf32> to vector<4x256xf32>
    %c0_3 = arith.constant 0 : index
    %c0_4 = arith.constant 0 : index
    %c0_5 = arith.constant 0 : index
    %c0_6 = arith.constant 0 : index
    %2 = vector.load %arg7[%c0_3, %c0_4, %c0_5, %c0_6] : memref<1x1x4x256xf32, #tpu.memory_space<vmem>>, vector<1x1x4x256xf32>
    %3 = vector.shape_cast %2 : vector<1x1x4x256xf32> to vector<4x256xf32>
    %c0_7 = arith.constant 0 : index
    %c0_8 = arith.constant 0 : index
    %c0_9 = arith.constant 0 : index
    %c0_10 = arith.constant 0 : index
    %4 = vector.load %arg8[%c0_7, %c0_8, %c0_9, %c0_10] : memref<1x1x4x256xf32, #tpu.memory_space<vmem>>, vector<1x1x4x256xf32>
    %5 = vector.shape_cast %4 : vector<1x1x4x256xf32> to vector<4x256xf32>
    %cst = arith.constant 0.000000e+00 : f32
    %6 = vector.broadcast %cst : f32 to vector<8x128xf32>
    %7 = vector.extract_strided_slice %1 {offsets = [0, 0], sizes = [4, 128], strides = [1, 1]} : vector<4x256xf32> to vector<4x128xf32>
    %c0_11 = arith.constant 0 : index
    %c0_12 = arith.constant 0 : index
    %c0_13 = arith.constant 0 : index
    %8 = vector.load %arg5[%c0_11, %c0_12, %c0_13] : memref<27x8x4xf32, #tpu.memory_space<vmem>>, vector<1x8x4xf32>
    %9 = vector.shape_cast %8 : vector<1x8x4xf32> to vector<8x4xf32>
    %cst_14 = arith.constant dense<0.000000e+00> : vector<8x128xf32>
    %10 = tpu.matmul %9, %7, %cst_14 {dimension_numbers = #tpu.dot_dimension_numbers<[1], [0], [0], [1], [0, 0, 1, 1], [], []>} : vector<8x4xf32>, vector<4x128xf32>, vector<8x128xf32> -> vector<8x128xf32>
    %11 = arith.addf %6, %10 : vector<8x128xf32>
    %12 = vector.extract_strided_slice %1 {offsets = [0, 1], sizes = [4, 128], strides = [1, 1]} : vector<4x256xf32> to vector<4x128xf32>
    %c1 = arith.constant 1 : index
    %c0_15 = arith.constant 0 : index
    %c0_16 = arith.constant 0 : index
    %13 = vector.load %arg5[%c1, %c0_15, %c0_16] : memref<27x8x4xf32, #tpu.memory_space<vmem>>, vector<1x8x4xf32>
    %14 = vector.shape_cast %13 : vector<1x8x4xf32> to vector<8x4xf32>
    %cst_17 = arith.constant dense<0.000000e+00> : vector<8x128xf32>
    %15 = tpu.matmul %14, %12, %cst_17 {dimension_numbers = #tpu.dot_dimension_numbers<[1], [0], [0], [1], [0, 0, 1, 1], [], []>} : vector<8x4xf32>, vector<4x128xf32>, vector<8x128xf32> -> vector<8x128xf32>
    %16 = arith.addf %11, %15 : vector<8x128xf32>
    %17 = vector.extract_strided_slice %1 {offsets = [0, 2], sizes = [4, 128], strides = [1, 1]} : vector<4x256xf32> to vector<4x128xf32>
    %c2 = arith.constant 2 : index
    %c0_18 = arith.constant 0 : index
    %c0_19 = arith.constant 0 : index
    %18 = vector.load %arg5[%c2, %c0_18, %c0_19] : memref<27x8x4xf32, #tpu.memory_space<vmem>>, vector<1x8x4xf32>
    %19 = vector.shape_cast %18 : vector<1x8x4xf32> to vector<8x4xf32>
    %cst_20 = arith.constant dense<0.000000e+00> : vector<8x128xf32>
    %20 = tpu.matmul %19, %17, %cst_20 {dimension_numbers = #tpu.dot_dimension_numbers<[1], [0], [0], [1], [0, 0, 1, 1], [], []>} : vector<8x4xf32>, vector<4x128xf32>, vector<8x128xf32> -> vector<8x128xf32>
    %21 = arith.addf %16, %20 : vector<8x128xf32>
    %22 = vector.extract_strided_slice %1 {offsets = [0, 10], sizes = [4, 128], strides = [1, 1]} : vector<4x256xf32> to vector<4x128xf32>
    %c3 = arith.constant 3 : index
    %c0_21 = arith.constant 0 : index
    %c0_22 = arith.constant 0 : index
    %23 = vector.load %arg5[%c3, %c0_21, %c0_22] : memref<27x8x4xf32, #tpu.memory_space<vmem>>, vector<1x8x4xf32>
    %24 = vector.shape_cast %23 : vector<1x8x4xf32> to vector<8x4xf32>
    %cst_23 = arith.constant dense<0.000000e+00> : vector<8x128xf32>
    %25 = tpu.matmul %24, %22, %cst_23 {dimension_numbers = #tpu.dot_dimension_numbers<[1], [0], [0], [1], [0, 0, 1, 1], [], []>} : vector<8x4xf32>, vector<4x128xf32>, vector<8x128xf32> -> vector<8x128xf32>
    %26 = arith.addf %21, %25 : vector<8x128xf32>
    %27 = vector.extract_strided_slice %1 {offsets = [0, 11], sizes = [4, 128], strides = [1, 1]} : vector<4x256xf32> to vector<4x128xf32>
    %c4 = arith.constant 4 : index
    %c0_24 = arith.constant 0 : index
    %c0_25 = arith.constant 0 : index
    %28 = vector.load %arg5[%c4, %c0_24, %c0_25] : memref<27x8x4xf32, #tpu.memory_space<vmem>>, vector<1x8x4xf32>
    %29 = vector.shape_cast %28 : vector<1x8x4xf32> to vector<8x4xf32>
    %cst_26 = arith.constant dense<0.000000e+00> : vector<8x128xf32>
    %30 = tpu.matmul %29, %27, %cst_26 {dimension_numbers = #tpu.dot_dimension_numbers<[1], [0], [0], [1], [0, 0, 1, 1], [], []>} : vector<8x4xf32>, vector<4x128xf32>, vector<8x128xf32> -> vector<8x128xf32>
    %31 = arith.addf %26, %30 : vector<8x128xf32>
    %32 = vector.extract_strided_slice %1 {offsets = [0, 12], sizes = [4, 128], strides = [1, 1]} : vector<4x256xf32> to vector<4x128xf32>
    %c5 = arith.constant 5 : index
    %c0_27 = arith.constant 0 : index
    %c0_28 = arith.constant 0 : index
    %33 = vector.load %arg5[%c5, %c0_27, %c0_28] : memref<27x8x4xf32, #tpu.memory_space<vmem>>, vector<1x8x4xf32>
    %34 = vector.shape_cast %33 : vector<1x8x4xf32> to vector<8x4xf32>
    %cst_29 = arith.constant dense<0.000000e+00> : vector<8x128xf32>
    %35 = tpu.matmul %34, %32, %cst_29 {dimension_numbers = #tpu.dot_dimension_numbers<[1], [0], [0], [1], [0, 0, 1, 1], [], []>} : vector<8x4xf32>, vector<4x128xf32>, vector<8x128xf32> -> vector<8x128xf32>
    %36 = arith.addf %31, %35 : vector<8x128xf32>
    %37 = vector.extract_strided_slice %1 {offsets = [0, 20], sizes = [4, 128], strides = [1, 1]} : vector<4x256xf32> to vector<4x128xf32>
    %c6 = arith.constant 6 : index
    %c0_30 = arith.constant 0 : index
    %c0_31 = arith.constant 0 : index
    %38 = vector.load %arg5[%c6, %c0_30, %c0_31] : memref<27x8x4xf32, #tpu.memory_space<vmem>>, vector<1x8x4xf32>
    %39 = vector.shape_cast %38 : vector<1x8x4xf32> to vector<8x4xf32>
    %cst_32 = arith.constant dense<0.000000e+00> : vector<8x128xf32>
    %40 = tpu.matmul %39, %37, %cst_32 {dimension_numbers = #tpu.dot_dimension_numbers<[1], [0], [0], [1], [0, 0, 1, 1], [], []>} : vector<8x4xf32>, vector<4x128xf32>, vector<8x128xf32> -> vector<8x128xf32>
    %41 = arith.addf %36, %40 : vector<8x128xf32>
    %42 = vector.extract_strided_slice %1 {offsets = [0, 21], sizes = [4, 128], strides = [1, 1]} : vector<4x256xf32> to vector<4x128xf32>
    %c7 = arith.constant 7 : index
    %c0_33 = arith.constant 0 : index
    %c0_34 = arith.constant 0 : index
    %43 = vector.load %arg5[%c7, %c0_33, %c0_34] : memref<27x8x4xf32, #tpu.memory_space<vmem>>, vector<1x8x4xf32>
    %44 = vector.shape_cast %43 : vector<1x8x4xf32> to vector<8x4xf32>
    %cst_35 = arith.constant dense<0.000000e+00> : vector<8x128xf32>
    %45 = tpu.matmul %44, %42, %cst_35 {dimension_numbers = #tpu.dot_dimension_numbers<[1], [0], [0], [1], [0, 0, 1, 1], [], []>} : vector<8x4xf32>, vector<4x128xf32>, vector<8x128xf32> -> vector<8x128xf32>
    %46 = arith.addf %41, %45 : vector<8x128xf32>
    %47 = vector.extract_strided_slice %1 {offsets = [0, 22], sizes = [4, 128], strides = [1, 1]} : vector<4x256xf32> to vector<4x128xf32>
    %c8 = arith.constant 8 : index
    %c0_36 = arith.constant 0 : index
    %c0_37 = arith.constant 0 : index
    %48 = vector.load %arg5[%c8, %c0_36, %c0_37] : memref<27x8x4xf32, #tpu.memory_space<vmem>>, vector<1x8x4xf32>
    %49 = vector.shape_cast %48 : vector<1x8x4xf32> to vector<8x4xf32>
    %cst_38 = arith.constant dense<0.000000e+00> : vector<8x128xf32>
    %50 = tpu.matmul %49, %47, %cst_38 {dimension_numbers = #tpu.dot_dimension_numbers<[1], [0], [0], [1], [0, 0, 1, 1], [], []>} : vector<8x4xf32>, vector<4x128xf32>, vector<8x128xf32> -> vector<8x128xf32>
    %51 = arith.addf %46, %50 : vector<8x128xf32>
    %52 = vector.extract_strided_slice %3 {offsets = [0, 0], sizes = [4, 128], strides = [1, 1]} : vector<4x256xf32> to vector<4x128xf32>
    %c9 = arith.constant 9 : index
    %c0_39 = arith.constant 0 : index
    %c0_40 = arith.constant 0 : index
    %53 = vector.load %arg5[%c9, %c0_39, %c0_40] : memref<27x8x4xf32, #tpu.memory_space<vmem>>, vector<1x8x4xf32>
    %54 = vector.shape_cast %53 : vector<1x8x4xf32> to vector<8x4xf32>
    %cst_41 = arith.constant dense<0.000000e+00> : vector<8x128xf32>
    %55 = tpu.matmul %54, %52, %cst_41 {dimension_numbers = #tpu.dot_dimension_numbers<[1], [0], [0], [1], [0, 0, 1, 1], [], []>} : vector<8x4xf32>, vector<4x128xf32>, vector<8x128xf32> -> vector<8x128xf32>
    %56 = arith.addf %51, %55 : vector<8x128xf32>
    %57 = vector.extract_strided_slice %3 {offsets = [0, 1], sizes = [4, 128], strides = [1, 1]} : vector<4x256xf32> to vector<4x128xf32>
    %c10 = arith.constant 10 : index
    %c0_42 = arith.constant 0 : index
    %c0_43 = arith.constant 0 : index
    %58 = vector.load %arg5[%c10, %c0_42, %c0_43] : memref<27x8x4xf32, #tpu.memory_space<vmem>>, vector<1x8x4xf32>
    %59 = vector.shape_cast %58 : vector<1x8x4xf32> to vector<8x4xf32>
    %cst_44 = arith.constant dense<0.000000e+00> : vector<8x128xf32>
    %60 = tpu.matmul %59, %57, %cst_44 {dimension_numbers = #tpu.dot_dimension_numbers<[1], [0], [0], [1], [0, 0, 1, 1], [], []>} : vector<8x4xf32>, vector<4x128xf32>, vector<8x128xf32> -> vector<8x128xf32>
    %61 = arith.addf %56, %60 : vector<8x128xf32>
    %62 = vector.extract_strided_slice %3 {offsets = [0, 2], sizes = [4, 128], strides = [1, 1]} : vector<4x256xf32> to vector<4x128xf32>
    %c11 = arith.constant 11 : index
    %c0_45 = arith.constant 0 : index
    %c0_46 = arith.constant 0 : index
    %63 = vector.load %arg5[%c11, %c0_45, %c0_46] : memref<27x8x4xf32, #tpu.memory_space<vmem>>, vector<1x8x4xf32>
    %64 = vector.shape_cast %63 : vector<1x8x4xf32> to vector<8x4xf32>
    %cst_47 = arith.constant dense<0.000000e+00> : vector<8x128xf32>
    %65 = tpu.matmul %64, %62, %cst_47 {dimension_numbers = #tpu.dot_dimension_numbers<[1], [0], [0], [1], [0, 0, 1, 1], [], []>} : vector<8x4xf32>, vector<4x128xf32>, vector<8x128xf32> -> vector<8x128xf32>
    %66 = arith.addf %61, %65 : vector<8x128xf32>
    %67 = vector.extract_strided_slice %3 {offsets = [0, 10], sizes = [4, 128], strides = [1, 1]} : vector<4x256xf32> to vector<4x128xf32>
    %c12 = arith.constant 12 : index
    %c0_48 = arith.constant 0 : index
    %c0_49 = arith.constant 0 : index
    %68 = vector.load %arg5[%c12, %c0_48, %c0_49] : memref<27x8x4xf32, #tpu.memory_space<vmem>>, vector<1x8x4xf32>
    %69 = vector.shape_cast %68 : vector<1x8x4xf32> to vector<8x4xf32>
    %cst_50 = arith.constant dense<0.000000e+00> : vector<8x128xf32>
    %70 = tpu.matmul %69, %67, %cst_50 {dimension_numbers = #tpu.dot_dimension_numbers<[1], [0], [0], [1], [0, 0, 1, 1], [], []>} : vector<8x4xf32>, vector<4x128xf32>, vector<8x128xf32> -> vector<8x128xf32>
    %71 = arith.addf %66, %70 : vector<8x128xf32>
    %72 = vector.extract_strided_slice %3 {offsets = [0, 11], sizes = [4, 128], strides = [1, 1]} : vector<4x256xf32> to vector<4x128xf32>
    %c13 = arith.constant 13 : index
    %c0_51 = arith.constant 0 : index
    %c0_52 = arith.constant 0 : index
    %73 = vector.load %arg5[%c13, %c0_51, %c0_52] : memref<27x8x4xf32, #tpu.memory_space<vmem>>, vector<1x8x4xf32>
    %74 = vector.shape_cast %73 : vector<1x8x4xf32> to vector<8x4xf32>
    %cst_53 = arith.constant dense<0.000000e+00> : vector<8x128xf32>
    %75 = tpu.matmul %74, %72, %cst_53 {dimension_numbers = #tpu.dot_dimension_numbers<[1], [0], [0], [1], [0, 0, 1, 1], [], []>} : vector<8x4xf32>, vector<4x128xf32>, vector<8x128xf32> -> vector<8x128xf32>
    %76 = arith.addf %71, %75 : vector<8x128xf32>
    %77 = vector.extract_strided_slice %3 {offsets = [0, 12], sizes = [4, 128], strides = [1, 1]} : vector<4x256xf32> to vector<4x128xf32>
    %c14 = arith.constant 14 : index
    %c0_54 = arith.constant 0 : index
    %c0_55 = arith.constant 0 : index
    %78 = vector.load %arg5[%c14, %c0_54, %c0_55] : memref<27x8x4xf32, #tpu.memory_space<vmem>>, vector<1x8x4xf32>
    %79 = vector.shape_cast %78 : vector<1x8x4xf32> to vector<8x4xf32>
    %cst_56 = arith.constant dense<0.000000e+00> : vector<8x128xf32>
    %80 = tpu.matmul %79, %77, %cst_56 {dimension_numbers = #tpu.dot_dimension_numbers<[1], [0], [0], [1], [0, 0, 1, 1], [], []>} : vector<8x4xf32>, vector<4x128xf32>, vector<8x128xf32> -> vector<8x128xf32>
    %81 = arith.addf %76, %80 : vector<8x128xf32>
    %82 = vector.extract_strided_slice %3 {offsets = [0, 20], sizes = [4, 128], strides = [1, 1]} : vector<4x256xf32> to vector<4x128xf32>
    %c15 = arith.constant 15 : index
    %c0_57 = arith.constant 0 : index
    %c0_58 = arith.constant 0 : index
    %83 = vector.load %arg5[%c15, %c0_57, %c0_58] : memref<27x8x4xf32, #tpu.memory_space<vmem>>, vector<1x8x4xf32>
    %84 = vector.shape_cast %83 : vector<1x8x4xf32> to vector<8x4xf32>
    %cst_59 = arith.constant dense<0.000000e+00> : vector<8x128xf32>
    %85 = tpu.matmul %84, %82, %cst_59 {dimension_numbers = #tpu.dot_dimension_numbers<[1], [0], [0], [1], [0, 0, 1, 1], [], []>} : vector<8x4xf32>, vector<4x128xf32>, vector<8x128xf32> -> vector<8x128xf32>
    %86 = arith.addf %81, %85 : vector<8x128xf32>
    %87 = vector.extract_strided_slice %3 {offsets = [0, 21], sizes = [4, 128], strides = [1, 1]} : vector<4x256xf32> to vector<4x128xf32>
    %c16 = arith.constant 16 : index
    %c0_60 = arith.constant 0 : index
    %c0_61 = arith.constant 0 : index
    %88 = vector.load %arg5[%c16, %c0_60, %c0_61] : memref<27x8x4xf32, #tpu.memory_space<vmem>>, vector<1x8x4xf32>
    %89 = vector.shape_cast %88 : vector<1x8x4xf32> to vector<8x4xf32>
    %cst_62 = arith.constant dense<0.000000e+00> : vector<8x128xf32>
    %90 = tpu.matmul %89, %87, %cst_62 {dimension_numbers = #tpu.dot_dimension_numbers<[1], [0], [0], [1], [0, 0, 1, 1], [], []>} : vector<8x4xf32>, vector<4x128xf32>, vector<8x128xf32> -> vector<8x128xf32>
    %91 = arith.addf %86, %90 : vector<8x128xf32>
    %92 = vector.extract_strided_slice %3 {offsets = [0, 22], sizes = [4, 128], strides = [1, 1]} : vector<4x256xf32> to vector<4x128xf32>
    %c17 = arith.constant 17 : index
    %c0_63 = arith.constant 0 : index
    %c0_64 = arith.constant 0 : index
    %93 = vector.load %arg5[%c17, %c0_63, %c0_64] : memref<27x8x4xf32, #tpu.memory_space<vmem>>, vector<1x8x4xf32>
    %94 = vector.shape_cast %93 : vector<1x8x4xf32> to vector<8x4xf32>
    %cst_65 = arith.constant dense<0.000000e+00> : vector<8x128xf32>
    %95 = tpu.matmul %94, %92, %cst_65 {dimension_numbers = #tpu.dot_dimension_numbers<[1], [0], [0], [1], [0, 0, 1, 1], [], []>} : vector<8x4xf32>, vector<4x128xf32>, vector<8x128xf32> -> vector<8x128xf32>
    %96 = arith.addf %91, %95 : vector<8x128xf32>
    %97 = vector.extract_strided_slice %5 {offsets = [0, 0], sizes = [4, 128], strides = [1, 1]} : vector<4x256xf32> to vector<4x128xf32>
    %c18 = arith.constant 18 : index
    %c0_66 = arith.constant 0 : index
    %c0_67 = arith.constant 0 : index
    %98 = vector.load %arg5[%c18, %c0_66, %c0_67] : memref<27x8x4xf32, #tpu.memory_space<vmem>>, vector<1x8x4xf32>
    %99 = vector.shape_cast %98 : vector<1x8x4xf32> to vector<8x4xf32>
    %cst_68 = arith.constant dense<0.000000e+00> : vector<8x128xf32>
    %100 = tpu.matmul %99, %97, %cst_68 {dimension_numbers = #tpu.dot_dimension_numbers<[1], [0], [0], [1], [0, 0, 1, 1], [], []>} : vector<8x4xf32>, vector<4x128xf32>, vector<8x128xf32> -> vector<8x128xf32>
    %101 = arith.addf %96, %100 : vector<8x128xf32>
    %102 = vector.extract_strided_slice %5 {offsets = [0, 1], sizes = [4, 128], strides = [1, 1]} : vector<4x256xf32> to vector<4x128xf32>
    %c19 = arith.constant 19 : index
    %c0_69 = arith.constant 0 : index
    %c0_70 = arith.constant 0 : index
    %103 = vector.load %arg5[%c19, %c0_69, %c0_70] : memref<27x8x4xf32, #tpu.memory_space<vmem>>, vector<1x8x4xf32>
    %104 = vector.shape_cast %103 : vector<1x8x4xf32> to vector<8x4xf32>
    %cst_71 = arith.constant dense<0.000000e+00> : vector<8x128xf32>
    %105 = tpu.matmul %104, %102, %cst_71 {dimension_numbers = #tpu.dot_dimension_numbers<[1], [0], [0], [1], [0, 0, 1, 1], [], []>} : vector<8x4xf32>, vector<4x128xf32>, vector<8x128xf32> -> vector<8x128xf32>
    %106 = arith.addf %101, %105 : vector<8x128xf32>
    %107 = vector.extract_strided_slice %5 {offsets = [0, 2], sizes = [4, 128], strides = [1, 1]} : vector<4x256xf32> to vector<4x128xf32>
    %c20 = arith.constant 20 : index
    %c0_72 = arith.constant 0 : index
    %c0_73 = arith.constant 0 : index
    %108 = vector.load %arg5[%c20, %c0_72, %c0_73] : memref<27x8x4xf32, #tpu.memory_space<vmem>>, vector<1x8x4xf32>
    %109 = vector.shape_cast %108 : vector<1x8x4xf32> to vector<8x4xf32>
    %cst_74 = arith.constant dense<0.000000e+00> : vector<8x128xf32>
    %110 = tpu.matmul %109, %107, %cst_74 {dimension_numbers = #tpu.dot_dimension_numbers<[1], [0], [0], [1], [0, 0, 1, 1], [], []>} : vector<8x4xf32>, vector<4x128xf32>, vector<8x128xf32> -> vector<8x128xf32>
    %111 = arith.addf %106, %110 : vector<8x128xf32>
    %112 = vector.extract_strided_slice %5 {offsets = [0, 10], sizes = [4, 128], strides = [1, 1]} : vector<4x256xf32> to vector<4x128xf32>
    %c21 = arith.constant 21 : index
    %c0_75 = arith.constant 0 : index
    %c0_76 = arith.constant 0 : index
    %113 = vector.load %arg5[%c21, %c0_75, %c0_76] : memref<27x8x4xf32, #tpu.memory_space<vmem>>, vector<1x8x4xf32>
    %114 = vector.shape_cast %113 : vector<1x8x4xf32> to vector<8x4xf32>
    %cst_77 = arith.constant dense<0.000000e+00> : vector<8x128xf32>
    %115 = tpu.matmul %114, %112, %cst_77 {dimension_numbers = #tpu.dot_dimension_numbers<[1], [0], [0], [1], [0, 0, 1, 1], [], []>} : vector<8x4xf32>, vector<4x128xf32>, vector<8x128xf32> -> vector<8x128xf32>
    %116 = arith.addf %111, %115 : vector<8x128xf32>
    %117 = vector.extract_strided_slice %5 {offsets = [0, 11], sizes = [4, 128], strides = [1, 1]} : vector<4x256xf32> to vector<4x128xf32>
    %c22 = arith.constant 22 : index
    %c0_78 = arith.constant 0 : index
    %c0_79 = arith.constant 0 : index
    %118 = vector.load %arg5[%c22, %c0_78, %c0_79] : memref<27x8x4xf32, #tpu.memory_space<vmem>>, vector<1x8x4xf32>
    %119 = vector.shape_cast %118 : vector<1x8x4xf32> to vector<8x4xf32>
    %cst_80 = arith.constant dense<0.000000e+00> : vector<8x128xf32>
    %120 = tpu.matmul %119, %117, %cst_80 {dimension_numbers = #tpu.dot_dimension_numbers<[1], [0], [0], [1], [0, 0, 1, 1], [], []>} : vector<8x4xf32>, vector<4x128xf32>, vector<8x128xf32> -> vector<8x128xf32>
    %121 = arith.addf %116, %120 : vector<8x128xf32>
    %122 = vector.extract_strided_slice %5 {offsets = [0, 12], sizes = [4, 128], strides = [1, 1]} : vector<4x256xf32> to vector<4x128xf32>
    %c23 = arith.constant 23 : index
    %c0_81 = arith.constant 0 : index
    %c0_82 = arith.constant 0 : index
    %123 = vector.load %arg5[%c23, %c0_81, %c0_82] : memref<27x8x4xf32, #tpu.memory_space<vmem>>, vector<1x8x4xf32>
    %124 = vector.shape_cast %123 : vector<1x8x4xf32> to vector<8x4xf32>
    %cst_83 = arith.constant dense<0.000000e+00> : vector<8x128xf32>
    %125 = tpu.matmul %124, %122, %cst_83 {dimension_numbers = #tpu.dot_dimension_numbers<[1], [0], [0], [1], [0, 0, 1, 1], [], []>} : vector<8x4xf32>, vector<4x128xf32>, vector<8x128xf32> -> vector<8x128xf32>
    %126 = arith.addf %121, %125 : vector<8x128xf32>
    %127 = vector.extract_strided_slice %5 {offsets = [0, 20], sizes = [4, 128], strides = [1, 1]} : vector<4x256xf32> to vector<4x128xf32>
    %c24 = arith.constant 24 : index
    %c0_84 = arith.constant 0 : index
    %c0_85 = arith.constant 0 : index
    %128 = vector.load %arg5[%c24, %c0_84, %c0_85] : memref<27x8x4xf32, #tpu.memory_space<vmem>>, vector<1x8x4xf32>
    %129 = vector.shape_cast %128 : vector<1x8x4xf32> to vector<8x4xf32>
    %cst_86 = arith.constant dense<0.000000e+00> : vector<8x128xf32>
    %130 = tpu.matmul %129, %127, %cst_86 {dimension_numbers = #tpu.dot_dimension_numbers<[1], [0], [0], [1], [0, 0, 1, 1], [], []>} : vector<8x4xf32>, vector<4x128xf32>, vector<8x128xf32> -> vector<8x128xf32>
    %131 = arith.addf %126, %130 : vector<8x128xf32>
    %132 = vector.extract_strided_slice %5 {offsets = [0, 21], sizes = [4, 128], strides = [1, 1]} : vector<4x256xf32> to vector<4x128xf32>
    %c25 = arith.constant 25 : index
    %c0_87 = arith.constant 0 : index
    %c0_88 = arith.constant 0 : index
    %133 = vector.load %arg5[%c25, %c0_87, %c0_88] : memref<27x8x4xf32, #tpu.memory_space<vmem>>, vector<1x8x4xf32>
    %134 = vector.shape_cast %133 : vector<1x8x4xf32> to vector<8x4xf32>
    %cst_89 = arith.constant dense<0.000000e+00> : vector<8x128xf32>
    %135 = tpu.matmul %134, %132, %cst_89 {dimension_numbers = #tpu.dot_dimension_numbers<[1], [0], [0], [1], [0, 0, 1, 1], [], []>} : vector<8x4xf32>, vector<4x128xf32>, vector<8x128xf32> -> vector<8x128xf32>
    %136 = arith.addf %131, %135 : vector<8x128xf32>
    %137 = vector.extract_strided_slice %5 {offsets = [0, 22], sizes = [4, 128], strides = [1, 1]} : vector<4x256xf32> to vector<4x128xf32>
    %c26 = arith.constant 26 : index
    %c0_90 = arith.constant 0 : index
    %c0_91 = arith.constant 0 : index
    %138 = vector.load %arg5[%c26, %c0_90, %c0_91] : memref<27x8x4xf32, #tpu.memory_space<vmem>>, vector<1x8x4xf32>
    %139 = vector.shape_cast %138 : vector<1x8x4xf32> to vector<8x4xf32>
    %cst_92 = arith.constant dense<0.000000e+00> : vector<8x128xf32>
    %140 = tpu.matmul %139, %137, %cst_92 {dimension_numbers = #tpu.dot_dimension_numbers<[1], [0], [0], [1], [0, 0, 1, 1], [], []>} : vector<8x4xf32>, vector<4x128xf32>, vector<8x128xf32> -> vector<8x128xf32>
    %141 = arith.addf %136, %140 : vector<8x128xf32>
    %c0_93 = arith.constant 0 : index
    %c0_94 = arith.constant 0 : index
    %c0_95 = arith.constant 0 : index
    %c0_96 = arith.constant 0 : index
    %142 = vector.load %arg9[%c0_93, %c0_94, %c0_95, %c0_96] : memref<1x1x8x128xf32, #tpu.memory_space<vmem>>, vector<1x1x8x128xf32>
    %143 = vector.shape_cast %142 : vector<1x1x8x128xf32> to vector<8x128xf32>
    %144 = vector.shape_cast %141 : vector<8x128xf32> to vector<1x1x8x128xf32>
    tpu.vector_store %arg9[%c0_93, %c0_94, %c0_95, %c0_96], %144 {strides = array<i32>} : memref<1x1x8x128xf32, #tpu.memory_space<vmem>>, vector<1x1x8x128xf32>,
    %c0_97 = arith.constant 0 : index
    %c0_98 = arith.constant 0 : index
    %145 = vector.load %arg4[%c0_97, %c0_98] : memref<1x128xf32, #tpu.memory_space<vmem>>, vector<1x128xf32>
    %146 = vector.broadcast %145 : vector<1x128xf32> to vector<8x128xf32>
    %147 = arith.mulf %141, %146 : vector<8x128xf32>
    %cst_99 = arith.constant dense<0.000000e+00> : vector<8xf32>
    %148 = vector.multi_reduction <add>, %147, %cst_99 [1] : vector<8x128xf32> to vector<8xf32>
    %149 = vector.shape_cast %148 : vector<8xf32> to vector<8x1xf32>
    %150 = arith.mulf %147, %141 : vector<8x128xf32>
    %cst_100 = arith.constant dense<0.000000e+00> : vector<8xf32>
    %151 = vector.multi_reduction <add>, %150, %cst_100 [1] : vector<8x128xf32> to vector<8xf32>
    %152 = vector.shape_cast %151 : vector<8xf32> to vector<8x1xf32>
    %153 = tpu.iota {dimensions = array<i32: 1>} : vector<8x2xi32>
    %c0_i32 = arith.constant 0 : i32
    %154 = vector.broadcast %c0_i32 : i32 to vector<8x2xi32>
    %155 = arith.cmpi eq, %153, %154 : vector<8x2xi32>
    %156 = vector.shape_cast %149 : vector<8x1xf32> to vector<8x1xf32>
    %157 = vector.broadcast %156 : vector<8x1xf32> to vector<8x2xf32>
    %158 = vector.shape_cast %152 : vector<8x1xf32> to vector<8x1xf32>
    %159 = vector.broadcast %158 : vector<8x1xf32> to vector<8x2xf32>
    %160 = arith.select %155, %157, %159 : vector<8x2xi1>, vector<8x2xf32>
    %c0_101 = arith.constant 0 : index
    %c0_102 = arith.constant 0 : index
    %c0_103 = arith.constant 0 : index
    %c0_104 = arith.constant 0 : index
    %161 = vector.load %arg10[%c0_101, %c0_102, %c0_103, %c0_104] : memref<1x1x8x2xf32, #tpu.memory_space<vmem>>, vector<1x1x8x2xf32>
    %162 = vector.shape_cast %161 : vector<1x1x8x2xf32> to vector<8x2xf32>
    %163 = vector.shape_cast %160 : vector<8x2xf32> to vector<1x1x8x2xf32>
    tpu.vector_store %arg10[%c0_101, %c0_102, %c0_103, %c0_104], %163 {strides = array<i32>} : memref<1x1x8x2xf32, #tpu.memory_space<vmem>>, vector<1x1x8x2xf32>,
    return
  }
  func.func @transform_0(%arg0: i32, %arg1: i32) -> (i32, i32) {
    %c0_i32 = arith.constant 0 : i32
    %c0_i32_0 = arith.constant 0 : i32
    %c0_i32_1 = arith.constant 0 : i32
    return %c0_i32, %c0_i32_0 : i32, i32
  }
  func.func @transform_1(%arg0: i32, %arg1: i32) -> (i32, i32) {
    %c0_i32 = arith.constant 0 : i32
    %c0_i32_0 = arith.constant 0 : i32
    %c0_i32_1 = arith.constant 0 : i32
    return %c0_i32, %c0_i32_0 : i32, i32
  }
  func.func @transform_2(%arg0: i32, %arg1: i32) -> (i32, i32) {
    %c0_i32 = arith.constant 0 : i32
    %c0_i32_0 = arith.constant 0 : i32
    %c0_i32_1 = arith.constant 0 : i32
    return %c0_i32, %c0_i32_0 : i32, i32
  }
  func.func @transform_3(%arg0: i32, %arg1: i32) -> (i32, i32, i32) {
    %c0_i32 = arith.constant 0 : i32
    %c0_i32_0 = arith.constant 0 : i32
    %c0_i32_1 = arith.constant 0 : i32
    %c0_i32_2 = arith.constant 0 : i32
    return %c0_i32, %c0_i32_0, %c0_i32_1 : i32, i32, i32
  }
  func.func @transform_4(%arg0: i32, %arg1: i32) -> (i32, i32, i32, i32) {
    %c0_i32 = arith.constant 0 : i32
    %0 = arith.addi %arg1, %c0_i32 : i32
    %c1_i32 = arith.constant 1 : i32
    %1 = arith.subi %0, %c1_i32 : i32
    %c0_i32_0 = arith.constant 0 : i32
    %c3_i32 = arith.constant 3 : i32
    %2 = arith.maxsi %c0_i32_0, %1 : i32
    %3 = arith.minsi %c3_i32, %2 : i32
    %c0_i32_1 = arith.constant 0 : i32
    %c0_i32_2 = arith.constant 0 : i32
    %c0_i32_3 = arith.constant 0 : i32
    return %arg0, %3, %c0_i32_1, %c0_i32_2 : i32, i32, i32, i32
  }
  func.func @transform_5(%arg0: i32, %arg1: i32) -> (i32, i32, i32, i32) {
    %c1_i32 = arith.constant 1 : i32
    %0 = arith.addi %arg1, %c1_i32 : i32
    %c1_i32_0 = arith.constant 1 : i32
    %1 = arith.subi %0, %c1_i32_0 : i32
    %c0_i32 = arith.constant 0 : i32
    %c3_i32 = arith.constant 3 : i32
    %2 = arith.maxsi %c0_i32, %1 : i32
    %3 = arith.minsi %c3_i32, %2 : i32
    %c0_i32_1 = arith.constant 0 : i32
    %c0_i32_2 = arith.constant 0 : i32
    %c0_i32_3 = arith.constant 0 : i32
    return %arg0, %3, %c0_i32_1, %c0_i32_2 : i32, i32, i32, i32
  }
  func.func @transform_6(%arg0: i32, %arg1: i32) -> (i32, i32, i32, i32) {
    %c2_i32 = arith.constant 2 : i32
    %0 = arith.addi %arg1, %c2_i32 : i32
    %c1_i32 = arith.constant 1 : i32
    %1 = arith.subi %0, %c1_i32 : i32
    %c0_i32 = arith.constant 0 : i32
    %c3_i32 = arith.constant 3 : i32
    %2 = arith.maxsi %c0_i32, %1 : i32
    %3 = arith.minsi %c3_i32, %2 : i32
    %c0_i32_0 = arith.constant 0 : i32
    %c0_i32_1 = arith.constant 0 : i32
    %c0_i32_2 = arith.constant 0 : i32
    return %arg0, %3, %c0_i32_0, %c0_i32_1 : i32, i32, i32, i32
  }
  func.func @transform_7(%arg0: i32, %arg1: i32) -> (i32, i32, i32, i32) {
    %c0_i32 = arith.constant 0 : i32
    %c0_i32_0 = arith.constant 0 : i32
    %c0_i32_1 = arith.constant 0 : i32
    return %arg0, %arg1, %c0_i32, %c0_i32_0 : i32, i32, i32, i32
  }
  func.func @transform_8(%arg0: i32, %arg1: i32) -> (i32, i32, i32, i32) {
    %c0_i32 = arith.constant 0 : i32
    %c0_i32_0 = arith.constant 0 : i32
    %c0_i32_1 = arith.constant 0 : i32
    return %arg0, %arg1, %c0_i32, %c0_i32_0 : i32, i32, i32, i32
  }
}

module attributes {stable_mosaic.version = 11 : i64} {
  func.func @_conv_bn_stats_kernel(%arg0: i32, %arg1: i32, %arg2: memref<8x1xf32, #tpu.memory_space<vmem>>, %arg3: memref<8x1xf32, #tpu.memory_space<vmem>>, %arg4: memref<1x128xf32, #tpu.memory_space<vmem>>, %arg5: memref<27x8x8xf32, #tpu.memory_space<vmem>>, %arg6: memref<1x1x8x256xf32, #tpu.memory_space<vmem>>, %arg7: memref<1x1x8x256xf32, #tpu.memory_space<vmem>>, %arg8: memref<1x1x8x256xf32, #tpu.memory_space<vmem>>, %arg9: memref<1x1x8x128xf32, #tpu.memory_space<vmem>>, %arg10: memref<1x1x8x2xf32, #tpu.memory_space<vmem>>) attributes {dimension_semantics = [#tpu.dimension_semantics<parallel>, #tpu.dimension_semantics<parallel>], iteration_bounds = array<i64: 2, 4>, scalar_prefetch = 0 : i64, scratch_operands = 0 : i64, tpu.core_type = #tpu.core_type<tc>, window_params = [{pipeline_mode = #tpu.pipeline_mode<synchronous>, transform_indices = @transform_0, window_bounds = array<i64: 8, 1>}, {pipeline_mode = #tpu.pipeline_mode<synchronous>, transform_indices = @transform_1, window_bounds = array<i64: 8, 1>}, {pipeline_mode = #tpu.pipeline_mode<synchronous>, transform_indices = @transform_2, window_bounds = array<i64: 1, 128>}, {pipeline_mode = #tpu.pipeline_mode<synchronous>, transform_indices = @transform_3, window_bounds = array<i64: 27, 8, 8>}, {transform_indices = @transform_4, window_bounds = array<i64: 1, 1, 8, 256>}, {transform_indices = @transform_5, window_bounds = array<i64: 1, 1, 8, 256>}, {transform_indices = @transform_6, window_bounds = array<i64: 1, 1, 8, 256>}, {transform_indices = @transform_7, window_bounds = array<i64: 1, 1, 8, 128>}, {transform_indices = @transform_8, window_bounds = array<i64: 1, 1, 8, 2>}]} {
    %c0 = arith.constant 0 : index
    %c0_0 = arith.constant 0 : index
    %c0_1 = arith.constant 0 : index
    %c0_2 = arith.constant 0 : index
    %0 = vector.load %arg6[%c0, %c0_0, %c0_1, %c0_2] : memref<1x1x8x256xf32, #tpu.memory_space<vmem>>, vector<1x1x8x256xf32>
    %1 = vector.shape_cast %0 : vector<1x1x8x256xf32> to vector<8x256xf32>
    %c0_3 = arith.constant 0 : index
    %c0_4 = arith.constant 0 : index
    %2 = vector.load %arg2[%c0_3, %c0_4] : memref<8x1xf32, #tpu.memory_space<vmem>>, vector<8x1xf32>
    %3 = vector.broadcast %2 : vector<8x1xf32> to vector<8x256xf32>
    %4 = arith.mulf %1, %3 : vector<8x256xf32>
    %c0_5 = arith.constant 0 : index
    %c0_6 = arith.constant 0 : index
    %5 = vector.load %arg3[%c0_5, %c0_6] : memref<8x1xf32, #tpu.memory_space<vmem>>, vector<8x1xf32>
    %6 = vector.broadcast %5 : vector<8x1xf32> to vector<8x256xf32>
    %7 = arith.addf %4, %6 : vector<8x256xf32>
    %cst = arith.constant 0.000000e+00 : f32
    %8 = vector.broadcast %cst : f32 to vector<8x256xf32>
    %9 = arith.cmpf oge, %7, %8 : vector<8x256xf32>
    %cst_7 = arith.constant 0.00999999977 : f32
    %10 = vector.broadcast %cst_7 : f32 to vector<8x256xf32>
    %11 = arith.mulf %10, %7 : vector<8x256xf32>
    %12 = arith.select %9, %7, %11 : vector<8x256xi1>, vector<8x256xf32>
    %c0_8 = arith.constant 0 : index
    %c0_9 = arith.constant 0 : index
    %c0_10 = arith.constant 0 : index
    %c0_11 = arith.constant 0 : index
    %13 = vector.load %arg7[%c0_8, %c0_9, %c0_10, %c0_11] : memref<1x1x8x256xf32, #tpu.memory_space<vmem>>, vector<1x1x8x256xf32>
    %14 = vector.shape_cast %13 : vector<1x1x8x256xf32> to vector<8x256xf32>
    %c0_12 = arith.constant 0 : index
    %c0_13 = arith.constant 0 : index
    %15 = vector.load %arg2[%c0_12, %c0_13] : memref<8x1xf32, #tpu.memory_space<vmem>>, vector<8x1xf32>
    %16 = vector.broadcast %15 : vector<8x1xf32> to vector<8x256xf32>
    %17 = arith.mulf %14, %16 : vector<8x256xf32>
    %c0_14 = arith.constant 0 : index
    %c0_15 = arith.constant 0 : index
    %18 = vector.load %arg3[%c0_14, %c0_15] : memref<8x1xf32, #tpu.memory_space<vmem>>, vector<8x1xf32>
    %19 = vector.broadcast %18 : vector<8x1xf32> to vector<8x256xf32>
    %20 = arith.addf %17, %19 : vector<8x256xf32>
    %cst_16 = arith.constant 0.000000e+00 : f32
    %21 = vector.broadcast %cst_16 : f32 to vector<8x256xf32>
    %22 = arith.cmpf oge, %20, %21 : vector<8x256xf32>
    %cst_17 = arith.constant 0.00999999977 : f32
    %23 = vector.broadcast %cst_17 : f32 to vector<8x256xf32>
    %24 = arith.mulf %23, %20 : vector<8x256xf32>
    %25 = arith.select %22, %20, %24 : vector<8x256xi1>, vector<8x256xf32>
    %c0_18 = arith.constant 0 : index
    %c0_19 = arith.constant 0 : index
    %c0_20 = arith.constant 0 : index
    %c0_21 = arith.constant 0 : index
    %26 = vector.load %arg8[%c0_18, %c0_19, %c0_20, %c0_21] : memref<1x1x8x256xf32, #tpu.memory_space<vmem>>, vector<1x1x8x256xf32>
    %27 = vector.shape_cast %26 : vector<1x1x8x256xf32> to vector<8x256xf32>
    %c0_22 = arith.constant 0 : index
    %c0_23 = arith.constant 0 : index
    %28 = vector.load %arg2[%c0_22, %c0_23] : memref<8x1xf32, #tpu.memory_space<vmem>>, vector<8x1xf32>
    %29 = vector.broadcast %28 : vector<8x1xf32> to vector<8x256xf32>
    %30 = arith.mulf %27, %29 : vector<8x256xf32>
    %c0_24 = arith.constant 0 : index
    %c0_25 = arith.constant 0 : index
    %31 = vector.load %arg3[%c0_24, %c0_25] : memref<8x1xf32, #tpu.memory_space<vmem>>, vector<8x1xf32>
    %32 = vector.broadcast %31 : vector<8x1xf32> to vector<8x256xf32>
    %33 = arith.addf %30, %32 : vector<8x256xf32>
    %cst_26 = arith.constant 0.000000e+00 : f32
    %34 = vector.broadcast %cst_26 : f32 to vector<8x256xf32>
    %35 = arith.cmpf oge, %33, %34 : vector<8x256xf32>
    %cst_27 = arith.constant 0.00999999977 : f32
    %36 = vector.broadcast %cst_27 : f32 to vector<8x256xf32>
    %37 = arith.mulf %36, %33 : vector<8x256xf32>
    %38 = arith.select %35, %33, %37 : vector<8x256xi1>, vector<8x256xf32>
    %cst_28 = arith.constant 0.000000e+00 : f32
    %39 = vector.broadcast %cst_28 : f32 to vector<8x128xf32>
    %40 = vector.extract_strided_slice %12 {offsets = [0, 0], sizes = [8, 128], strides = [1, 1]} : vector<8x256xf32> to vector<8x128xf32>
    %c0_29 = arith.constant 0 : index
    %c0_30 = arith.constant 0 : index
    %c0_31 = arith.constant 0 : index
    %41 = vector.load %arg5[%c0_29, %c0_30, %c0_31] : memref<27x8x8xf32, #tpu.memory_space<vmem>>, vector<1x8x8xf32>
    %42 = vector.shape_cast %41 : vector<1x8x8xf32> to vector<8x8xf32>
    %cst_32 = arith.constant dense<0.000000e+00> : vector<8x128xf32>
    %43 = tpu.matmul %42, %40, %cst_32 {dimension_numbers = #tpu.dot_dimension_numbers<[1], [0], [0], [1], [0, 0, 1, 1], [], []>} : vector<8x8xf32>, vector<8x128xf32>, vector<8x128xf32> -> vector<8x128xf32>
    %44 = arith.addf %39, %43 : vector<8x128xf32>
    %45 = vector.extract_strided_slice %12 {offsets = [0, 1], sizes = [8, 128], strides = [1, 1]} : vector<8x256xf32> to vector<8x128xf32>
    %c1 = arith.constant 1 : index
    %c0_33 = arith.constant 0 : index
    %c0_34 = arith.constant 0 : index
    %46 = vector.load %arg5[%c1, %c0_33, %c0_34] : memref<27x8x8xf32, #tpu.memory_space<vmem>>, vector<1x8x8xf32>
    %47 = vector.shape_cast %46 : vector<1x8x8xf32> to vector<8x8xf32>
    %cst_35 = arith.constant dense<0.000000e+00> : vector<8x128xf32>
    %48 = tpu.matmul %47, %45, %cst_35 {dimension_numbers = #tpu.dot_dimension_numbers<[1], [0], [0], [1], [0, 0, 1, 1], [], []>} : vector<8x8xf32>, vector<8x128xf32>, vector<8x128xf32> -> vector<8x128xf32>
    %49 = arith.addf %44, %48 : vector<8x128xf32>
    %50 = vector.extract_strided_slice %12 {offsets = [0, 2], sizes = [8, 128], strides = [1, 1]} : vector<8x256xf32> to vector<8x128xf32>
    %c2 = arith.constant 2 : index
    %c0_36 = arith.constant 0 : index
    %c0_37 = arith.constant 0 : index
    %51 = vector.load %arg5[%c2, %c0_36, %c0_37] : memref<27x8x8xf32, #tpu.memory_space<vmem>>, vector<1x8x8xf32>
    %52 = vector.shape_cast %51 : vector<1x8x8xf32> to vector<8x8xf32>
    %cst_38 = arith.constant dense<0.000000e+00> : vector<8x128xf32>
    %53 = tpu.matmul %52, %50, %cst_38 {dimension_numbers = #tpu.dot_dimension_numbers<[1], [0], [0], [1], [0, 0, 1, 1], [], []>} : vector<8x8xf32>, vector<8x128xf32>, vector<8x128xf32> -> vector<8x128xf32>
    %54 = arith.addf %49, %53 : vector<8x128xf32>
    %55 = vector.extract_strided_slice %12 {offsets = [0, 10], sizes = [8, 128], strides = [1, 1]} : vector<8x256xf32> to vector<8x128xf32>
    %c3 = arith.constant 3 : index
    %c0_39 = arith.constant 0 : index
    %c0_40 = arith.constant 0 : index
    %56 = vector.load %arg5[%c3, %c0_39, %c0_40] : memref<27x8x8xf32, #tpu.memory_space<vmem>>, vector<1x8x8xf32>
    %57 = vector.shape_cast %56 : vector<1x8x8xf32> to vector<8x8xf32>
    %cst_41 = arith.constant dense<0.000000e+00> : vector<8x128xf32>
    %58 = tpu.matmul %57, %55, %cst_41 {dimension_numbers = #tpu.dot_dimension_numbers<[1], [0], [0], [1], [0, 0, 1, 1], [], []>} : vector<8x8xf32>, vector<8x128xf32>, vector<8x128xf32> -> vector<8x128xf32>
    %59 = arith.addf %54, %58 : vector<8x128xf32>
    %60 = vector.extract_strided_slice %12 {offsets = [0, 11], sizes = [8, 128], strides = [1, 1]} : vector<8x256xf32> to vector<8x128xf32>
    %c4 = arith.constant 4 : index
    %c0_42 = arith.constant 0 : index
    %c0_43 = arith.constant 0 : index
    %61 = vector.load %arg5[%c4, %c0_42, %c0_43] : memref<27x8x8xf32, #tpu.memory_space<vmem>>, vector<1x8x8xf32>
    %62 = vector.shape_cast %61 : vector<1x8x8xf32> to vector<8x8xf32>
    %cst_44 = arith.constant dense<0.000000e+00> : vector<8x128xf32>
    %63 = tpu.matmul %62, %60, %cst_44 {dimension_numbers = #tpu.dot_dimension_numbers<[1], [0], [0], [1], [0, 0, 1, 1], [], []>} : vector<8x8xf32>, vector<8x128xf32>, vector<8x128xf32> -> vector<8x128xf32>
    %64 = arith.addf %59, %63 : vector<8x128xf32>
    %65 = vector.extract_strided_slice %12 {offsets = [0, 12], sizes = [8, 128], strides = [1, 1]} : vector<8x256xf32> to vector<8x128xf32>
    %c5 = arith.constant 5 : index
    %c0_45 = arith.constant 0 : index
    %c0_46 = arith.constant 0 : index
    %66 = vector.load %arg5[%c5, %c0_45, %c0_46] : memref<27x8x8xf32, #tpu.memory_space<vmem>>, vector<1x8x8xf32>
    %67 = vector.shape_cast %66 : vector<1x8x8xf32> to vector<8x8xf32>
    %cst_47 = arith.constant dense<0.000000e+00> : vector<8x128xf32>
    %68 = tpu.matmul %67, %65, %cst_47 {dimension_numbers = #tpu.dot_dimension_numbers<[1], [0], [0], [1], [0, 0, 1, 1], [], []>} : vector<8x8xf32>, vector<8x128xf32>, vector<8x128xf32> -> vector<8x128xf32>
    %69 = arith.addf %64, %68 : vector<8x128xf32>
    %70 = vector.extract_strided_slice %12 {offsets = [0, 20], sizes = [8, 128], strides = [1, 1]} : vector<8x256xf32> to vector<8x128xf32>
    %c6 = arith.constant 6 : index
    %c0_48 = arith.constant 0 : index
    %c0_49 = arith.constant 0 : index
    %71 = vector.load %arg5[%c6, %c0_48, %c0_49] : memref<27x8x8xf32, #tpu.memory_space<vmem>>, vector<1x8x8xf32>
    %72 = vector.shape_cast %71 : vector<1x8x8xf32> to vector<8x8xf32>
    %cst_50 = arith.constant dense<0.000000e+00> : vector<8x128xf32>
    %73 = tpu.matmul %72, %70, %cst_50 {dimension_numbers = #tpu.dot_dimension_numbers<[1], [0], [0], [1], [0, 0, 1, 1], [], []>} : vector<8x8xf32>, vector<8x128xf32>, vector<8x128xf32> -> vector<8x128xf32>
    %74 = arith.addf %69, %73 : vector<8x128xf32>
    %75 = vector.extract_strided_slice %12 {offsets = [0, 21], sizes = [8, 128], strides = [1, 1]} : vector<8x256xf32> to vector<8x128xf32>
    %c7 = arith.constant 7 : index
    %c0_51 = arith.constant 0 : index
    %c0_52 = arith.constant 0 : index
    %76 = vector.load %arg5[%c7, %c0_51, %c0_52] : memref<27x8x8xf32, #tpu.memory_space<vmem>>, vector<1x8x8xf32>
    %77 = vector.shape_cast %76 : vector<1x8x8xf32> to vector<8x8xf32>
    %cst_53 = arith.constant dense<0.000000e+00> : vector<8x128xf32>
    %78 = tpu.matmul %77, %75, %cst_53 {dimension_numbers = #tpu.dot_dimension_numbers<[1], [0], [0], [1], [0, 0, 1, 1], [], []>} : vector<8x8xf32>, vector<8x128xf32>, vector<8x128xf32> -> vector<8x128xf32>
    %79 = arith.addf %74, %78 : vector<8x128xf32>
    %80 = vector.extract_strided_slice %12 {offsets = [0, 22], sizes = [8, 128], strides = [1, 1]} : vector<8x256xf32> to vector<8x128xf32>
    %c8 = arith.constant 8 : index
    %c0_54 = arith.constant 0 : index
    %c0_55 = arith.constant 0 : index
    %81 = vector.load %arg5[%c8, %c0_54, %c0_55] : memref<27x8x8xf32, #tpu.memory_space<vmem>>, vector<1x8x8xf32>
    %82 = vector.shape_cast %81 : vector<1x8x8xf32> to vector<8x8xf32>
    %cst_56 = arith.constant dense<0.000000e+00> : vector<8x128xf32>
    %83 = tpu.matmul %82, %80, %cst_56 {dimension_numbers = #tpu.dot_dimension_numbers<[1], [0], [0], [1], [0, 0, 1, 1], [], []>} : vector<8x8xf32>, vector<8x128xf32>, vector<8x128xf32> -> vector<8x128xf32>
    %84 = arith.addf %79, %83 : vector<8x128xf32>
    %85 = vector.extract_strided_slice %25 {offsets = [0, 0], sizes = [8, 128], strides = [1, 1]} : vector<8x256xf32> to vector<8x128xf32>
    %c9 = arith.constant 9 : index
    %c0_57 = arith.constant 0 : index
    %c0_58 = arith.constant 0 : index
    %86 = vector.load %arg5[%c9, %c0_57, %c0_58] : memref<27x8x8xf32, #tpu.memory_space<vmem>>, vector<1x8x8xf32>
    %87 = vector.shape_cast %86 : vector<1x8x8xf32> to vector<8x8xf32>
    %cst_59 = arith.constant dense<0.000000e+00> : vector<8x128xf32>
    %88 = tpu.matmul %87, %85, %cst_59 {dimension_numbers = #tpu.dot_dimension_numbers<[1], [0], [0], [1], [0, 0, 1, 1], [], []>} : vector<8x8xf32>, vector<8x128xf32>, vector<8x128xf32> -> vector<8x128xf32>
    %89 = arith.addf %84, %88 : vector<8x128xf32>
    %90 = vector.extract_strided_slice %25 {offsets = [0, 1], sizes = [8, 128], strides = [1, 1]} : vector<8x256xf32> to vector<8x128xf32>
    %c10 = arith.constant 10 : index
    %c0_60 = arith.constant 0 : index
    %c0_61 = arith.constant 0 : index
    %91 = vector.load %arg5[%c10, %c0_60, %c0_61] : memref<27x8x8xf32, #tpu.memory_space<vmem>>, vector<1x8x8xf32>
    %92 = vector.shape_cast %91 : vector<1x8x8xf32> to vector<8x8xf32>
    %cst_62 = arith.constant dense<0.000000e+00> : vector<8x128xf32>
    %93 = tpu.matmul %92, %90, %cst_62 {dimension_numbers = #tpu.dot_dimension_numbers<[1], [0], [0], [1], [0, 0, 1, 1], [], []>} : vector<8x8xf32>, vector<8x128xf32>, vector<8x128xf32> -> vector<8x128xf32>
    %94 = arith.addf %89, %93 : vector<8x128xf32>
    %95 = vector.extract_strided_slice %25 {offsets = [0, 2], sizes = [8, 128], strides = [1, 1]} : vector<8x256xf32> to vector<8x128xf32>
    %c11 = arith.constant 11 : index
    %c0_63 = arith.constant 0 : index
    %c0_64 = arith.constant 0 : index
    %96 = vector.load %arg5[%c11, %c0_63, %c0_64] : memref<27x8x8xf32, #tpu.memory_space<vmem>>, vector<1x8x8xf32>
    %97 = vector.shape_cast %96 : vector<1x8x8xf32> to vector<8x8xf32>
    %cst_65 = arith.constant dense<0.000000e+00> : vector<8x128xf32>
    %98 = tpu.matmul %97, %95, %cst_65 {dimension_numbers = #tpu.dot_dimension_numbers<[1], [0], [0], [1], [0, 0, 1, 1], [], []>} : vector<8x8xf32>, vector<8x128xf32>, vector<8x128xf32> -> vector<8x128xf32>
    %99 = arith.addf %94, %98 : vector<8x128xf32>
    %100 = vector.extract_strided_slice %25 {offsets = [0, 10], sizes = [8, 128], strides = [1, 1]} : vector<8x256xf32> to vector<8x128xf32>
    %c12 = arith.constant 12 : index
    %c0_66 = arith.constant 0 : index
    %c0_67 = arith.constant 0 : index
    %101 = vector.load %arg5[%c12, %c0_66, %c0_67] : memref<27x8x8xf32, #tpu.memory_space<vmem>>, vector<1x8x8xf32>
    %102 = vector.shape_cast %101 : vector<1x8x8xf32> to vector<8x8xf32>
    %cst_68 = arith.constant dense<0.000000e+00> : vector<8x128xf32>
    %103 = tpu.matmul %102, %100, %cst_68 {dimension_numbers = #tpu.dot_dimension_numbers<[1], [0], [0], [1], [0, 0, 1, 1], [], []>} : vector<8x8xf32>, vector<8x128xf32>, vector<8x128xf32> -> vector<8x128xf32>
    %104 = arith.addf %99, %103 : vector<8x128xf32>
    %105 = vector.extract_strided_slice %25 {offsets = [0, 11], sizes = [8, 128], strides = [1, 1]} : vector<8x256xf32> to vector<8x128xf32>
    %c13 = arith.constant 13 : index
    %c0_69 = arith.constant 0 : index
    %c0_70 = arith.constant 0 : index
    %106 = vector.load %arg5[%c13, %c0_69, %c0_70] : memref<27x8x8xf32, #tpu.memory_space<vmem>>, vector<1x8x8xf32>
    %107 = vector.shape_cast %106 : vector<1x8x8xf32> to vector<8x8xf32>
    %cst_71 = arith.constant dense<0.000000e+00> : vector<8x128xf32>
    %108 = tpu.matmul %107, %105, %cst_71 {dimension_numbers = #tpu.dot_dimension_numbers<[1], [0], [0], [1], [0, 0, 1, 1], [], []>} : vector<8x8xf32>, vector<8x128xf32>, vector<8x128xf32> -> vector<8x128xf32>
    %109 = arith.addf %104, %108 : vector<8x128xf32>
    %110 = vector.extract_strided_slice %25 {offsets = [0, 12], sizes = [8, 128], strides = [1, 1]} : vector<8x256xf32> to vector<8x128xf32>
    %c14 = arith.constant 14 : index
    %c0_72 = arith.constant 0 : index
    %c0_73 = arith.constant 0 : index
    %111 = vector.load %arg5[%c14, %c0_72, %c0_73] : memref<27x8x8xf32, #tpu.memory_space<vmem>>, vector<1x8x8xf32>
    %112 = vector.shape_cast %111 : vector<1x8x8xf32> to vector<8x8xf32>
    %cst_74 = arith.constant dense<0.000000e+00> : vector<8x128xf32>
    %113 = tpu.matmul %112, %110, %cst_74 {dimension_numbers = #tpu.dot_dimension_numbers<[1], [0], [0], [1], [0, 0, 1, 1], [], []>} : vector<8x8xf32>, vector<8x128xf32>, vector<8x128xf32> -> vector<8x128xf32>
    %114 = arith.addf %109, %113 : vector<8x128xf32>
    %115 = vector.extract_strided_slice %25 {offsets = [0, 20], sizes = [8, 128], strides = [1, 1]} : vector<8x256xf32> to vector<8x128xf32>
    %c15 = arith.constant 15 : index
    %c0_75 = arith.constant 0 : index
    %c0_76 = arith.constant 0 : index
    %116 = vector.load %arg5[%c15, %c0_75, %c0_76] : memref<27x8x8xf32, #tpu.memory_space<vmem>>, vector<1x8x8xf32>
    %117 = vector.shape_cast %116 : vector<1x8x8xf32> to vector<8x8xf32>
    %cst_77 = arith.constant dense<0.000000e+00> : vector<8x128xf32>
    %118 = tpu.matmul %117, %115, %cst_77 {dimension_numbers = #tpu.dot_dimension_numbers<[1], [0], [0], [1], [0, 0, 1, 1], [], []>} : vector<8x8xf32>, vector<8x128xf32>, vector<8x128xf32> -> vector<8x128xf32>
    %119 = arith.addf %114, %118 : vector<8x128xf32>
    %120 = vector.extract_strided_slice %25 {offsets = [0, 21], sizes = [8, 128], strides = [1, 1]} : vector<8x256xf32> to vector<8x128xf32>
    %c16 = arith.constant 16 : index
    %c0_78 = arith.constant 0 : index
    %c0_79 = arith.constant 0 : index
    %121 = vector.load %arg5[%c16, %c0_78, %c0_79] : memref<27x8x8xf32, #tpu.memory_space<vmem>>, vector<1x8x8xf32>
    %122 = vector.shape_cast %121 : vector<1x8x8xf32> to vector<8x8xf32>
    %cst_80 = arith.constant dense<0.000000e+00> : vector<8x128xf32>
    %123 = tpu.matmul %122, %120, %cst_80 {dimension_numbers = #tpu.dot_dimension_numbers<[1], [0], [0], [1], [0, 0, 1, 1], [], []>} : vector<8x8xf32>, vector<8x128xf32>, vector<8x128xf32> -> vector<8x128xf32>
    %124 = arith.addf %119, %123 : vector<8x128xf32>
    %125 = vector.extract_strided_slice %25 {offsets = [0, 22], sizes = [8, 128], strides = [1, 1]} : vector<8x256xf32> to vector<8x128xf32>
    %c17 = arith.constant 17 : index
    %c0_81 = arith.constant 0 : index
    %c0_82 = arith.constant 0 : index
    %126 = vector.load %arg5[%c17, %c0_81, %c0_82] : memref<27x8x8xf32, #tpu.memory_space<vmem>>, vector<1x8x8xf32>
    %127 = vector.shape_cast %126 : vector<1x8x8xf32> to vector<8x8xf32>
    %cst_83 = arith.constant dense<0.000000e+00> : vector<8x128xf32>
    %128 = tpu.matmul %127, %125, %cst_83 {dimension_numbers = #tpu.dot_dimension_numbers<[1], [0], [0], [1], [0, 0, 1, 1], [], []>} : vector<8x8xf32>, vector<8x128xf32>, vector<8x128xf32> -> vector<8x128xf32>
    %129 = arith.addf %124, %128 : vector<8x128xf32>
    %130 = vector.extract_strided_slice %38 {offsets = [0, 0], sizes = [8, 128], strides = [1, 1]} : vector<8x256xf32> to vector<8x128xf32>
    %c18 = arith.constant 18 : index
    %c0_84 = arith.constant 0 : index
    %c0_85 = arith.constant 0 : index
    %131 = vector.load %arg5[%c18, %c0_84, %c0_85] : memref<27x8x8xf32, #tpu.memory_space<vmem>>, vector<1x8x8xf32>
    %132 = vector.shape_cast %131 : vector<1x8x8xf32> to vector<8x8xf32>
    %cst_86 = arith.constant dense<0.000000e+00> : vector<8x128xf32>
    %133 = tpu.matmul %132, %130, %cst_86 {dimension_numbers = #tpu.dot_dimension_numbers<[1], [0], [0], [1], [0, 0, 1, 1], [], []>} : vector<8x8xf32>, vector<8x128xf32>, vector<8x128xf32> -> vector<8x128xf32>
    %134 = arith.addf %129, %133 : vector<8x128xf32>
    %135 = vector.extract_strided_slice %38 {offsets = [0, 1], sizes = [8, 128], strides = [1, 1]} : vector<8x256xf32> to vector<8x128xf32>
    %c19 = arith.constant 19 : index
    %c0_87 = arith.constant 0 : index
    %c0_88 = arith.constant 0 : index
    %136 = vector.load %arg5[%c19, %c0_87, %c0_88] : memref<27x8x8xf32, #tpu.memory_space<vmem>>, vector<1x8x8xf32>
    %137 = vector.shape_cast %136 : vector<1x8x8xf32> to vector<8x8xf32>
    %cst_89 = arith.constant dense<0.000000e+00> : vector<8x128xf32>
    %138 = tpu.matmul %137, %135, %cst_89 {dimension_numbers = #tpu.dot_dimension_numbers<[1], [0], [0], [1], [0, 0, 1, 1], [], []>} : vector<8x8xf32>, vector<8x128xf32>, vector<8x128xf32> -> vector<8x128xf32>
    %139 = arith.addf %134, %138 : vector<8x128xf32>
    %140 = vector.extract_strided_slice %38 {offsets = [0, 2], sizes = [8, 128], strides = [1, 1]} : vector<8x256xf32> to vector<8x128xf32>
    %c20 = arith.constant 20 : index
    %c0_90 = arith.constant 0 : index
    %c0_91 = arith.constant 0 : index
    %141 = vector.load %arg5[%c20, %c0_90, %c0_91] : memref<27x8x8xf32, #tpu.memory_space<vmem>>, vector<1x8x8xf32>
    %142 = vector.shape_cast %141 : vector<1x8x8xf32> to vector<8x8xf32>
    %cst_92 = arith.constant dense<0.000000e+00> : vector<8x128xf32>
    %143 = tpu.matmul %142, %140, %cst_92 {dimension_numbers = #tpu.dot_dimension_numbers<[1], [0], [0], [1], [0, 0, 1, 1], [], []>} : vector<8x8xf32>, vector<8x128xf32>, vector<8x128xf32> -> vector<8x128xf32>
    %144 = arith.addf %139, %143 : vector<8x128xf32>
    %145 = vector.extract_strided_slice %38 {offsets = [0, 10], sizes = [8, 128], strides = [1, 1]} : vector<8x256xf32> to vector<8x128xf32>
    %c21 = arith.constant 21 : index
    %c0_93 = arith.constant 0 : index
    %c0_94 = arith.constant 0 : index
    %146 = vector.load %arg5[%c21, %c0_93, %c0_94] : memref<27x8x8xf32, #tpu.memory_space<vmem>>, vector<1x8x8xf32>
    %147 = vector.shape_cast %146 : vector<1x8x8xf32> to vector<8x8xf32>
    %cst_95 = arith.constant dense<0.000000e+00> : vector<8x128xf32>
    %148 = tpu.matmul %147, %145, %cst_95 {dimension_numbers = #tpu.dot_dimension_numbers<[1], [0], [0], [1], [0, 0, 1, 1], [], []>} : vector<8x8xf32>, vector<8x128xf32>, vector<8x128xf32> -> vector<8x128xf32>
    %149 = arith.addf %144, %148 : vector<8x128xf32>
    %150 = vector.extract_strided_slice %38 {offsets = [0, 11], sizes = [8, 128], strides = [1, 1]} : vector<8x256xf32> to vector<8x128xf32>
    %c22 = arith.constant 22 : index
    %c0_96 = arith.constant 0 : index
    %c0_97 = arith.constant 0 : index
    %151 = vector.load %arg5[%c22, %c0_96, %c0_97] : memref<27x8x8xf32, #tpu.memory_space<vmem>>, vector<1x8x8xf32>
    %152 = vector.shape_cast %151 : vector<1x8x8xf32> to vector<8x8xf32>
    %cst_98 = arith.constant dense<0.000000e+00> : vector<8x128xf32>
    %153 = tpu.matmul %152, %150, %cst_98 {dimension_numbers = #tpu.dot_dimension_numbers<[1], [0], [0], [1], [0, 0, 1, 1], [], []>} : vector<8x8xf32>, vector<8x128xf32>, vector<8x128xf32> -> vector<8x128xf32>
    %154 = arith.addf %149, %153 : vector<8x128xf32>
    %155 = vector.extract_strided_slice %38 {offsets = [0, 12], sizes = [8, 128], strides = [1, 1]} : vector<8x256xf32> to vector<8x128xf32>
    %c23 = arith.constant 23 : index
    %c0_99 = arith.constant 0 : index
    %c0_100 = arith.constant 0 : index
    %156 = vector.load %arg5[%c23, %c0_99, %c0_100] : memref<27x8x8xf32, #tpu.memory_space<vmem>>, vector<1x8x8xf32>
    %157 = vector.shape_cast %156 : vector<1x8x8xf32> to vector<8x8xf32>
    %cst_101 = arith.constant dense<0.000000e+00> : vector<8x128xf32>
    %158 = tpu.matmul %157, %155, %cst_101 {dimension_numbers = #tpu.dot_dimension_numbers<[1], [0], [0], [1], [0, 0, 1, 1], [], []>} : vector<8x8xf32>, vector<8x128xf32>, vector<8x128xf32> -> vector<8x128xf32>
    %159 = arith.addf %154, %158 : vector<8x128xf32>
    %160 = vector.extract_strided_slice %38 {offsets = [0, 20], sizes = [8, 128], strides = [1, 1]} : vector<8x256xf32> to vector<8x128xf32>
    %c24 = arith.constant 24 : index
    %c0_102 = arith.constant 0 : index
    %c0_103 = arith.constant 0 : index
    %161 = vector.load %arg5[%c24, %c0_102, %c0_103] : memref<27x8x8xf32, #tpu.memory_space<vmem>>, vector<1x8x8xf32>
    %162 = vector.shape_cast %161 : vector<1x8x8xf32> to vector<8x8xf32>
    %cst_104 = arith.constant dense<0.000000e+00> : vector<8x128xf32>
    %163 = tpu.matmul %162, %160, %cst_104 {dimension_numbers = #tpu.dot_dimension_numbers<[1], [0], [0], [1], [0, 0, 1, 1], [], []>} : vector<8x8xf32>, vector<8x128xf32>, vector<8x128xf32> -> vector<8x128xf32>
    %164 = arith.addf %159, %163 : vector<8x128xf32>
    %165 = vector.extract_strided_slice %38 {offsets = [0, 21], sizes = [8, 128], strides = [1, 1]} : vector<8x256xf32> to vector<8x128xf32>
    %c25 = arith.constant 25 : index
    %c0_105 = arith.constant 0 : index
    %c0_106 = arith.constant 0 : index
    %166 = vector.load %arg5[%c25, %c0_105, %c0_106] : memref<27x8x8xf32, #tpu.memory_space<vmem>>, vector<1x8x8xf32>
    %167 = vector.shape_cast %166 : vector<1x8x8xf32> to vector<8x8xf32>
    %cst_107 = arith.constant dense<0.000000e+00> : vector<8x128xf32>
    %168 = tpu.matmul %167, %165, %cst_107 {dimension_numbers = #tpu.dot_dimension_numbers<[1], [0], [0], [1], [0, 0, 1, 1], [], []>} : vector<8x8xf32>, vector<8x128xf32>, vector<8x128xf32> -> vector<8x128xf32>
    %169 = arith.addf %164, %168 : vector<8x128xf32>
    %170 = vector.extract_strided_slice %38 {offsets = [0, 22], sizes = [8, 128], strides = [1, 1]} : vector<8x256xf32> to vector<8x128xf32>
    %c26 = arith.constant 26 : index
    %c0_108 = arith.constant 0 : index
    %c0_109 = arith.constant 0 : index
    %171 = vector.load %arg5[%c26, %c0_108, %c0_109] : memref<27x8x8xf32, #tpu.memory_space<vmem>>, vector<1x8x8xf32>
    %172 = vector.shape_cast %171 : vector<1x8x8xf32> to vector<8x8xf32>
    %cst_110 = arith.constant dense<0.000000e+00> : vector<8x128xf32>
    %173 = tpu.matmul %172, %170, %cst_110 {dimension_numbers = #tpu.dot_dimension_numbers<[1], [0], [0], [1], [0, 0, 1, 1], [], []>} : vector<8x8xf32>, vector<8x128xf32>, vector<8x128xf32> -> vector<8x128xf32>
    %174 = arith.addf %169, %173 : vector<8x128xf32>
    %c0_111 = arith.constant 0 : index
    %c0_112 = arith.constant 0 : index
    %c0_113 = arith.constant 0 : index
    %c0_114 = arith.constant 0 : index
    %175 = vector.load %arg9[%c0_111, %c0_112, %c0_113, %c0_114] : memref<1x1x8x128xf32, #tpu.memory_space<vmem>>, vector<1x1x8x128xf32>
    %176 = vector.shape_cast %175 : vector<1x1x8x128xf32> to vector<8x128xf32>
    %177 = vector.shape_cast %174 : vector<8x128xf32> to vector<1x1x8x128xf32>
    tpu.vector_store %arg9[%c0_111, %c0_112, %c0_113, %c0_114], %177 {strides = array<i32>} : memref<1x1x8x128xf32, #tpu.memory_space<vmem>>, vector<1x1x8x128xf32>,
    %c0_115 = arith.constant 0 : index
    %c0_116 = arith.constant 0 : index
    %178 = vector.load %arg4[%c0_115, %c0_116] : memref<1x128xf32, #tpu.memory_space<vmem>>, vector<1x128xf32>
    %179 = vector.broadcast %178 : vector<1x128xf32> to vector<8x128xf32>
    %180 = arith.mulf %174, %179 : vector<8x128xf32>
    %cst_117 = arith.constant dense<0.000000e+00> : vector<8xf32>
    %181 = vector.multi_reduction <add>, %180, %cst_117 [1] : vector<8x128xf32> to vector<8xf32>
    %182 = vector.shape_cast %181 : vector<8xf32> to vector<8x1xf32>
    %183 = arith.mulf %180, %174 : vector<8x128xf32>
    %cst_118 = arith.constant dense<0.000000e+00> : vector<8xf32>
    %184 = vector.multi_reduction <add>, %183, %cst_118 [1] : vector<8x128xf32> to vector<8xf32>
    %185 = vector.shape_cast %184 : vector<8xf32> to vector<8x1xf32>
    %186 = tpu.iota {dimensions = array<i32: 1>} : vector<8x2xi32>
    %c0_i32 = arith.constant 0 : i32
    %187 = vector.broadcast %c0_i32 : i32 to vector<8x2xi32>
    %188 = arith.cmpi eq, %186, %187 : vector<8x2xi32>
    %189 = vector.shape_cast %182 : vector<8x1xf32> to vector<8x1xf32>
    %190 = vector.broadcast %189 : vector<8x1xf32> to vector<8x2xf32>
    %191 = vector.shape_cast %185 : vector<8x1xf32> to vector<8x1xf32>
    %192 = vector.broadcast %191 : vector<8x1xf32> to vector<8x2xf32>
    %193 = arith.select %188, %190, %192 : vector<8x2xi1>, vector<8x2xf32>
    %c0_119 = arith.constant 0 : index
    %c0_120 = arith.constant 0 : index
    %c0_121 = arith.constant 0 : index
    %c0_122 = arith.constant 0 : index
    %194 = vector.load %arg10[%c0_119, %c0_120, %c0_121, %c0_122] : memref<1x1x8x2xf32, #tpu.memory_space<vmem>>, vector<1x1x8x2xf32>
    %195 = vector.shape_cast %194 : vector<1x1x8x2xf32> to vector<8x2xf32>
    %196 = vector.shape_cast %193 : vector<8x2xf32> to vector<1x1x8x2xf32>
    tpu.vector_store %arg10[%c0_119, %c0_120, %c0_121, %c0_122], %196 {strides = array<i32>} : memref<1x1x8x2xf32, #tpu.memory_space<vmem>>, vector<1x1x8x2xf32>,
    return
  }
  func.func @transform_0(%arg0: i32, %arg1: i32) -> (i32, i32) {
    %c0_i32 = arith.constant 0 : i32
    %c0_i32_0 = arith.constant 0 : i32
    %c0_i32_1 = arith.constant 0 : i32
    return %c0_i32, %c0_i32_0 : i32, i32
  }
  func.func @transform_1(%arg0: i32, %arg1: i32) -> (i32, i32) {
    %c0_i32 = arith.constant 0 : i32
    %c0_i32_0 = arith.constant 0 : i32
    %c0_i32_1 = arith.constant 0 : i32
    return %c0_i32, %c0_i32_0 : i32, i32
  }
  func.func @transform_2(%arg0: i32, %arg1: i32) -> (i32, i32) {
    %c0_i32 = arith.constant 0 : i32
    %c0_i32_0 = arith.constant 0 : i32
    %c0_i32_1 = arith.constant 0 : i32
    return %c0_i32, %c0_i32_0 : i32, i32
  }
  func.func @transform_3(%arg0: i32, %arg1: i32) -> (i32, i32, i32) {
    %c0_i32 = arith.constant 0 : i32
    %c0_i32_0 = arith.constant 0 : i32
    %c0_i32_1 = arith.constant 0 : i32
    %c0_i32_2 = arith.constant 0 : i32
    return %c0_i32, %c0_i32_0, %c0_i32_1 : i32, i32, i32
  }
  func.func @transform_4(%arg0: i32, %arg1: i32) -> (i32, i32, i32, i32) {
    %c0_i32 = arith.constant 0 : i32
    %0 = arith.addi %arg1, %c0_i32 : i32
    %c1_i32 = arith.constant 1 : i32
    %1 = arith.subi %0, %c1_i32 : i32
    %c0_i32_0 = arith.constant 0 : i32
    %c3_i32 = arith.constant 3 : i32
    %2 = arith.maxsi %c0_i32_0, %1 : i32
    %3 = arith.minsi %c3_i32, %2 : i32
    %c0_i32_1 = arith.constant 0 : i32
    %c0_i32_2 = arith.constant 0 : i32
    %c0_i32_3 = arith.constant 0 : i32
    return %arg0, %3, %c0_i32_1, %c0_i32_2 : i32, i32, i32, i32
  }
  func.func @transform_5(%arg0: i32, %arg1: i32) -> (i32, i32, i32, i32) {
    %c1_i32 = arith.constant 1 : i32
    %0 = arith.addi %arg1, %c1_i32 : i32
    %c1_i32_0 = arith.constant 1 : i32
    %1 = arith.subi %0, %c1_i32_0 : i32
    %c0_i32 = arith.constant 0 : i32
    %c3_i32 = arith.constant 3 : i32
    %2 = arith.maxsi %c0_i32, %1 : i32
    %3 = arith.minsi %c3_i32, %2 : i32
    %c0_i32_1 = arith.constant 0 : i32
    %c0_i32_2 = arith.constant 0 : i32
    %c0_i32_3 = arith.constant 0 : i32
    return %arg0, %3, %c0_i32_1, %c0_i32_2 : i32, i32, i32, i32
  }
  func.func @transform_6(%arg0: i32, %arg1: i32) -> (i32, i32, i32, i32) {
    %c2_i32 = arith.constant 2 : i32
    %0 = arith.addi %arg1, %c2_i32 : i32
    %c1_i32 = arith.constant 1 : i32
    %1 = arith.subi %0, %c1_i32 : i32
    %c0_i32 = arith.constant 0 : i32
    %c3_i32 = arith.constant 3 : i32
    %2 = arith.maxsi %c0_i32, %1 : i32
    %3 = arith.minsi %c3_i32, %2 : i32
    %c0_i32_0 = arith.constant 0 : i32
    %c0_i32_1 = arith.constant 0 : i32
    %c0_i32_2 = arith.constant 0 : i32
    return %arg0, %3, %c0_i32_0, %c0_i32_1 : i32, i32, i32, i32
  }
  func.func @transform_7(%arg0: i32, %arg1: i32) -> (i32, i32, i32, i32) {
    %c0_i32 = arith.constant 0 : i32
    %c0_i32_0 = arith.constant 0 : i32
    %c0_i32_1 = arith.constant 0 : i32
    return %arg0, %arg1, %c0_i32, %c0_i32_0 : i32, i32, i32, i32
  }
  func.func @transform_8(%arg0: i32, %arg1: i32) -> (i32, i32, i32, i32) {
    %c0_i32 = arith.constant 0 : i32
    %c0_i32_0 = arith.constant 0 : i32
    %c0_i32_1 = arith.constant 0 : i32
    return %arg0, %arg1, %c0_i32, %c0_i32_0 : i32, i32, i32, i32
  }
}

module attributes {stable_mosaic.version = 11 : i64} {
  func.func @_conv_residual_kernel(%arg0: i32, %arg1: i32, %arg2: memref<8x1xf32, #tpu.memory_space<vmem>>, %arg3: memref<8x1xf32, #tpu.memory_space<vmem>>, %arg4: memref<27x3x8xf32, #tpu.memory_space<vmem>>, %arg5: memref<3x1xf32, #tpu.memory_space<vmem>>, %arg6: memref<1x1x4x256xf32, #tpu.memory_space<vmem>>, %arg7: memref<1x1x8x256xf32, #tpu.memory_space<vmem>>, %arg8: memref<1x1x8x256xf32, #tpu.memory_space<vmem>>, %arg9: memref<1x1x8x256xf32, #tpu.memory_space<vmem>>, %arg10: memref<1x1x3x128xf32, #tpu.memory_space<vmem>>) attributes {dimension_semantics = [#tpu.dimension_semantics<parallel>, #tpu.dimension_semantics<parallel>], iteration_bounds = array<i64: 2, 4>, scalar_prefetch = 0 : i64, scratch_operands = 0 : i64, tpu.core_type = #tpu.core_type<tc>, window_params = [{pipeline_mode = #tpu.pipeline_mode<synchronous>, transform_indices = @transform_0, window_bounds = array<i64: 8, 1>}, {pipeline_mode = #tpu.pipeline_mode<synchronous>, transform_indices = @transform_1, window_bounds = array<i64: 8, 1>}, {pipeline_mode = #tpu.pipeline_mode<synchronous>, transform_indices = @transform_2, window_bounds = array<i64: 27, 3, 8>}, {pipeline_mode = #tpu.pipeline_mode<synchronous>, transform_indices = @transform_3, window_bounds = array<i64: 3, 1>}, {transform_indices = @transform_4, window_bounds = array<i64: 1, 1, 4, 256>}, {transform_indices = @transform_5, window_bounds = array<i64: 1, 1, 8, 256>}, {transform_indices = @transform_6, window_bounds = array<i64: 1, 1, 8, 256>}, {transform_indices = @transform_7, window_bounds = array<i64: 1, 1, 8, 256>}, {transform_indices = @transform_8, window_bounds = array<i64: 1, 1, 3, 128>}]} {
    %c0 = arith.constant 0 : index
    %c0_0 = arith.constant 0 : index
    %c0_1 = arith.constant 0 : index
    %c0_2 = arith.constant 0 : index
    %0 = vector.load %arg7[%c0, %c0_0, %c0_1, %c0_2] : memref<1x1x8x256xf32, #tpu.memory_space<vmem>>, vector<1x1x8x256xf32>
    %1 = vector.shape_cast %0 : vector<1x1x8x256xf32> to vector<8x256xf32>
    %c0_3 = arith.constant 0 : index
    %c0_4 = arith.constant 0 : index
    %2 = vector.load %arg2[%c0_3, %c0_4] : memref<8x1xf32, #tpu.memory_space<vmem>>, vector<8x1xf32>
    %3 = vector.broadcast %2 : vector<8x1xf32> to vector<8x256xf32>
    %4 = arith.mulf %1, %3 : vector<8x256xf32>
    %c0_5 = arith.constant 0 : index
    %c0_6 = arith.constant 0 : index
    %5 = vector.load %arg3[%c0_5, %c0_6] : memref<8x1xf32, #tpu.memory_space<vmem>>, vector<8x1xf32>
    %6 = vector.broadcast %5 : vector<8x1xf32> to vector<8x256xf32>
    %7 = arith.addf %4, %6 : vector<8x256xf32>
    %cst = arith.constant 0.000000e+00 : f32
    %8 = vector.broadcast %cst : f32 to vector<8x256xf32>
    %9 = arith.cmpf oge, %7, %8 : vector<8x256xf32>
    %cst_7 = arith.constant 0.00999999977 : f32
    %10 = vector.broadcast %cst_7 : f32 to vector<8x256xf32>
    %11 = arith.mulf %10, %7 : vector<8x256xf32>
    %12 = arith.select %9, %7, %11 : vector<8x256xi1>, vector<8x256xf32>
    %c0_8 = arith.constant 0 : index
    %c0_9 = arith.constant 0 : index
    %c0_10 = arith.constant 0 : index
    %c0_11 = arith.constant 0 : index
    %13 = vector.load %arg8[%c0_8, %c0_9, %c0_10, %c0_11] : memref<1x1x8x256xf32, #tpu.memory_space<vmem>>, vector<1x1x8x256xf32>
    %14 = vector.shape_cast %13 : vector<1x1x8x256xf32> to vector<8x256xf32>
    %c0_12 = arith.constant 0 : index
    %c0_13 = arith.constant 0 : index
    %15 = vector.load %arg2[%c0_12, %c0_13] : memref<8x1xf32, #tpu.memory_space<vmem>>, vector<8x1xf32>
    %16 = vector.broadcast %15 : vector<8x1xf32> to vector<8x256xf32>
    %17 = arith.mulf %14, %16 : vector<8x256xf32>
    %c0_14 = arith.constant 0 : index
    %c0_15 = arith.constant 0 : index
    %18 = vector.load %arg3[%c0_14, %c0_15] : memref<8x1xf32, #tpu.memory_space<vmem>>, vector<8x1xf32>
    %19 = vector.broadcast %18 : vector<8x1xf32> to vector<8x256xf32>
    %20 = arith.addf %17, %19 : vector<8x256xf32>
    %cst_16 = arith.constant 0.000000e+00 : f32
    %21 = vector.broadcast %cst_16 : f32 to vector<8x256xf32>
    %22 = arith.cmpf oge, %20, %21 : vector<8x256xf32>
    %cst_17 = arith.constant 0.00999999977 : f32
    %23 = vector.broadcast %cst_17 : f32 to vector<8x256xf32>
    %24 = arith.mulf %23, %20 : vector<8x256xf32>
    %25 = arith.select %22, %20, %24 : vector<8x256xi1>, vector<8x256xf32>
    %c0_18 = arith.constant 0 : index
    %c0_19 = arith.constant 0 : index
    %c0_20 = arith.constant 0 : index
    %c0_21 = arith.constant 0 : index
    %26 = vector.load %arg9[%c0_18, %c0_19, %c0_20, %c0_21] : memref<1x1x8x256xf32, #tpu.memory_space<vmem>>, vector<1x1x8x256xf32>
    %27 = vector.shape_cast %26 : vector<1x1x8x256xf32> to vector<8x256xf32>
    %c0_22 = arith.constant 0 : index
    %c0_23 = arith.constant 0 : index
    %28 = vector.load %arg2[%c0_22, %c0_23] : memref<8x1xf32, #tpu.memory_space<vmem>>, vector<8x1xf32>
    %29 = vector.broadcast %28 : vector<8x1xf32> to vector<8x256xf32>
    %30 = arith.mulf %27, %29 : vector<8x256xf32>
    %c0_24 = arith.constant 0 : index
    %c0_25 = arith.constant 0 : index
    %31 = vector.load %arg3[%c0_24, %c0_25] : memref<8x1xf32, #tpu.memory_space<vmem>>, vector<8x1xf32>
    %32 = vector.broadcast %31 : vector<8x1xf32> to vector<8x256xf32>
    %33 = arith.addf %30, %32 : vector<8x256xf32>
    %cst_26 = arith.constant 0.000000e+00 : f32
    %34 = vector.broadcast %cst_26 : f32 to vector<8x256xf32>
    %35 = arith.cmpf oge, %33, %34 : vector<8x256xf32>
    %cst_27 = arith.constant 0.00999999977 : f32
    %36 = vector.broadcast %cst_27 : f32 to vector<8x256xf32>
    %37 = arith.mulf %36, %33 : vector<8x256xf32>
    %38 = arith.select %35, %33, %37 : vector<8x256xi1>, vector<8x256xf32>
    %cst_28 = arith.constant 0.000000e+00 : f32
    %39 = vector.broadcast %cst_28 : f32 to vector<3x128xf32>
    %40 = vector.extract_strided_slice %12 {offsets = [0, 0], sizes = [8, 128], strides = [1, 1]} : vector<8x256xf32> to vector<8x128xf32>
    %c0_29 = arith.constant 0 : index
    %c0_30 = arith.constant 0 : index
    %c0_31 = arith.constant 0 : index
    %41 = vector.load %arg4[%c0_29, %c0_30, %c0_31] : memref<27x3x8xf32, #tpu.memory_space<vmem>>, vector<1x3x8xf32>
    %42 = vector.shape_cast %41 : vector<1x3x8xf32> to vector<3x8xf32>
    %cst_32 = arith.constant dense<0.000000e+00> : vector<3x128xf32>
    %43 = tpu.matmul %42, %40, %cst_32 {dimension_numbers = #tpu.dot_dimension_numbers<[1], [0], [0], [1], [0, 0, 1, 1], [], []>} : vector<3x8xf32>, vector<8x128xf32>, vector<3x128xf32> -> vector<3x128xf32>
    %44 = arith.addf %39, %43 : vector<3x128xf32>
    %45 = vector.extract_strided_slice %12 {offsets = [0, 1], sizes = [8, 128], strides = [1, 1]} : vector<8x256xf32> to vector<8x128xf32>
    %c1 = arith.constant 1 : index
    %c0_33 = arith.constant 0 : index
    %c0_34 = arith.constant 0 : index
    %46 = vector.load %arg4[%c1, %c0_33, %c0_34] : memref<27x3x8xf32, #tpu.memory_space<vmem>>, vector<1x3x8xf32>
    %47 = vector.shape_cast %46 : vector<1x3x8xf32> to vector<3x8xf32>
    %cst_35 = arith.constant dense<0.000000e+00> : vector<3x128xf32>
    %48 = tpu.matmul %47, %45, %cst_35 {dimension_numbers = #tpu.dot_dimension_numbers<[1], [0], [0], [1], [0, 0, 1, 1], [], []>} : vector<3x8xf32>, vector<8x128xf32>, vector<3x128xf32> -> vector<3x128xf32>
    %49 = arith.addf %44, %48 : vector<3x128xf32>
    %50 = vector.extract_strided_slice %12 {offsets = [0, 2], sizes = [8, 128], strides = [1, 1]} : vector<8x256xf32> to vector<8x128xf32>
    %c2 = arith.constant 2 : index
    %c0_36 = arith.constant 0 : index
    %c0_37 = arith.constant 0 : index
    %51 = vector.load %arg4[%c2, %c0_36, %c0_37] : memref<27x3x8xf32, #tpu.memory_space<vmem>>, vector<1x3x8xf32>
    %52 = vector.shape_cast %51 : vector<1x3x8xf32> to vector<3x8xf32>
    %cst_38 = arith.constant dense<0.000000e+00> : vector<3x128xf32>
    %53 = tpu.matmul %52, %50, %cst_38 {dimension_numbers = #tpu.dot_dimension_numbers<[1], [0], [0], [1], [0, 0, 1, 1], [], []>} : vector<3x8xf32>, vector<8x128xf32>, vector<3x128xf32> -> vector<3x128xf32>
    %54 = arith.addf %49, %53 : vector<3x128xf32>
    %55 = vector.extract_strided_slice %12 {offsets = [0, 10], sizes = [8, 128], strides = [1, 1]} : vector<8x256xf32> to vector<8x128xf32>
    %c3 = arith.constant 3 : index
    %c0_39 = arith.constant 0 : index
    %c0_40 = arith.constant 0 : index
    %56 = vector.load %arg4[%c3, %c0_39, %c0_40] : memref<27x3x8xf32, #tpu.memory_space<vmem>>, vector<1x3x8xf32>
    %57 = vector.shape_cast %56 : vector<1x3x8xf32> to vector<3x8xf32>
    %cst_41 = arith.constant dense<0.000000e+00> : vector<3x128xf32>
    %58 = tpu.matmul %57, %55, %cst_41 {dimension_numbers = #tpu.dot_dimension_numbers<[1], [0], [0], [1], [0, 0, 1, 1], [], []>} : vector<3x8xf32>, vector<8x128xf32>, vector<3x128xf32> -> vector<3x128xf32>
    %59 = arith.addf %54, %58 : vector<3x128xf32>
    %60 = vector.extract_strided_slice %12 {offsets = [0, 11], sizes = [8, 128], strides = [1, 1]} : vector<8x256xf32> to vector<8x128xf32>
    %c4 = arith.constant 4 : index
    %c0_42 = arith.constant 0 : index
    %c0_43 = arith.constant 0 : index
    %61 = vector.load %arg4[%c4, %c0_42, %c0_43] : memref<27x3x8xf32, #tpu.memory_space<vmem>>, vector<1x3x8xf32>
    %62 = vector.shape_cast %61 : vector<1x3x8xf32> to vector<3x8xf32>
    %cst_44 = arith.constant dense<0.000000e+00> : vector<3x128xf32>
    %63 = tpu.matmul %62, %60, %cst_44 {dimension_numbers = #tpu.dot_dimension_numbers<[1], [0], [0], [1], [0, 0, 1, 1], [], []>} : vector<3x8xf32>, vector<8x128xf32>, vector<3x128xf32> -> vector<3x128xf32>
    %64 = arith.addf %59, %63 : vector<3x128xf32>
    %65 = vector.extract_strided_slice %12 {offsets = [0, 12], sizes = [8, 128], strides = [1, 1]} : vector<8x256xf32> to vector<8x128xf32>
    %c5 = arith.constant 5 : index
    %c0_45 = arith.constant 0 : index
    %c0_46 = arith.constant 0 : index
    %66 = vector.load %arg4[%c5, %c0_45, %c0_46] : memref<27x3x8xf32, #tpu.memory_space<vmem>>, vector<1x3x8xf32>
    %67 = vector.shape_cast %66 : vector<1x3x8xf32> to vector<3x8xf32>
    %cst_47 = arith.constant dense<0.000000e+00> : vector<3x128xf32>
    %68 = tpu.matmul %67, %65, %cst_47 {dimension_numbers = #tpu.dot_dimension_numbers<[1], [0], [0], [1], [0, 0, 1, 1], [], []>} : vector<3x8xf32>, vector<8x128xf32>, vector<3x128xf32> -> vector<3x128xf32>
    %69 = arith.addf %64, %68 : vector<3x128xf32>
    %70 = vector.extract_strided_slice %12 {offsets = [0, 20], sizes = [8, 128], strides = [1, 1]} : vector<8x256xf32> to vector<8x128xf32>
    %c6 = arith.constant 6 : index
    %c0_48 = arith.constant 0 : index
    %c0_49 = arith.constant 0 : index
    %71 = vector.load %arg4[%c6, %c0_48, %c0_49] : memref<27x3x8xf32, #tpu.memory_space<vmem>>, vector<1x3x8xf32>
    %72 = vector.shape_cast %71 : vector<1x3x8xf32> to vector<3x8xf32>
    %cst_50 = arith.constant dense<0.000000e+00> : vector<3x128xf32>
    %73 = tpu.matmul %72, %70, %cst_50 {dimension_numbers = #tpu.dot_dimension_numbers<[1], [0], [0], [1], [0, 0, 1, 1], [], []>} : vector<3x8xf32>, vector<8x128xf32>, vector<3x128xf32> -> vector<3x128xf32>
    %74 = arith.addf %69, %73 : vector<3x128xf32>
    %75 = vector.extract_strided_slice %12 {offsets = [0, 21], sizes = [8, 128], strides = [1, 1]} : vector<8x256xf32> to vector<8x128xf32>
    %c7 = arith.constant 7 : index
    %c0_51 = arith.constant 0 : index
    %c0_52 = arith.constant 0 : index
    %76 = vector.load %arg4[%c7, %c0_51, %c0_52] : memref<27x3x8xf32, #tpu.memory_space<vmem>>, vector<1x3x8xf32>
    %77 = vector.shape_cast %76 : vector<1x3x8xf32> to vector<3x8xf32>
    %cst_53 = arith.constant dense<0.000000e+00> : vector<3x128xf32>
    %78 = tpu.matmul %77, %75, %cst_53 {dimension_numbers = #tpu.dot_dimension_numbers<[1], [0], [0], [1], [0, 0, 1, 1], [], []>} : vector<3x8xf32>, vector<8x128xf32>, vector<3x128xf32> -> vector<3x128xf32>
    %79 = arith.addf %74, %78 : vector<3x128xf32>
    %80 = vector.extract_strided_slice %12 {offsets = [0, 22], sizes = [8, 128], strides = [1, 1]} : vector<8x256xf32> to vector<8x128xf32>
    %c8 = arith.constant 8 : index
    %c0_54 = arith.constant 0 : index
    %c0_55 = arith.constant 0 : index
    %81 = vector.load %arg4[%c8, %c0_54, %c0_55] : memref<27x3x8xf32, #tpu.memory_space<vmem>>, vector<1x3x8xf32>
    %82 = vector.shape_cast %81 : vector<1x3x8xf32> to vector<3x8xf32>
    %cst_56 = arith.constant dense<0.000000e+00> : vector<3x128xf32>
    %83 = tpu.matmul %82, %80, %cst_56 {dimension_numbers = #tpu.dot_dimension_numbers<[1], [0], [0], [1], [0, 0, 1, 1], [], []>} : vector<3x8xf32>, vector<8x128xf32>, vector<3x128xf32> -> vector<3x128xf32>
    %84 = arith.addf %79, %83 : vector<3x128xf32>
    %85 = vector.extract_strided_slice %25 {offsets = [0, 0], sizes = [8, 128], strides = [1, 1]} : vector<8x256xf32> to vector<8x128xf32>
    %c9 = arith.constant 9 : index
    %c0_57 = arith.constant 0 : index
    %c0_58 = arith.constant 0 : index
    %86 = vector.load %arg4[%c9, %c0_57, %c0_58] : memref<27x3x8xf32, #tpu.memory_space<vmem>>, vector<1x3x8xf32>
    %87 = vector.shape_cast %86 : vector<1x3x8xf32> to vector<3x8xf32>
    %cst_59 = arith.constant dense<0.000000e+00> : vector<3x128xf32>
    %88 = tpu.matmul %87, %85, %cst_59 {dimension_numbers = #tpu.dot_dimension_numbers<[1], [0], [0], [1], [0, 0, 1, 1], [], []>} : vector<3x8xf32>, vector<8x128xf32>, vector<3x128xf32> -> vector<3x128xf32>
    %89 = arith.addf %84, %88 : vector<3x128xf32>
    %90 = vector.extract_strided_slice %25 {offsets = [0, 1], sizes = [8, 128], strides = [1, 1]} : vector<8x256xf32> to vector<8x128xf32>
    %c10 = arith.constant 10 : index
    %c0_60 = arith.constant 0 : index
    %c0_61 = arith.constant 0 : index
    %91 = vector.load %arg4[%c10, %c0_60, %c0_61] : memref<27x3x8xf32, #tpu.memory_space<vmem>>, vector<1x3x8xf32>
    %92 = vector.shape_cast %91 : vector<1x3x8xf32> to vector<3x8xf32>
    %cst_62 = arith.constant dense<0.000000e+00> : vector<3x128xf32>
    %93 = tpu.matmul %92, %90, %cst_62 {dimension_numbers = #tpu.dot_dimension_numbers<[1], [0], [0], [1], [0, 0, 1, 1], [], []>} : vector<3x8xf32>, vector<8x128xf32>, vector<3x128xf32> -> vector<3x128xf32>
    %94 = arith.addf %89, %93 : vector<3x128xf32>
    %95 = vector.extract_strided_slice %25 {offsets = [0, 2], sizes = [8, 128], strides = [1, 1]} : vector<8x256xf32> to vector<8x128xf32>
    %c11 = arith.constant 11 : index
    %c0_63 = arith.constant 0 : index
    %c0_64 = arith.constant 0 : index
    %96 = vector.load %arg4[%c11, %c0_63, %c0_64] : memref<27x3x8xf32, #tpu.memory_space<vmem>>, vector<1x3x8xf32>
    %97 = vector.shape_cast %96 : vector<1x3x8xf32> to vector<3x8xf32>
    %cst_65 = arith.constant dense<0.000000e+00> : vector<3x128xf32>
    %98 = tpu.matmul %97, %95, %cst_65 {dimension_numbers = #tpu.dot_dimension_numbers<[1], [0], [0], [1], [0, 0, 1, 1], [], []>} : vector<3x8xf32>, vector<8x128xf32>, vector<3x128xf32> -> vector<3x128xf32>
    %99 = arith.addf %94, %98 : vector<3x128xf32>
    %100 = vector.extract_strided_slice %25 {offsets = [0, 10], sizes = [8, 128], strides = [1, 1]} : vector<8x256xf32> to vector<8x128xf32>
    %c12 = arith.constant 12 : index
    %c0_66 = arith.constant 0 : index
    %c0_67 = arith.constant 0 : index
    %101 = vector.load %arg4[%c12, %c0_66, %c0_67] : memref<27x3x8xf32, #tpu.memory_space<vmem>>, vector<1x3x8xf32>
    %102 = vector.shape_cast %101 : vector<1x3x8xf32> to vector<3x8xf32>
    %cst_68 = arith.constant dense<0.000000e+00> : vector<3x128xf32>
    %103 = tpu.matmul %102, %100, %cst_68 {dimension_numbers = #tpu.dot_dimension_numbers<[1], [0], [0], [1], [0, 0, 1, 1], [], []>} : vector<3x8xf32>, vector<8x128xf32>, vector<3x128xf32> -> vector<3x128xf32>
    %104 = arith.addf %99, %103 : vector<3x128xf32>
    %105 = vector.extract_strided_slice %25 {offsets = [0, 11], sizes = [8, 128], strides = [1, 1]} : vector<8x256xf32> to vector<8x128xf32>
    %c13 = arith.constant 13 : index
    %c0_69 = arith.constant 0 : index
    %c0_70 = arith.constant 0 : index
    %106 = vector.load %arg4[%c13, %c0_69, %c0_70] : memref<27x3x8xf32, #tpu.memory_space<vmem>>, vector<1x3x8xf32>
    %107 = vector.shape_cast %106 : vector<1x3x8xf32> to vector<3x8xf32>
    %cst_71 = arith.constant dense<0.000000e+00> : vector<3x128xf32>
    %108 = tpu.matmul %107, %105, %cst_71 {dimension_numbers = #tpu.dot_dimension_numbers<[1], [0], [0], [1], [0, 0, 1, 1], [], []>} : vector<3x8xf32>, vector<8x128xf32>, vector<3x128xf32> -> vector<3x128xf32>
    %109 = arith.addf %104, %108 : vector<3x128xf32>
    %110 = vector.extract_strided_slice %25 {offsets = [0, 12], sizes = [8, 128], strides = [1, 1]} : vector<8x256xf32> to vector<8x128xf32>
    %c14 = arith.constant 14 : index
    %c0_72 = arith.constant 0 : index
    %c0_73 = arith.constant 0 : index
    %111 = vector.load %arg4[%c14, %c0_72, %c0_73] : memref<27x3x8xf32, #tpu.memory_space<vmem>>, vector<1x3x8xf32>
    %112 = vector.shape_cast %111 : vector<1x3x8xf32> to vector<3x8xf32>
    %cst_74 = arith.constant dense<0.000000e+00> : vector<3x128xf32>
    %113 = tpu.matmul %112, %110, %cst_74 {dimension_numbers = #tpu.dot_dimension_numbers<[1], [0], [0], [1], [0, 0, 1, 1], [], []>} : vector<3x8xf32>, vector<8x128xf32>, vector<3x128xf32> -> vector<3x128xf32>
    %114 = arith.addf %109, %113 : vector<3x128xf32>
    %115 = vector.extract_strided_slice %25 {offsets = [0, 20], sizes = [8, 128], strides = [1, 1]} : vector<8x256xf32> to vector<8x128xf32>
    %c15 = arith.constant 15 : index
    %c0_75 = arith.constant 0 : index
    %c0_76 = arith.constant 0 : index
    %116 = vector.load %arg4[%c15, %c0_75, %c0_76] : memref<27x3x8xf32, #tpu.memory_space<vmem>>, vector<1x3x8xf32>
    %117 = vector.shape_cast %116 : vector<1x3x8xf32> to vector<3x8xf32>
    %cst_77 = arith.constant dense<0.000000e+00> : vector<3x128xf32>
    %118 = tpu.matmul %117, %115, %cst_77 {dimension_numbers = #tpu.dot_dimension_numbers<[1], [0], [0], [1], [0, 0, 1, 1], [], []>} : vector<3x8xf32>, vector<8x128xf32>, vector<3x128xf32> -> vector<3x128xf32>
    %119 = arith.addf %114, %118 : vector<3x128xf32>
    %120 = vector.extract_strided_slice %25 {offsets = [0, 21], sizes = [8, 128], strides = [1, 1]} : vector<8x256xf32> to vector<8x128xf32>
    %c16 = arith.constant 16 : index
    %c0_78 = arith.constant 0 : index
    %c0_79 = arith.constant 0 : index
    %121 = vector.load %arg4[%c16, %c0_78, %c0_79] : memref<27x3x8xf32, #tpu.memory_space<vmem>>, vector<1x3x8xf32>
    %122 = vector.shape_cast %121 : vector<1x3x8xf32> to vector<3x8xf32>
    %cst_80 = arith.constant dense<0.000000e+00> : vector<3x128xf32>
    %123 = tpu.matmul %122, %120, %cst_80 {dimension_numbers = #tpu.dot_dimension_numbers<[1], [0], [0], [1], [0, 0, 1, 1], [], []>} : vector<3x8xf32>, vector<8x128xf32>, vector<3x128xf32> -> vector<3x128xf32>
    %124 = arith.addf %119, %123 : vector<3x128xf32>
    %125 = vector.extract_strided_slice %25 {offsets = [0, 22], sizes = [8, 128], strides = [1, 1]} : vector<8x256xf32> to vector<8x128xf32>
    %c17 = arith.constant 17 : index
    %c0_81 = arith.constant 0 : index
    %c0_82 = arith.constant 0 : index
    %126 = vector.load %arg4[%c17, %c0_81, %c0_82] : memref<27x3x8xf32, #tpu.memory_space<vmem>>, vector<1x3x8xf32>
    %127 = vector.shape_cast %126 : vector<1x3x8xf32> to vector<3x8xf32>
    %cst_83 = arith.constant dense<0.000000e+00> : vector<3x128xf32>
    %128 = tpu.matmul %127, %125, %cst_83 {dimension_numbers = #tpu.dot_dimension_numbers<[1], [0], [0], [1], [0, 0, 1, 1], [], []>} : vector<3x8xf32>, vector<8x128xf32>, vector<3x128xf32> -> vector<3x128xf32>
    %129 = arith.addf %124, %128 : vector<3x128xf32>
    %130 = vector.extract_strided_slice %38 {offsets = [0, 0], sizes = [8, 128], strides = [1, 1]} : vector<8x256xf32> to vector<8x128xf32>
    %c18 = arith.constant 18 : index
    %c0_84 = arith.constant 0 : index
    %c0_85 = arith.constant 0 : index
    %131 = vector.load %arg4[%c18, %c0_84, %c0_85] : memref<27x3x8xf32, #tpu.memory_space<vmem>>, vector<1x3x8xf32>
    %132 = vector.shape_cast %131 : vector<1x3x8xf32> to vector<3x8xf32>
    %cst_86 = arith.constant dense<0.000000e+00> : vector<3x128xf32>
    %133 = tpu.matmul %132, %130, %cst_86 {dimension_numbers = #tpu.dot_dimension_numbers<[1], [0], [0], [1], [0, 0, 1, 1], [], []>} : vector<3x8xf32>, vector<8x128xf32>, vector<3x128xf32> -> vector<3x128xf32>
    %134 = arith.addf %129, %133 : vector<3x128xf32>
    %135 = vector.extract_strided_slice %38 {offsets = [0, 1], sizes = [8, 128], strides = [1, 1]} : vector<8x256xf32> to vector<8x128xf32>
    %c19 = arith.constant 19 : index
    %c0_87 = arith.constant 0 : index
    %c0_88 = arith.constant 0 : index
    %136 = vector.load %arg4[%c19, %c0_87, %c0_88] : memref<27x3x8xf32, #tpu.memory_space<vmem>>, vector<1x3x8xf32>
    %137 = vector.shape_cast %136 : vector<1x3x8xf32> to vector<3x8xf32>
    %cst_89 = arith.constant dense<0.000000e+00> : vector<3x128xf32>
    %138 = tpu.matmul %137, %135, %cst_89 {dimension_numbers = #tpu.dot_dimension_numbers<[1], [0], [0], [1], [0, 0, 1, 1], [], []>} : vector<3x8xf32>, vector<8x128xf32>, vector<3x128xf32> -> vector<3x128xf32>
    %139 = arith.addf %134, %138 : vector<3x128xf32>
    %140 = vector.extract_strided_slice %38 {offsets = [0, 2], sizes = [8, 128], strides = [1, 1]} : vector<8x256xf32> to vector<8x128xf32>
    %c20 = arith.constant 20 : index
    %c0_90 = arith.constant 0 : index
    %c0_91 = arith.constant 0 : index
    %141 = vector.load %arg4[%c20, %c0_90, %c0_91] : memref<27x3x8xf32, #tpu.memory_space<vmem>>, vector<1x3x8xf32>
    %142 = vector.shape_cast %141 : vector<1x3x8xf32> to vector<3x8xf32>
    %cst_92 = arith.constant dense<0.000000e+00> : vector<3x128xf32>
    %143 = tpu.matmul %142, %140, %cst_92 {dimension_numbers = #tpu.dot_dimension_numbers<[1], [0], [0], [1], [0, 0, 1, 1], [], []>} : vector<3x8xf32>, vector<8x128xf32>, vector<3x128xf32> -> vector<3x128xf32>
    %144 = arith.addf %139, %143 : vector<3x128xf32>
    %145 = vector.extract_strided_slice %38 {offsets = [0, 10], sizes = [8, 128], strides = [1, 1]} : vector<8x256xf32> to vector<8x128xf32>
    %c21 = arith.constant 21 : index
    %c0_93 = arith.constant 0 : index
    %c0_94 = arith.constant 0 : index
    %146 = vector.load %arg4[%c21, %c0_93, %c0_94] : memref<27x3x8xf32, #tpu.memory_space<vmem>>, vector<1x3x8xf32>
    %147 = vector.shape_cast %146 : vector<1x3x8xf32> to vector<3x8xf32>
    %cst_95 = arith.constant dense<0.000000e+00> : vector<3x128xf32>
    %148 = tpu.matmul %147, %145, %cst_95 {dimension_numbers = #tpu.dot_dimension_numbers<[1], [0], [0], [1], [0, 0, 1, 1], [], []>} : vector<3x8xf32>, vector<8x128xf32>, vector<3x128xf32> -> vector<3x128xf32>
    %149 = arith.addf %144, %148 : vector<3x128xf32>
    %150 = vector.extract_strided_slice %38 {offsets = [0, 11], sizes = [8, 128], strides = [1, 1]} : vector<8x256xf32> to vector<8x128xf32>
    %c22 = arith.constant 22 : index
    %c0_96 = arith.constant 0 : index
    %c0_97 = arith.constant 0 : index
    %151 = vector.load %arg4[%c22, %c0_96, %c0_97] : memref<27x3x8xf32, #tpu.memory_space<vmem>>, vector<1x3x8xf32>
    %152 = vector.shape_cast %151 : vector<1x3x8xf32> to vector<3x8xf32>
    %cst_98 = arith.constant dense<0.000000e+00> : vector<3x128xf32>
    %153 = tpu.matmul %152, %150, %cst_98 {dimension_numbers = #tpu.dot_dimension_numbers<[1], [0], [0], [1], [0, 0, 1, 1], [], []>} : vector<3x8xf32>, vector<8x128xf32>, vector<3x128xf32> -> vector<3x128xf32>
    %154 = arith.addf %149, %153 : vector<3x128xf32>
    %155 = vector.extract_strided_slice %38 {offsets = [0, 12], sizes = [8, 128], strides = [1, 1]} : vector<8x256xf32> to vector<8x128xf32>
    %c23 = arith.constant 23 : index
    %c0_99 = arith.constant 0 : index
    %c0_100 = arith.constant 0 : index
    %156 = vector.load %arg4[%c23, %c0_99, %c0_100] : memref<27x3x8xf32, #tpu.memory_space<vmem>>, vector<1x3x8xf32>
    %157 = vector.shape_cast %156 : vector<1x3x8xf32> to vector<3x8xf32>
    %cst_101 = arith.constant dense<0.000000e+00> : vector<3x128xf32>
    %158 = tpu.matmul %157, %155, %cst_101 {dimension_numbers = #tpu.dot_dimension_numbers<[1], [0], [0], [1], [0, 0, 1, 1], [], []>} : vector<3x8xf32>, vector<8x128xf32>, vector<3x128xf32> -> vector<3x128xf32>
    %159 = arith.addf %154, %158 : vector<3x128xf32>
    %160 = vector.extract_strided_slice %38 {offsets = [0, 20], sizes = [8, 128], strides = [1, 1]} : vector<8x256xf32> to vector<8x128xf32>
    %c24 = arith.constant 24 : index
    %c0_102 = arith.constant 0 : index
    %c0_103 = arith.constant 0 : index
    %161 = vector.load %arg4[%c24, %c0_102, %c0_103] : memref<27x3x8xf32, #tpu.memory_space<vmem>>, vector<1x3x8xf32>
    %162 = vector.shape_cast %161 : vector<1x3x8xf32> to vector<3x8xf32>
    %cst_104 = arith.constant dense<0.000000e+00> : vector<3x128xf32>
    %163 = tpu.matmul %162, %160, %cst_104 {dimension_numbers = #tpu.dot_dimension_numbers<[1], [0], [0], [1], [0, 0, 1, 1], [], []>} : vector<3x8xf32>, vector<8x128xf32>, vector<3x128xf32> -> vector<3x128xf32>
    %164 = arith.addf %159, %163 : vector<3x128xf32>
    %165 = vector.extract_strided_slice %38 {offsets = [0, 21], sizes = [8, 128], strides = [1, 1]} : vector<8x256xf32> to vector<8x128xf32>
    %c25 = arith.constant 25 : index
    %c0_105 = arith.constant 0 : index
    %c0_106 = arith.constant 0 : index
    %166 = vector.load %arg4[%c25, %c0_105, %c0_106] : memref<27x3x8xf32, #tpu.memory_space<vmem>>, vector<1x3x8xf32>
    %167 = vector.shape_cast %166 : vector<1x3x8xf32> to vector<3x8xf32>
    %cst_107 = arith.constant dense<0.000000e+00> : vector<3x128xf32>
    %168 = tpu.matmul %167, %165, %cst_107 {dimension_numbers = #tpu.dot_dimension_numbers<[1], [0], [0], [1], [0, 0, 1, 1], [], []>} : vector<3x8xf32>, vector<8x128xf32>, vector<3x128xf32> -> vector<3x128xf32>
    %169 = arith.addf %164, %168 : vector<3x128xf32>
    %170 = vector.extract_strided_slice %38 {offsets = [0, 22], sizes = [8, 128], strides = [1, 1]} : vector<8x256xf32> to vector<8x128xf32>
    %c26 = arith.constant 26 : index
    %c0_108 = arith.constant 0 : index
    %c0_109 = arith.constant 0 : index
    %171 = vector.load %arg4[%c26, %c0_108, %c0_109] : memref<27x3x8xf32, #tpu.memory_space<vmem>>, vector<1x3x8xf32>
    %172 = vector.shape_cast %171 : vector<1x3x8xf32> to vector<3x8xf32>
    %cst_110 = arith.constant dense<0.000000e+00> : vector<3x128xf32>
    %173 = tpu.matmul %172, %170, %cst_110 {dimension_numbers = #tpu.dot_dimension_numbers<[1], [0], [0], [1], [0, 0, 1, 1], [], []>} : vector<3x8xf32>, vector<8x128xf32>, vector<3x128xf32> -> vector<3x128xf32>
    %174 = arith.addf %169, %173 : vector<3x128xf32>
    %c0_111 = arith.constant 0 : index
    %c0_112 = arith.constant 0 : index
    %c0_113 = arith.constant 0 : index
    %c0_114 = arith.constant 0 : index
    %175 = vector.load %arg6[%c0_111, %c0_112, %c0_113, %c0_114] : memref<1x1x4x256xf32, #tpu.memory_space<vmem>>, vector<1x1x4x256xf32>
    %176 = vector.shape_cast %175 : vector<1x1x4x256xf32> to vector<4x256xf32>
    %177 = vector.extract_strided_slice %176 {offsets = [0, 11], sizes = [3, 128], strides = [1, 1]} : vector<4x256xf32> to vector<3x128xf32>
    %c0_115 = arith.constant 0 : index
    %c0_116 = arith.constant 0 : index
    %178 = vector.load %arg5[%c0_115, %c0_116] : memref<3x1xf32, #tpu.memory_space<vmem>>, vector<3x1xf32>
    %179 = vector.broadcast %178 : vector<3x1xf32> to vector<3x128xf32>
    %180 = arith.addf %174, %179 : vector<3x128xf32>
    %181 = arith.addf %180, %177 : vector<3x128xf32>
    %c0_117 = arith.constant 0 : index
    %c0_118 = arith.constant 0 : index
    %c0_119 = arith.constant 0 : index
    %c0_120 = arith.constant 0 : index
    %182 = vector.load %arg10[%c0_117, %c0_118, %c0_119, %c0_120] : memref<1x1x3x128xf32, #tpu.memory_space<vmem>>, vector<1x1x3x128xf32>
    %183 = vector.shape_cast %182 : vector<1x1x3x128xf32> to vector<3x128xf32>
    %184 = vector.shape_cast %181 : vector<3x128xf32> to vector<1x1x3x128xf32>
    tpu.vector_store %arg10[%c0_117, %c0_118, %c0_119, %c0_120], %184 {strides = array<i32>} : memref<1x1x3x128xf32, #tpu.memory_space<vmem>>, vector<1x1x3x128xf32>,
    return
  }
  func.func @transform_0(%arg0: i32, %arg1: i32) -> (i32, i32) {
    %c0_i32 = arith.constant 0 : i32
    %c0_i32_0 = arith.constant 0 : i32
    %c0_i32_1 = arith.constant 0 : i32
    return %c0_i32, %c0_i32_0 : i32, i32
  }
  func.func @transform_1(%arg0: i32, %arg1: i32) -> (i32, i32) {
    %c0_i32 = arith.constant 0 : i32
    %c0_i32_0 = arith.constant 0 : i32
    %c0_i32_1 = arith.constant 0 : i32
    return %c0_i32, %c0_i32_0 : i32, i32
  }
  func.func @transform_2(%arg0: i32, %arg1: i32) -> (i32, i32, i32) {
    %c0_i32 = arith.constant 0 : i32
    %c0_i32_0 = arith.constant 0 : i32
    %c0_i32_1 = arith.constant 0 : i32
    %c0_i32_2 = arith.constant 0 : i32
    return %c0_i32, %c0_i32_0, %c0_i32_1 : i32, i32, i32
  }
  func.func @transform_3(%arg0: i32, %arg1: i32) -> (i32, i32) {
    %c0_i32 = arith.constant 0 : i32
    %c0_i32_0 = arith.constant 0 : i32
    %c0_i32_1 = arith.constant 0 : i32
    return %c0_i32, %c0_i32_0 : i32, i32
  }
  func.func @transform_4(%arg0: i32, %arg1: i32) -> (i32, i32, i32, i32) {
    %c0_i32 = arith.constant 0 : i32
    %c0_i32_0 = arith.constant 0 : i32
    %c0_i32_1 = arith.constant 0 : i32
    return %arg0, %arg1, %c0_i32, %c0_i32_0 : i32, i32, i32, i32
  }
  func.func @transform_5(%arg0: i32, %arg1: i32) -> (i32, i32, i32, i32) {
    %c0_i32 = arith.constant 0 : i32
    %0 = arith.addi %arg1, %c0_i32 : i32
    %c1_i32 = arith.constant 1 : i32
    %1 = arith.subi %0, %c1_i32 : i32
    %c0_i32_0 = arith.constant 0 : i32
    %c3_i32 = arith.constant 3 : i32
    %2 = arith.maxsi %c0_i32_0, %1 : i32
    %3 = arith.minsi %c3_i32, %2 : i32
    %c0_i32_1 = arith.constant 0 : i32
    %c0_i32_2 = arith.constant 0 : i32
    %c0_i32_3 = arith.constant 0 : i32
    return %arg0, %3, %c0_i32_1, %c0_i32_2 : i32, i32, i32, i32
  }
  func.func @transform_6(%arg0: i32, %arg1: i32) -> (i32, i32, i32, i32) {
    %c1_i32 = arith.constant 1 : i32
    %0 = arith.addi %arg1, %c1_i32 : i32
    %c1_i32_0 = arith.constant 1 : i32
    %1 = arith.subi %0, %c1_i32_0 : i32
    %c0_i32 = arith.constant 0 : i32
    %c3_i32 = arith.constant 3 : i32
    %2 = arith.maxsi %c0_i32, %1 : i32
    %3 = arith.minsi %c3_i32, %2 : i32
    %c0_i32_1 = arith.constant 0 : i32
    %c0_i32_2 = arith.constant 0 : i32
    %c0_i32_3 = arith.constant 0 : i32
    return %arg0, %3, %c0_i32_1, %c0_i32_2 : i32, i32, i32, i32
  }
  func.func @transform_7(%arg0: i32, %arg1: i32) -> (i32, i32, i32, i32) {
    %c2_i32 = arith.constant 2 : i32
    %0 = arith.addi %arg1, %c2_i32 : i32
    %c1_i32 = arith.constant 1 : i32
    %1 = arith.subi %0, %c1_i32 : i32
    %c0_i32 = arith.constant 0 : i32
    %c3_i32 = arith.constant 3 : i32
    %2 = arith.maxsi %c0_i32, %1 : i32
    %3 = arith.minsi %c3_i32, %2 : i32
    %c0_i32_0 = arith.constant 0 : i32
    %c0_i32_1 = arith.constant 0 : i32
    %c0_i32_2 = arith.constant 0 : i32
    return %arg0, %3, %c0_i32_0, %c0_i32_1 : i32, i32, i32, i32
  }
  func.func @transform_8(%arg0: i32, %arg1: i32) -> (i32, i32, i32, i32) {
    %c0_i32 = arith.constant 0 : i32
    %c0_i32_0 = arith.constant 0 : i32
    %c0_i32_1 = arith.constant 0 : i32
    return %arg0, %arg1, %c0_i32, %c0_i32_0 : i32, i32, i32, i32
  }
}

</mosaic_0001>

<bundles_post_ra>
// kernel: refine_net_pallas.5
= control target key start
LH: loop header
LB: loop body
LE: loop exit
PB: predicated region body
PF: predicated region fallthrough
CT: control target
= control target key end

     0   :  { %s1988_s25 = smov 0   ;;  %s1990_s26 = smov 0   ;;  %s2312_s0 = inlined_call_operand.vmem [shape: f32[4,1], index: 0, kind: input, shape index: {}]   ;;  %s2313_s1 = inlined_call_operand.vmem [shape: f32[4,1], index: 1, kind: input, shape index: {}]   ;;  %s2314_s2 = inlined_call_operand.vmem [shape: f32[1,128], index: 2, kind: input, shape index: {}]   ;;  %s2315_s3 = inlined_call_operand.vmem [shape: f32[27,8,4], index: 3, kind: input, shape index: {}]   ;;  %s2316_s4 = inlined_call_operand.vmem [shape: f32[2,4,4,256], index: 4, kind: input, shape index: {}, may-alias: {4,5,6}]   ;;  %s2317_s5 = inlined_call_operand.vmem [shape: f32[2,4,4,256], index: 5, kind: input, shape index: {}, may-alias: {4,5,6}]   ;;  %s2318_s6 = inlined_call_operand.vmem [shape: f32[2,4,4,256], index: 6, kind: input, shape index: {}, may-alias: {4,5,6}]   ;;  %s2319_s7 = inlined_call_operand.vmem [shape: f32[2,4,8,128], index: 7, kind: output, shape index: {0}]   ;;  %s2320_s8 = inlined_call_operand.vmem [shape: f32[2,4,8,2], index: 8, kind: output, shape index: {1}]  }
   0x1   :  { %s1992_s27 = smov 0   ;;  %s1994_s28 = smov 0  }
   0x2   :  { %s1996_s29 = smov 0  }
   0x3 LB: > { %s28_s30 = sadd.s32 1, %s1925_s27  ;;  %s31_s9 = sadd.s32 1, %s1929_s28  ;;  %s1933_s29 = sphi %s1996_s29, %s19_s29   ;;  %s1929_s28 = sphi %s1994_s28, %s2324_s28   ;;  %s1925_s27 = sphi %s1992_s27, %s2323_s27   ;;  %s1921_s26 = sphi %s1990_s26, %s2322_s26   ;;  %s1917_s25 = sphi %s1988_s25, %s2321_s25  }
   0x4   : > { %p29_p0 = scmp.ge.s32.totalorder %s28_s30, 4  ;;  %p1717_p1 = scmp.ge.s32.totalorder %s1933_s29, 1 }
   0x5   : > { %p375_p2 = scmp.lt.s32.totalorder %s1933_s29, 9 }
   0x6   : > { %s2326_s30 = smov (%p29_p0, %s28_s30), 0  ;;  %s2328_s9 = smov (!%p29_p0, %s31_s9), %s1929_s28 }
   0x7   : > { %p376_p3 = pnand %p1717_p1, %p375_p2  ;;  %p33_p4 = scmp.ge.s32.totalorder %s2328_s9, 2 }
   0x8   : > { %s456_s10 = sadd.s32 (!%p376_p3), 4294967295, %s1917_s25  ;;  %p461_p5 = scmp.lt.s32.totalorder (!%p376_p3), %s1921_s26, 1 }
   0x9   : > { %s2330_s9 = smov (%p33_p4, %s2328_s9), 0  ;;  %379 = sbr.rel (%p376_p3) target bundleno = 595 (0x253), region = 48 }
   0xa   : > { %p457_p6 = scmp.gt.s32.totalorder (!%p376_p3), %s456_s10, 0  ;;  %p1718_p7 = scmp.lt.s32.totalorder (!%p376_p3), %s456_s10, 3 }
   0xb   : > { %s1935_s18 = smov (!%p376_p3), 127   ;;  %s1936_s19 = smov (!%p376_p3), 126  }
   0xc   : > { %s1937_s20 = smov (!%p376_p3), 118   ;;  %p475_p9 = scmp.gt.s32.totalorder (!%p376_p3), %s1917_s25, 0 }
   0xd   : > { %p1726_p10 = scmp.lt.s32.totalorder (!%p376_p3), %s1917_s25, 3  ;;  %s1938_s21 = smov (!%p376_p3), 117  }
   0xe   : > { %s2332_s10 = smov (!%p457_p6, %s456_s10), 0  ;;  %s2334_s26 = smov (!%p461_p5, %s1921_s26), 1  ;;  %vm547_vm0 = vcmask 1043456   ;;  %vm604_vm1 = vcmask 1031168   ;;  %vm541_vm2 = vcmask 1039360   ;;  %vm641_vm3 = vcmask 965632  }
   0xf   : > { %s2336_s10 = smov (!%p1718_p7, %s2332_s10), 3  ;;  %s2024_s11 = sshll.u32 %s2334_s26, 3  ;;  %vm678_vm4 = vcmask 957440   ;;  %v1746_v57 = vld [vmem:[%s2315_s3 + $0x8] sm:$0xff]  ;;  %vm543_vm5 = vcmask 31744   ;;  %v1751_v58 = vld [vmem:[%s2315_s3 + $0x10] sm:$0xff] }
  0x10   : > { %p463_p8 = scmp.lt.s32.totalorder %s2336_s10, 3  ;;  %s1939_s23 = smov 116   ;;  %v530_v59 = vld [vmem:[%s2315_s3] sm:$0xff]  ;;  %v1754_v61 = vld [vmem:[%s2315_s3 + $0x18] sm:$0xff]  ;;  %vm715_vm6 = vcmask 949248   ;;  %vm752_vm7 = vcmask 883712  }
  0x11   : > { %s476_s22 = scalar_select %p475_p9, %s1917_s25, 0  ;;  %vm789_vm8 = vcmask 875520   ;;  %vm826_vm9 = vcmask 867328   ;;  %vm1503_vm11 = vcmask 15360  }
  0x12   : > { %s2338_s10 = smov (!%p463_p8, %s2336_s10), 3  ;;  %s1940_s0 = smov 108  }
  0x13   : > { %s1723_s12 = sshll.u32 %s2338_s10, 1  ;;  %s2340_s22 = smov (!%p1726_p10, %s476_s22), 3 }
  0x14   : > { %s467_s13 = sadd.s32 %s2024_s11, %s1723_s12  ;;  %p481_p11 = scmp.lt.s32.totalorder %s2340_s22, 3 }
  0x15   : > { %s1725_s14 = sshll.u32 %s467_s13, 2  ;;  %s1941_s12 = smov 107  }
  0x16   : > { %s469_s17 = scalar_lea.vmem %s2316_s4, %s1725_s14  ;;  %s2342_s22 = smov (!%p481_p11, %s2340_s22), 3 }
  0x17   : > { %v2030_v0 = vld [vmem:[%s469_s17] sm:$0xff]  ;;  %s1731_s24 = sshll.u32 %s2342_s22, 1  ;;  %s1942_s16 = smov 106  }
  0x18   : > { %534 = vst [vmem:[#allocation1] ss:$2 sm:$0xff] %v2030_v0  ;;  %s485_s1 = sadd.s32 %s1731_s24, %s2024_s11  ;;  %s492_s17 = sadd.s32 1, %s1917_s25  ;;  %1749 = vmatpush.msk.msra.mxu1 %vm547_vm0, %v2030_v0 }
  0x19   : > { %s1733_s10 = sshll.u32 %s485_s1, 2  ;;  %p493_p12 = scmp.gt.s32.totalorder %s492_s17, 0  ;;  %1750 = vmatmul.msk.f32.vlgmr.msra.gmra.mxu1 %vm543_vm5, %v530_v59 }
  0x1a   : > { %s487_s15 = scalar_lea.vmem %s2317_s5, %s1733_s10  ;;  %p1734_p13 = scmp.lt.s32.totalorder %s492_s17, 3 }
  0x1b   : > { %v2063_v15 = vld [vmem:[%s487_s15] sm:$0xff]  ;;  %s2344_s17 = smov (!%p493_p12, %s492_s17), 0  ;;  %s2350_s25 = smov (!%p1726_p10, %s1917_s25), 3 }
  0x1c   : > { %s2346_s17 = smov (!%p1734_p13, %s2344_s17), 3 }
  0x1d   : > { %p499_p0 = scmp.lt.s32.totalorder %s2346_s17, 3 }
  0x1f   : > { %v535_v1 = vld.sshfl [vmem:[#allocation1] sm:$0xff pattern:$0x75316420]  ;;  %v536_v2 = vld.sshfl [vmem:[#allocation1 + $0x8] sm:$0xff pattern:$0x75316420] }
  0x20   : > { %597 = vst [vmem:[#allocation1] ss:$2 sm:$0xff] %v2030_v0  ;;  %537 = vrot.lane.b32.xlu1 %v535_v1, %s1935_s18  ;;  %s2348_s17 = smov (!%p499_p0, %s2346_s17), 3 }
  0x21   : > { %s1739_s22 = sshll.u32 %s2348_s17, 1 }
  0x22   : > { %s503_s24 = sadd.s32 %s1739_s22, %s2024_s11 }
  0x23   : > { %s1741_s1 = sshll.u32 %s503_s24, 2 }
  0x24   : > { %s505_s14 = scalar_lea.vmem %s2318_s6, %s1741_s1 }
  0x25   : > { %v2094_v32 = vld [vmem:[%s505_s14] sm:$0xff] }
  0x27   : > { %v598_v3 = vld.sshfl [vmem:[#allocation1] sm:$0xff pattern:$0x75316420]  ;;  %v599_v4 = vld.sshfl [vmem:[#allocation1 + $0x8] sm:$0xff pattern:$0x75316420] }
  0x28   : > { %600 = vrot.lane.b32.xlu0 %v598_v3, %s1936_s19  ;;  %634 = vst [vmem:[#allocation1] ss:$2 sm:$0xff] %v2030_v0  ;;  %539 = vrot.lane.b32.xlu1 %v536_v2, %s1935_s18 }
  0x2f   : > { %v635_v5 = vld.sshfl [vmem:[#allocation1] sm:$0xff pattern:$0x75316420]  ;;  %v636_v6 = vld.sshfl [vmem:[#allocation1 + $0x8] sm:$0xff pattern:$0x75316420] }
  0x30   : > { %602 = vrot.lane.b32.xlu0 %v599_v4, %s1936_s19  ;;  %671 = vst [vmem:[#allocation1] ss:$2 sm:$0xff] %v2030_v0  ;;  %637 = vrot.lane.b32.xlu2 %v635_v5, %s1937_s20  ;;  %v1757_v4 = vld [vmem:[%s2315_s3 + $0x20] sm:$0xff]  ;;  %v1760_v5 = vld [vmem:[%s2315_s3 + $0x28] sm:$0xff] }
  0x37   : > { %v673_v7 = vld.sshfl [vmem:[#allocation1 + $0x8] sm:$0xff pattern:$0x75316420]  ;;  %v672_v8 = vld.sshfl [vmem:[#allocation1] sm:$0xff pattern:$0x75316420] }
  0x38   : > { %676 = vrot.lane.b32.xlu0 %v673_v7, %s1938_s21  ;;  %708 = vst [vmem:[#allocation1] ss:$2 sm:$0xff] %v2030_v0  ;;  %639 = vrot.lane.b32.xlu2 %v636_v6, %s1937_s20 }
  0x3f   : > { %v710_v9 = vld.sshfl [vmem:[#allocation1 + $0x8] sm:$0xff pattern:$0x75316420]  ;;  %v709_v10 = vld.sshfl [vmem:[#allocation1] sm:$0xff pattern:$0x75316420] }
  0x40   : > { %713 = vrot.lane.b32.xlu1 %v710_v9, %s1939_s23  ;;  %711 = vrot.lane.b32.xlu0 %v709_v10, %s1939_s23  ;;  %745 = vst [vmem:[#allocation1] ss:$2 sm:$0xff] %v2030_v0 }
  0x41   : > { %674 = vrot.lane.b32.xlu2 %v672_v8, %s1938_s21 }
  0x47   : > { %v747_v11 = vld.sshfl [vmem:[#allocation1 + $0x8] sm:$0xff pattern:$0x75316420]  ;;  %v746_v12 = vld.sshfl [vmem:[#allocation1] sm:$0xff pattern:$0x75316420] }
  0x48   : > { %750 = vrot.lane.b32.xlu1 %v747_v11, %s1940_s0  ;;  %748 = vrot.lane.b32.xlu0 %v746_v12, %s1940_s0  ;;  %782 = vst [vmem:[#allocation1] ss:$2 sm:$0xff] %v2030_v0 }
  0x4f   : > { %v783_v13 = vld.sshfl [vmem:[#allocation1] sm:$0xff pattern:$0x75316420]  ;;  %v784_v14 = vld.sshfl [vmem:[#allocation1 + $0x8] sm:$0xff pattern:$0x75316420] }
  0x50   : > { %785 = vrot.lane.b32.xlu1 %v783_v13, %s1941_s12  ;;  %819 = vst [vmem:[#allocation1] ss:$2 sm:$0xff] %v2030_v0  ;;  %787 = vrot.lane.b32.xlu2 %v784_v14, %s1941_s12 }
  0x57   : > { %v820_v16 = vld.sshfl [vmem:[#allocation1] sm:$0xff pattern:$0x75316420]  ;;  %v821_v17 = vld.sshfl [vmem:[#allocation1 + $0x8] sm:$0xff pattern:$0x75316420] }
  0x58   : > { %822 = vrot.lane.b32.xlu1 %v820_v16, %s1942_s16  ;;  %885 = vst [vmem:[#allocation1] ss:$2 sm:$0xff] %v2063_v15  ;;  %824 = vrot.lane.b32.xlu2 %v821_v17, %s1942_s16 }
  0x5f   : > { %v887_v18 = vld.sshfl [vmem:[#allocation1 + $0x8] sm:$0xff pattern:$0x75316420]  ;;  %v886_v19 = vld.sshfl [vmem:[#allocation1] sm:$0xff pattern:$0x75316420] }
  0x60   : > { %890 = vrot.lane.b32.xlu0 %v887_v18, %s1935_s18  ;;  %921 = vst [vmem:[#allocation1] ss:$2 sm:$0xff] %v2063_v15  ;;  %888 = vrot.lane.b32.xlu2 %v886_v19, %s1935_s18 }
  0x67   : > { %v923_v20 = vld.sshfl [vmem:[#allocation1 + $0x8] sm:$0xff pattern:$0x75316420]  ;;  %v922_v21 = vld.sshfl [vmem:[#allocation1] sm:$0xff pattern:$0x75316420] }
  0x68   : > { %926 = vrot.lane.b32.xlu1 %v923_v20, %s1936_s19  ;;  %924 = vrot.lane.b32.xlu0 %v922_v21, %s1936_s19  ;;  %957 = vst [vmem:[#allocation1] ss:$2 sm:$0xff] %v2063_v15  ;;  %v1763_v20 = vld [vmem:[%s2315_s3 + $0x30] sm:$0xff] }
  0x6f   : > { %v958_v22 = vld.sshfl [vmem:[#allocation1] sm:$0xff pattern:$0x75316420]  ;;  %v959_v23 = vld.sshfl [vmem:[#allocation1 + $0x8] sm:$0xff pattern:$0x75316420] }
  0x70   : > { %960 = vrot.lane.b32.xlu1 %v958_v22, %s1937_s20  ;;  %993 = vst [vmem:[#allocation1] ss:$2 sm:$0xff] %v2063_v15  ;;  %962 = vrot.lane.b32.xlu2 %v959_v23, %s1937_s20 }
  0x77   : > { %v995_v24 = vld.sshfl [vmem:[#allocation1 + $0x8] sm:$0xff pattern:$0x75316420]  ;;  %v994_v25 = vld.sshfl [vmem:[#allocation1] sm:$0xff pattern:$0x75316420] }
  0x78   : > { %998 = vrot.lane.b32.xlu0 %v995_v24, %s1938_s21  ;;  %1029 = vst [vmem:[#allocation1] ss:$2 sm:$0xff] %v2063_v15  ;;  %996 = vrot.lane.b32.xlu2 %v994_v25, %s1938_s21  ;;  %v1766_v25 = vld [vmem:[%s2315_s3 + $0x38] sm:$0xff] }
  0x7f   : > { %v1031_v26 = vld.sshfl [vmem:[#allocation1 + $0x8] sm:$0xff pattern:$0x75316420]  ;;  %v1030_v27 = vld.sshfl [vmem:[#allocation1] sm:$0xff pattern:$0x75316420] }
  0x80   : > { %1034 = vrot.lane.b32.xlu0 %v1031_v26, %s1939_s23  ;;  %1065 = vst [vmem:[#allocation1] ss:$2 sm:$0xff] %v2063_v15  ;;  %1032 = vrot.lane.b32.xlu2 %v1030_v27, %s1939_s23 }
  0x87   : > { %v1067_v28 = vld.sshfl [vmem:[#allocation1 + $0x8] sm:$0xff pattern:$0x75316420]  ;;  %v1066_v29 = vld.sshfl [vmem:[#allocation1] sm:$0xff pattern:$0x75316420] }
  0x88   : > { %1070 = vrot.lane.b32.xlu1 %v1067_v28, %s1940_s0  ;;  %1068 = vrot.lane.b32.xlu0 %v1066_v29, %s1940_s0  ;;  %1101 = vst [vmem:[#allocation1] ss:$2 sm:$0xff] %v2063_v15 }
  0x8a   : > { %v638_v43 = vpop.permute.xlu2 %637 }
  0x8f   : > { %v1102_v30 = vld.sshfl [vmem:[#allocation1] sm:$0xff pattern:$0x75316420]  ;;  %v1103_v31 = vld.sshfl [vmem:[#allocation1 + $0x8] sm:$0xff pattern:$0x75316420] }
  0x90   : > { %1104 = vrot.lane.b32.xlu1 %v1102_v30, %s1941_s12  ;;  %1137 = vst [vmem:[#allocation1] ss:$2 sm:$0xff] %v2063_v15  ;;  %1106 = vrot.lane.b32.xlu2 %v1103_v31, %s1941_s12 }
  0x92   : > { %v538_v42 = vpop.permute.xlu1 %537  ;;  %v640_v49 = vpop.permute.xlu2 %639 }
  0x93   : > { %v642_v51 = vsel %vm641_vm3, %v638_v43, %v640_v49 }
  0x94   : > { %1755 = vmatpush.msk.msra.mxu3 %vm547_vm0, %v642_v51  ;;  %v1790_v51 = vld [vmem:[%s2315_s3 + $0x78] sm:$0xff] }
  0x95   : > { %1756 = vmatmul.msk.f32.vlgmr.msra.gmra.mxu3 %vm543_vm5, %v1754_v61 }
  0x97   : > { %v1139_v33 = vld.sshfl [vmem:[#allocation1 + $0x8] sm:$0xff pattern:$0x75316420]  ;;  %v1138_v34 = vld.sshfl [vmem:[#allocation1] sm:$0xff pattern:$0x75316420] }
  0x98   : > { %1142 = vrot.lane.b32.xlu0 %v1139_v33, %s1942_s16  ;;  %1202 = vst [vmem:[#allocation1] ss:$2 sm:$0xff] %v2094_v32  ;;  %1140 = vrot.lane.b32.xlu2 %v1138_v34, %s1942_s16  ;;  %v1769_v34 = vld [vmem:[%s2315_s3 + $0x40] sm:$0xff] }
  0x9a   : > { %v601_v41 = vpop.permute.xlu0 %600  ;;  %v540_v47 = vpop.permute.xlu1 %539 }
  0x9b   : > { %v542_v50 = vsel %vm541_vm2, %v538_v42, %v540_v47  ;;  %v675_v56 = vpop.permute.xlu2 %674 }
  0x9c   : > { %1747 = vmatpush.msk.msra.mxu0 %vm547_vm0, %v542_v50  ;;  %v1787_v50 = vld [vmem:[%s2315_s3 + $0x70] sm:$0xff] }
  0x9d   : > { %1748 = vmatmul.msk.f32.vlgmr.msra.gmra.mxu0 %vm543_vm5, %v1746_v57  ;;  %v1796_v57 = vld [vmem:[%s2315_s3 + $0x88] sm:$0xff] }
  0x9f   : > { %v1204_v35 = vld.sshfl [vmem:[#allocation1 + $0x8] sm:$0xff pattern:$0x75316420]  ;;  %v1203_v36 = vld.sshfl [vmem:[#allocation1] sm:$0xff pattern:$0x75316420] }
  0xa0   : > { %1207 = vrot.lane.b32.xlu1 %v1204_v35, %s1935_s18  ;;  %1205 = vrot.lane.b32.xlu0 %v1203_v36, %s1935_s18  ;;  %1238 = vst [vmem:[#allocation1] ss:$2 sm:$0xff] %v2094_v32  ;;  %v1772_v35 = vld [vmem:[%s2315_s3 + $0x48] sm:$0xff] }
  0xa2   : > { %v603_v46 = vpop.permute.xlu0 %602 }
  0xa3   : > { %v605_v48 = vsel %vm604_vm1, %v601_v41, %v603_v46  ;;  %v1784_v46 = vld [vmem:[%s2315_s3 + $0x68] sm:$0xff] }
  0xa4   : > { %1752 = vmatpush.msk.msra.mxu2 %vm547_vm0, %v605_v48 }
  0xa5   : > { %1753 = vmatmul.msk.f32.vlgmr.msra.gmra.mxu2 %vm543_vm5, %v1751_v58 }
  0xa7   : > { %v1240_v37 = vld.sshfl [vmem:[#allocation1 + $0x8] sm:$0xff pattern:$0x75316420]  ;;  %v1239_v38 = vld.sshfl [vmem:[#allocation1] sm:$0xff pattern:$0x75316420] }
  0xa8   : > { %1243 = vrot.lane.b32.xlu1 %v1240_v37, %s1936_s19  ;;  %1241 = vrot.lane.b32.xlu0 %v1239_v38, %s1936_s19  ;;  %1274 = vst [vmem:[#allocation1] ss:$2 sm:$0xff] %v2094_v32 }
  0xaa   : > { %v677_v54 = vpop.permute.xlu0 %676  ;;  %v788_v3 = vpop.permute.xlu2 %787 }
  0xab   : > { %v679_v60 = vsel %vm678_vm4, %v675_v56, %v677_v54  ;;  %v1799_v54 = vld [vmem:[%s2315_s3 + $0x90] sm:$0xff]  ;;  %v1802_v56 = vld [vmem:[%s2315_s3 + $0x98] sm:$0xff] }
  0xac   : > { %1758 = vmatpush.msk.msrb.mxu0 %vm547_vm0, %v679_v60 }
  0xad   : > { %1759 = vmatmul.msk.f32.vlgmr.msrb.gmra.mxu0 %vm543_vm5, %v1757_v4 }
  0xaf   : > { %v1275_v39 = vld.sshfl [vmem:[#allocation1] sm:$0xff pattern:$0x75316420]  ;;  %v1276_v40 = vld.sshfl [vmem:[#allocation1 + $0x8] sm:$0xff pattern:$0x75316420] }
  0xb0   : > { %1277 = vrot.lane.b32.xlu1 %v1275_v39, %s1937_s20  ;;  %1310 = vst [vmem:[#allocation1] ss:$2 sm:$0xff] %v2094_v32  ;;  %1279 = vrot.lane.b32.xlu2 %v1276_v40, %s1937_s20  ;;  %v1778_v39 = vld [vmem:[%s2315_s3 + $0x58] sm:$0xff]  ;;  %s1742_s20 = sshll.u32 %s2334_s26, 2 }
  0xb2   : > { %v714_v55 = vpop.permute.xlu1 %713  ;;  %v712_v0 = vpop.permute.xlu0 %711 }
  0xb3   : > { %v716_v2 = vsel %vm715_vm6, %v712_v0, %v714_v55  ;;  %v825_v12 = vpop.permute.xlu2 %824  ;;  %v1793_v55 = vld [vmem:[%s2315_s3 + $0x80] sm:$0xff] }
  0xb4   : > { %1761 = vmatpush.msk.msrb.mxu1 %vm547_vm0, %v716_v2  ;;  %v1811_v2 = vld [vmem:[%s2315_s3 + $0xb0] sm:$0xff] }
  0xb5   : > { %1762 = vmatmul.msk.f32.vlgmr.msrb.gmra.mxu1 %vm543_vm5, %v1760_v5  ;;  %v1808_v5 = vld [vmem:[%s2315_s3 + $0xa8] sm:$0xff] }
  0xb6   : > { %1773 = vmatpush.msk.msra.mxu1 %vm547_vm0, %v2063_v15 }
  0xb7   : > { %v1311_v44 = vld.sshfl [vmem:[#allocation1] sm:$0xff pattern:$0x75316420]  ;;  %v1312_v45 = vld.sshfl [vmem:[#allocation1 + $0x8] sm:$0xff pattern:$0x75316420] }
  0xb8   : > { %1313 = vrot.lane.b32.xlu1 %v1311_v44, %s1938_s21  ;;  %1346 = vst [vmem:[#allocation1] ss:$2 sm:$0xff] %v2094_v32  ;;  %1315 = vrot.lane.b32.xlu2 %v1312_v45, %s1938_s21  ;;  %v1775_v44 = vld [vmem:[%s2315_s3 + $0x50] sm:$0xff]  ;;  %v1781_v45 = vld [vmem:[%s2315_s3 + $0x60] sm:$0xff]  ;;  %s516_s21 = sadd.s32 %s1742_s20, %s2350_s25 }
  0xb9   : > { %s1743_s15 = sshll.u32 %s516_s21, 3 }
  0xba   : > { %v751_v1 = vpop.permute.xlu1 %750  ;;  %v749_v8 = vpop.permute.xlu0 %748  ;;  %s518_s1 = scalar_lea.vmem %s2319_s7, %s1743_s15  ;;  %s526_s10 = scalar_lea.vmem %s2320_s8, %s1743_s15 }
  0xbb   : > { %v753_v10 = vsel %vm752_vm7, %v749_v8, %v751_v1  ;;  %v889_v18 = vpop.permute.xlu2 %888  ;;  %v1814_v8 = vld [vmem:[%s2315_s3 + $0xb8] sm:$0xff] }
  0xbc   : > { %1764 = vmatpush.msk.msrb.mxu2 %vm547_vm0, %v753_v10 }
  0xbd   : > { %1765 = vmatmul.msk.f32.vlgmr.msrb.gmra.mxu2 %vm543_vm5, %v1763_v20  ;;  %1774 = vmatmul.msk.f32.vlgmr.msra.gmra.mxu1 %vm543_vm5, %v1772_v35 }
  0xbf   : > { %v1348_v52 = vld.sshfl [vmem:[#allocation1 + $0x8] sm:$0xff pattern:$0x75316420]  ;;  %v1347_v53 = vld.sshfl [vmem:[#allocation1] sm:$0xff pattern:$0x75316420] }
  0xc0   : > { %1351 = vrot.lane.b32.xlu0 %v1348_v52, %s1939_s23  ;;  %1382 = vst [vmem:[#allocation1] ss:$2 sm:$0xff] %v2094_v32  ;;  %1349 = vrot.lane.b32.xlu2 %v1347_v53, %s1939_s23 }
  0xc2   : > { %v786_v9 = vpop.permute.xlu1 %785 }
  0xc3   : > { %v790_v11 = vsel %vm789_vm8, %v786_v9, %v788_v3  ;;  %v1805_v3 = vld [vmem:[%s2315_s3 + $0xa0] sm:$0xff] }
  0xc4   : > { %1767 = vmatpush.msk.msrb.mxu3 %vm547_vm0, %v790_v11 }
  0xc5   : > { %1768 = vmatmul.msk.f32.vlgmr.msrb.gmra.mxu3 %vm543_vm5, %v1766_v25 }
  0xc7   : > { %v1383_v62 = vld.sshfl [vmem:[#allocation1] sm:$0xff pattern:$0x75316420]  ;;  %v1384_v63 = vld.sshfl [vmem:[#allocation1 + $0x8] sm:$0xff pattern:$0x75316420] }
  0xc8   : > { %1418 = vst [vmem:[#allocation1] ss:$2 sm:$0xff] %v2094_v32  ;;  %1385 = vrot.lane.b32.xlu2 %v1383_v62, %s1940_s0 }
  0xca   : > { %v823_v15 = vpop.permute.xlu1 %822  ;;  %v963_v24 = vpop.permute.xlu2 %962 }
  0xcb   : > { %v827_v17 = vsel %vm826_vm9, %v823_v15, %v825_v12 }
  0xcc   : > { %1770 = vmatpush.msk.msra.mxu0 %vm547_vm0, %v827_v17 }
  0xcd   : > { %1771 = vmatmul.msk.f32.vlgmr.msra.gmra.mxu0 %vm543_vm5, %v1769_v34 }
  0xcf   : > { %v1419_v6 = vld.sshfl [vmem:[#allocation1] sm:$0xff pattern:$0x75316420]  ;;  %v1420_v7 = vld.sshfl [vmem:[#allocation1 + $0x8] sm:$0xff pattern:$0x75316420] }
  0xd0   : > { %1454 = vst [vmem:[#allocation1] ss:$2 sm:$0xff] %v2094_v32  ;;  %1423 = vrot.lane.b32.xlu2 %v1420_v7, %s1941_s12 }
  0xd2   : > { %v891_v16 = vpop.permute.xlu0 %890  ;;  %v997_v28 = vpop.permute.xlu2 %996 }
  0xd3   : > { %v892_v19 = vsel %vm541_vm2, %v889_v18, %v891_v16  ;;  %v1817_v18 = vld [vmem:[%s2315_s3 + $0xc0] sm:$0xff] }
  0xd4   : > { %1776 = vmatpush.msk.msra.mxu2 %vm547_vm0, %v892_v19  ;;  %v1820_v19 = vld [vmem:[%s2315_s3 + $0xc8] sm:$0xff] }
  0xd5   : > { %1777 = vmatmul.msk.f32.vlgmr.msra.gmra.mxu2 %vm543_vm5, %v1775_v44 }
  0xd7   : > { %v1456_v13 = vld.sshfl [vmem:[#allocation1 + $0x8] sm:$0xff pattern:$0x75316420]  ;;  %v1455_v14 = vld.sshfl [vmem:[#allocation1] sm:$0xff pattern:$0x75316420] }
  0xd8   : > { %1459 = vrot.lane.b32.xlu1 %v1456_v13, %s1942_s16  ;;  %1457 = vrot.lane.b32.xlu0 %v1455_v14, %s1942_s16  ;;  %v1823_v13 = vld [vmem:[%s2315_s3 + $0xd0] sm:$0xff] }
  0xda   : > { %v927_v21 = vpop.permute.xlu1 %926  ;;  %v925_v22 = vpop.permute.xlu0 %924 }
  0xdb   : > { %v928_v23 = vsel %vm604_vm1, %v925_v22, %v927_v21  ;;  %v1033_v31 = vpop.permute.xlu2 %1032  ;;  %v592_v22 = vpop.f32.mrf.mxu1 }
  0xdc   : > { %1779 = vmatpush.msk.msra.mxu3 %vm547_vm0, %v928_v23 }
  0xdd   : > { %1780 = vmatmul.msk.f32.vlgmr.msra.gmra.mxu3 %vm543_vm5, %v1778_v39 }
  0xe0   : > { %1387 = vrot.lane.b32.xlu0 %v1384_v63, %s1940_s0  ;;  %1421 = vrot.lane.b32.xlu1 %v1419_v6, %s1941_s12 }
  0xe2   : > { %v961_v26 = vpop.permute.xlu1 %960 }
  0xe3   : > { %v964_v27 = vsel %vm641_vm3, %v961_v26, %v963_v24 }
  0xe4   : > { %1782 = vmatpush.msk.msrb.mxu0 %vm547_vm0, %v964_v27 }
  0xe5   : > { %1783 = vmatmul.msk.f32.vlgmr.msrb.gmra.mxu0 %vm543_vm5, %v1781_v45 }
  0xea   : > { %v999_v29 = vpop.permute.xlu0 %998  ;;  %v1107_v41 = vpop.permute.xlu2 %1106 }
  0xeb   : > { %v1000_v30 = vsel %vm678_vm4, %v997_v28, %v999_v29 }
  0xec   : > { %1785 = vmatpush.msk.msrb.mxu1 %vm547_vm0, %v1000_v30 }
  0xed   : > { %1786 = vmatmul.msk.f32.vlgmr.msrb.gmra.mxu1 %vm543_vm5, %v1784_v46 }
  0xf2   : > { %v1035_v33 = vpop.permute.xlu0 %1034  ;;  %v1141_v47 = vpop.permute.xlu2 %1140 }
  0xf3   : > { %v1036_v36 = vsel %vm715_vm6, %v1033_v31, %v1035_v33 }
  0xf4   : > { %1788 = vmatpush.msk.msrb.mxu2 %vm547_vm0, %v1036_v36 }
  0xf5   : > { %1789 = vmatmul.msk.f32.vlgmr.msrb.gmra.mxu2 %vm543_vm5, %v1787_v50 }
  0xf6   : > { %1800 = vmatpush.msk.msra.mxu2 %vm547_vm0, %v2094_v32 }
  0xfa   : > { %v1071_v37 = vpop.permute.xlu1 %1070  ;;  %v1069_v38 = vpop.permute.xlu0 %1068 }
  0xfb   : > { %v1072_v40 = vsel %vm752_vm7, %v1069_v38, %v1071_v37 }
  0xfc   : > { %1791 = vmatpush.msk.msrb.mxu3 %vm547_vm0, %v1072_v40 }
  0xfd   : > { %1792 = vmatmul.msk.f32.vlgmr.msrb.gmra.mxu3 %vm543_vm5, %v1790_v51  ;;  %1801 = vmatmul.msk.f32.vlgmr.msra.gmra.mxu2 %vm543_vm5, %v1799_v54 }
 0x102   : > { %v1105_v42 = vpop.permute.xlu1 %1104 }
 0x103   : > { %v1108_v43 = vsel %vm789_vm8, %v1105_v42, %v1107_v41 }
 0x104   : > { %1794 = vmatpush.msk.msra.mxu0 %vm547_vm0, %v1108_v43 }
 0x105   : > { %1795 = vmatmul.msk.f32.vlgmr.msra.gmra.mxu0 %vm543_vm5, %v1793_v55 }
 0x10a   : > { %v1143_v48 = vpop.permute.xlu0 %1142  ;;  %v1280_v61 = vpop.permute.xlu2 %1279 }
 0x10b   : > { %v1144_v49 = vsel %vm826_vm9, %v1141_v47, %v1143_v48 }
 0x10c   : > { %1797 = vmatpush.msk.msra.mxu1 %vm547_vm0, %v1144_v49 }
 0x10d   : > { %1798 = vmatmul.msk.f32.vlgmr.msra.gmra.mxu1 %vm543_vm5, %v1796_v57 }
 0x112   : > { %v1208_v52 = vpop.permute.xlu1 %1207  ;;  %v1206_v32 = vpop.permute.xlu0 %1205 }
 0x113   : > { %v1209_v53 = vsel %vm541_vm2, %v1206_v32, %v1208_v52  ;;  %v1316_v0 = vpop.permute.xlu2 %1315 }
 0x114   : > { %1803 = vmatpush.msk.msra.mxu3 %vm547_vm0, %v1209_v53 }
 0x115   : > { %1804 = vmatmul.msk.f32.vlgmr.msra.gmra.mxu3 %vm543_vm5, %v1802_v56 }
 0x118   : > { %v665_v27 = vpop.f32.mrf.mxu3 }
 0x11a   : > { %v1244_v58 = vpop.permute.xlu1 %1243  ;;  %v1242_v59 = vpop.permute.xlu0 %1241 }
 0x11b   : > { %v1245_v60 = vsel %vm604_vm1, %v1242_v59, %v1244_v58  ;;  %v1350_v6 = vpop.permute.xlu2 %1349  ;;  %v567_v23 = vpop.f32.mrf.mxu0 }
 0x11c   : > { %1806 = vmatpush.msk.msrb.mxu0 %vm547_vm0, %v1245_v60  ;;  %v593_v24 = vadd.f32 %v592_v22, %v567_v23 }
 0x11d   : > { %1807 = vmatmul.msk.f32.vlgmr.msrb.gmra.mxu0 %vm543_vm5, %v1805_v3 }
 0x122   : > { %v1278_v62 = vpop.permute.xlu1 %1277 }
 0x123   : > { %v1281_v63 = vsel %vm641_vm3, %v1278_v62, %v1280_v61  ;;  %v1386_v10 = vpop.permute.xlu2 %1385 }
 0x124   : > { %1809 = vmatpush.msk.msrb.mxu1 %vm547_vm0, %v1281_v63 }
 0x125   : > { %1810 = vmatmul.msk.f32.vlgmr.msrb.gmra.mxu1 %vm543_vm5, %v1808_v5 }
 0x128   : > { %v628_v25 = vpop.f32.mrf.mxu2 }
 0x129   : > { %v631_v26 = vadd.f32 %v628_v25, %v593_v24 }
 0x12a   : > { %v1314_v1 = vpop.permute.xlu1 %1313  ;;  %v702_v29 = vpop.f32.mrf.mxu0 }
 0x12b   : > { %v1317_v4 = vsel %vm678_vm4, %v1314_v1, %v1316_v0  ;;  %v1424_v15 = vpop.permute.xlu2 %1423  ;;  %v668_v28 = vadd.f32 %v665_v27, %v631_v26 }
 0x12c   : > { %1812 = vmatpush.msk.msrb.mxu2 %vm547_vm0, %v1317_v4 }
 0x12d   : > { %1813 = vmatmul.msk.f32.vlgmr.msrb.gmra.mxu2 %vm543_vm5, %v1811_v2  ;;  %v705_v30 = vadd.f32 %v702_v29, %v668_v28 }
 0x132   : > { %v1352_v7 = vpop.permute.xlu0 %1351  ;;  %v739_v31 = vpop.f32.mrf.mxu1 }
 0x133   : > { %v1353_v9 = vsel %vm715_vm6, %v1350_v6, %v1352_v7  ;;  %v742_v33 = vadd.f32 %v739_v31, %v705_v30 }
 0x134   : > { %1815 = vmatpush.msk.msrb.mxu3 %vm547_vm0, %v1353_v9 }
 0x135   : > { %1816 = vmatmul.msk.f32.vlgmr.msrb.gmra.mxu3 %vm543_vm5, %v1814_v8 }
 0x13a   : > { %v879_v40 = vpop.f32.mrf.mxu1 }
 0x140   : > { %v776_v34 = vpop.f32.mrf.mxu2 }
 0x141   : > { %v779_v35 = vadd.f32 %v776_v34, %v742_v33 }
 0x148   : > { %v813_v36 = vpop.f32.mrf.mxu3 }
 0x149   : > { %v816_v37 = vadd.f32 %v813_v36, %v779_v35 }
 0x14a   : > { %v1460_v11 = vpop.permute.xlu1 %1459  ;;  %v1458_v12 = vpop.permute.xlu0 %1457 }
 0x14b   : > { %v1461_v14 = vsel %vm826_vm9, %v1458_v12, %v1460_v11  ;;  %v850_v38 = vpop.f32.mrf.mxu0 }
 0x14c   : > { %1824 = vmatpush.msk.msra.mxu2 %vm547_vm0, %v1461_v14  ;;  %v853_v39 = vadd.f32 %v850_v38, %v816_v37  ;;  %v1499_v14 = vlaneseq }
 0x14d   : > { %1825 = vmatmul.msk.f32.vlgmr.msra.gmra.mxu2 %vm543_vm5, %v1823_v13 }
 0x14e   : > { %v882_v41 = vadd.f32 %v879_v40, %v853_v39 }
 0x152   : > { %v1388_v16 = vpop.permute.xlu0 %1387  ;;  %v1422_v17 = vpop.permute.xlu1 %1421 }
 0x153   : > { %v1389_v20 = vsel %vm752_vm7, %v1386_v10, %v1388_v16  ;;  %v1425_v21 = vsel %vm789_vm8, %v1422_v17, %v1424_v15  ;;  %v1894_v10 = vld [vmem:[%s2314_s2] ss:$0 sm:$0xff]  ;;  %v1500_v15 = vand.u32 127, %v1499_v14 }
 0x154   : > { %1818 = vmatpush.msk.msra.mxu0 %vm547_vm0, %v1389_v20  ;;  %1821 = vmatpush.msk.msra.mxu1 %vm547_vm0, %v1425_v21 }
 0x155   : > { %1819 = vmatmul.msk.f32.vlgmr.msra.gmra.mxu0 %vm543_vm5, %v1817_v18  ;;  %1822 = vmatmul.msk.f32.vlgmr.msra.gmra.mxu1 %vm543_vm5, %v1820_v19  ;;  %vm1501_vm10 = vcmp.eq.s32.totalorder %v1500_v15, 0 }
 0x158   : > { %v915_v42 = vpop.f32.mrf.mxu2 }
 0x159   : > { %v918_v43 = vadd.f32 %v915_v42, %v882_v41 }
 0x160   : > { %v951_v44 = vpop.f32.mrf.mxu3 }
 0x161   : > { %v954_v45 = vadd.f32 %v951_v44, %v918_v43 }
 0x162   : > { %v987_v46 = vpop.f32.mrf.mxu0 }
 0x163   : > { %v990_v47 = vadd.f32 %v987_v46, %v954_v45 }
 0x16a   : > { %v1023_v48 = vpop.f32.mrf.mxu1 }
 0x16b   : > { %v1026_v49 = vadd.f32 %v1023_v48, %v990_v47 }
 0x178   : > { %v1059_v50 = vpop.f32.mrf.mxu2 }
 0x179   : > { %v1062_v51 = vadd.f32 %v1059_v50, %v1026_v49 }
 0x180   : > { %v1095_v52 = vpop.f32.mrf.mxu3  ;;  %v1196_v57 = vpop.f32.mrf.mxu2 }
 0x181   : > { %v1098_v32 = vadd.f32 %v1095_v52, %v1062_v51 }
 0x182   : > { %v1131_v53 = vpop.f32.mrf.mxu0 }
 0x183   : > { %v1134_v54 = vadd.f32 %v1131_v53, %v1098_v32 }
 0x18a   : > { %v1167_v55 = vpop.f32.mrf.mxu1 }
 0x18b   : > { %v1170_v56 = vadd.f32 %v1167_v55, %v1134_v54 }
 0x18d   : > { %v1199_v58 = vadd.f32 %v1196_v57, %v1170_v56 }
 0x198   : > { %v1232_v59 = vpop.f32.mrf.mxu3 }
 0x199   : > { %v1235_v60 = vadd.f32 %v1232_v59, %v1199_v58 }
 0x19a   : > { %v1268_v61 = vpop.f32.mrf.mxu0 }
 0x19b   : > { %v1271_v62 = vadd.f32 %v1268_v61, %v1235_v60 }
 0x1a2   : > { %v1304_v63 = vpop.f32.mrf.mxu1 }
 0x1a3   : > { %v1307_v0 = vadd.f32 %v1304_v63, %v1271_v62 }
 0x1b0   : > { %v1340_v1 = vpop.f32.mrf.mxu2 }
 0x1b1   : > { %v1343_v2 = vadd.f32 %v1340_v1, %v1307_v0 }
 0x1b8   : > { %v1376_v3 = vpop.f32.mrf.mxu3 }
 0x1b9   : > { %v1379_v4 = vadd.f32 %v1376_v3, %v1343_v2 }
 0x1d0   : > { %v1484_v8 = vpop.f32.mrf.mxu2 }
 0x1d2   : > { %v1412_v5 = vpop.f32.mrf.mxu0  ;;  %v1448_v6 = vpop.f32.mrf.mxu1 }
 0x1d3   : > { %v1415_v7 = vadd.f32 %v1412_v5, %v1379_v4 }
 0x1d5   : > { %v1451_v9 = vadd.f32 %v1448_v6, %v1415_v7 }
 0x1d7   : > { %v1487_v11 = vadd.f32 %v1484_v8, %v1451_v9 }
 0x1d9   : > { %1488 = vst [vmem:[%s518_s1] sm:$0xff] %v1487_v11  ;;  %v1493_v12 = vmul.f32 %v1894_v10, %v1487_v11 }
 0x1db   : > { %1494 = vadd.xlane.f32.xlu0 %v1493_v12  ;;  %v1496_v13 = vmul.f32 %v1493_v12, %v1487_v11 }
 0x1dd   : > { %1497 = vadd.xlane.f32.xlu1 %v1496_v13 }
 0x24e   : > { %v1495_v16 = vpop.xlane.xlu0 %1494 }
 0x250   : > { %v1498_v17 = vpop.xlane.xlu1 %1497 }
 0x251   : > { %v1502_v18 = vsel %vm1501_vm10, %v1495_v16, %v1498_v17 }
 0x252   : > { %1504 = vst.msk [vmem:[%s526_s10] sm:$0xff] %vm1503_vm11, %v1502_v18 }
 0x253 PF: > { %s19_s29 = sadd.s32 1, %s1933_s29   ;;  %s2321_s25 = smov %s1925_s27 }
 0x254   : > { %p16_p1 = scmp.ge.s32.totalorder %s19_s29, 10   ;;  %s2322_s26 = smov %s1929_s28 }
 0x255   : > { %s2323_s27 = smov %s2326_s30  ;;  %s2324_s28 = smov %s2330_s9 }
 0x256   :  { %18 = sbr.rel (!%p16_p1) target bundleno = 3 (0x3), region = 122 }

// kernel: refine_net_pallas.6
= control target key start
LH: loop header
LB: loop body
LE: loop exit
PB: predicated region body
PF: predicated region fallthrough
CT: control target
= control target key end

     0   :  { %s2029_s27 = smov 0   ;;  %s2031_s28 = smov 0   ;;  %s2290_s0 = inlined_call_operand.vmem [shape: f32[8,1], index: 0, kind: input, shape index: {}]   ;;  %s2291_s1 = inlined_call_operand.vmem [shape: f32[8,1], index: 1, kind: input, shape index: {}]   ;;  %s2292_s2 = inlined_call_operand.vmem [shape: f32[1,128], index: 2, kind: input, shape index: {}]   ;;  %s2293_s3 = inlined_call_operand.vmem [shape: f32[27,8,8], index: 3, kind: input, shape index: {}]   ;;  %s2294_s4 = inlined_call_operand.vmem [shape: f32[2,4,8,256], index: 4, kind: input, shape index: {}, may-alias: {4,5,6}]   ;;  %s2295_s5 = inlined_call_operand.vmem [shape: f32[2,4,8,256], index: 5, kind: input, shape index: {}, may-alias: {4,5,6}]   ;;  %s2296_s6 = inlined_call_operand.vmem [shape: f32[2,4,8,256], index: 6, kind: input, shape index: {}, may-alias: {4,5,6}]   ;;  %s2297_s7 = inlined_call_operand.vmem [shape: f32[2,4,8,128], index: 7, kind: output, shape index: {0}]   ;;  %s2298_s8 = inlined_call_operand.vmem [shape: f32[2,4,8,2], index: 8, kind: output, shape index: {1}]  }
   0x1   :  { %s2033_s29 = smov 0   ;;  %s2035_s30 = smov 0  }
   0x2   :  { %s2037_s9 = smov 0  }
   0x3 LB: > { %s28_s10 = sadd.s32 1, %s1965_s29  ;;  %s31_s11 = sadd.s32 1, %s1969_s30  ;;  %s1973_s9 = sphi %s2037_s9, %s19_s9   ;;  %s1969_s30 = sphi %s2035_s30, %s2302_s30   ;;  %s1965_s29 = sphi %s2033_s29, %s2301_s29   ;;  %s1961_s28 = sphi %s2031_s28, %s2300_s28   ;;  %s1957_s27 = sphi %s2029_s27, %s2299_s27  }
   0x4   : > { %p29_p0 = scmp.ge.s32.totalorder %s28_s10, 4  ;;  %p1662_p1 = scmp.ge.s32.totalorder %s1973_s9, 1 }
   0x5   : > { %p375_p2 = scmp.lt.s32.totalorder %s1973_s9, 9 }
   0x6   : > { %s2304_s10 = smov (%p29_p0, %s28_s10), 0  ;;  %s2306_s11 = smov (!%p29_p0, %s31_s11), %s1969_s30 }
   0x7   : > { %p376_p3 = pnand %p1662_p1, %p375_p2  ;;  %p33_p4 = scmp.ge.s32.totalorder %s2306_s11, 2 }
   0x8   : > { %s456_s16 = sadd.s32 (!%p376_p3), 4294967295, %s1957_s27  ;;  %p475_p6 = scmp.gt.s32.totalorder (!%p376_p3), %s1957_s27, 0 }
   0x9   : > { %s2308_s11 = smov (%p33_p4, %s2306_s11), 0  ;;  %379 = sbr.rel (%p376_p3) target bundleno = 582 (0x246), region = 48 }
   0xa   : > { %p457_p5 = scmp.gt.s32.totalorder (!%p376_p3), %s456_s16, 0  ;;  %p1663_p7 = scmp.lt.s32.totalorder (!%p376_p3), %s456_s16, 3 }
   0xb   : > { %p1671_p8 = scmp.lt.s32.totalorder (!%p376_p3), %s1957_s27, 3  ;;  %p461_p9 = scmp.lt.s32.totalorder (!%p376_p3), %s1961_s28, 1 }
   0xc   : > { %s492_s13 = sadd.s32 (!%p376_p3), 1, %s1957_s27 }
   0xd   : > { %p493_p12 = scmp.gt.s32.totalorder (!%p376_p3), %s492_s13, 0  ;;  %p1679_p13 = scmp.lt.s32.totalorder (!%p376_p3), %s492_s13, 3 }
   0xe   : > { %v529_v0 = vld [vmem:[%s2290_s0] sm:$0xff]  ;;  %v1975_v1 = vmov 0   ;;  %s2310_s16 = smov (!%p457_p5, %s456_s16), 0  ;;  %s2316_s28 = smov (!%p461_p9, %s1961_s28), 1  ;;  %vm587_vm6 = vcmask 64512   ;;  %vm673_vm7 = vcmask 965632  }
   0xf   : > { %1813 = vset.pattern.permute.xlu0 %v1975_v1  ;;  %v537_v2 = vld [vmem:[%s2291_s1] sm:$0xff]  ;;  %s476_s17 = scalar_select %p475_p6, %s1957_s27, 0  ;;  %v1696_v43 = vld [vmem:[%s2293_s3 + $0x18] sm:$0xff]  ;;  %vm739_vm8 = vcmask 949248   ;;  %v1700_v49 = vld [vmem:[%s2293_s3 + $0x28] sm:$0xff]  ;;  %vm640_vm9 = vcmask 1031168  }
  0x10   : > { %532 = vperm.xlu0 %1813, %v529_v0   ;;  %s2312_s16 = smov (!%p1663_p7, %s2310_s16), 3  ;;  %s2080_s19 = sshll.u32 %s2316_s28, 3  ;;  %v575_v38 = vld [vmem:[%s2293_s3] sm:$0xff]  ;;  %v1694_v57 = vld [vmem:[%s2293_s3 + $0x10] sm:$0xff]  ;;  %vm772_vm10 = vcmask 883712   ;;  %v1708_v58 = vld [vmem:[%s2293_s3 + $0x48] sm:$0xff] }
  0x11   : > { %s2314_s17 = smov (!%p1671_p8, %s476_s17), 3  ;;  %p463_p10 = scmp.lt.s32.totalorder %s2312_s16, 3  ;;  %vm584_vm11 = vcmask 1039360   ;;  %vm706_vm12 = vcmask 957440   ;;  %vm805_vm13 = vcmask 875520   ;;  %vm838_vm14 = vcmask 867328  }
  0x12   : > { %p481_p11 = scmp.lt.s32.totalorder %s2314_s17, 3  ;;  %s2326_s27 = smov (!%p1671_p8, %s1957_s27), 3 }
  0x13   : > { %s2318_s16 = smov (!%p463_p10, %s2312_s16), 3 }
  0x14   : > { %s2320_s17 = smov (!%p481_p11, %s2314_s17), 3  ;;  %s1668_s18 = sshll.u32 %s2318_s16, 1 }
  0x15   : > { %s467_s20 = sadd.s32 %s2080_s19, %s1668_s18  ;;  %s1676_s21 = sshll.u32 %s2320_s17, 1 }
  0x16   : > { %s1670_s22 = sshll.u32 %s467_s20, 3  ;;  %s485_s23 = sadd.s32 %s1676_s21, %s2080_s19 }
  0x17   : > { %s469_s26 = scalar_lea.vmem %s2294_s4, %s1670_s22  ;;  %s1678_s12 = sshll.u32 %s485_s23, 3 }
  0x18   : > { %540 = vperm.xlu0 %1813, %v537_v2   ;;  %s487_s16 = scalar_lea.vmem %s2295_s5, %s1678_s12  ;;  %v527_v4 = vld [vmem:[%s469_s26] sm:$0xff]  ;;  %v528_v5 = vld [vmem:[%s469_s26 + $0x8] sm:$0xff]  ;;  %s1976_s18 = smov 117  }
  0x19   : > { %v551_v8 = vld [vmem:[%s487_s16] sm:$0xff]  ;;  %v552_v9 = vld [vmem:[%s487_s16 + $0x8] sm:$0xff]  ;;  %s494_s17 = scalar_select %p493_p12, %s492_s13, 0 }
  0x1a   : > { %s1977_s20 = smov 118   ;;  %s1978_s21 = smov 126  }
  0x1b   : > { %s2322_s17 = smov (!%p1679_p13, %s494_s17), 3  ;;  %s1979_s22 = smov 127  }
  0x1c   : > { %p499_p0 = scmp.lt.s32.totalorder %s2322_s17, 3  ;;  %s1980_s23 = smov 108  }
  0x1d   : > { %s1981_s12 = smov 116   ;;  %s1982_s13 = smov 107  }
  0x1e   : > { %s2324_s17 = smov (!%p499_p0, %s2322_s17), 3 }
  0x1f   : > { %s1684_s24 = sshll.u32 %s2324_s17, 1 }
  0x20   : > { %s503_s25 = sadd.s32 %s1684_s24, %s2080_s19  ;;  %s1983_s19 = smov 106  }
  0x21   : > { %s1686_s26 = sshll.u32 %s503_s25, 3 }
  0x22   : > { %s505_s16 = scalar_lea.vmem %s2296_s6, %s1686_s26 }
  0x23   : > { %v563_v27 = vld [vmem:[%s505_s16] sm:$0xff]  ;;  %v564_v28 = vld [vmem:[%s505_s16 + $0x8] sm:$0xff] }
  0x82   : > { %v2084_v3 = vpop.permute.xlu0 %532 }
  0x83   : > { %v535_v6 = vmul.f32 %v2084_v3, %v527_v4  ;;  %v536_v7 = vmul.f32 %v2084_v3, %v528_v5  ;;  %v553_v13 = vmul.f32 %v551_v8, %v2084_v3  ;;  %v554_v14 = vmul.f32 %v552_v9, %v2084_v3  ;;  %v1691_v8 = vld [vmem:[%s2293_s3 + $0x8] sm:$0xff] }
  0x84   : > { %v565_v29 = vmul.f32 %v563_v27, %v2084_v3  ;;  %v566_v30 = vmul.f32 %v564_v28, %v2084_v3 }
  0x8a   : > { %v541_v10 = vpop.permute.xlu0 %540 }
  0x8b   : > { %v543_v11 = vadd.f32 %v541_v10, %v535_v6  ;;  %v544_v12 = vadd.f32 %v541_v10, %v536_v7  ;;  %v555_v17 = vadd.f32 %v553_v13, %v541_v10  ;;  %v556_v18 = vadd.f32 %v554_v14, %v541_v10  ;;  %v1702_v6 = vld [vmem:[%s2293_s3 + $0x30] sm:$0xff] }
  0x8c   : > { %v567_v31 = vadd.f32 %v565_v29, %v541_v10  ;;  %v568_v32 = vadd.f32 %v566_v30, %v541_v10 }
  0x8d   : > { %vm545_vm0 = vcmp.ge.f32.partialorder %v543_v11, 0.0  ;;  %vm546_vm1 = vcmp.ge.f32.partialorder %v544_v12, 0.0  ;;  %v547_v15 = vmul.f32 0.01, %v543_v11  ;;  %v548_v16 = vmul.f32 0.01, %v544_v12 }
  0x8e   : > { %v559_v22 = vmul.f32 0.01, %v555_v17  ;;  %v560_v23 = vmul.f32 0.01, %v556_v18  ;;  %vm557_vm2 = vcmp.ge.f32.partialorder %v555_v17, 0.0  ;;  %vm558_vm3 = vcmp.ge.f32.partialorder %v556_v18, 0.0 }
  0x8f   : > { %v549_v19 = vsel %vm545_vm0, %v543_v11, %v547_v15  ;;  %v550_v20 = vsel %vm546_vm1, %v544_v12, %v548_v16  ;;  %v571_v33 = vmul.f32 0.01, %v567_v31  ;;  %v572_v34 = vmul.f32 0.01, %v568_v32 }
  0x90   : > { %629 = vmatpush.msra.mxu1 %v549_v19  ;;  %v1834_v21 = vpack.i.bf16 %v550_v20, %v549_v19  ;;  %v2101_v24 = vsel %vm557_vm2, %v555_v17, %v559_v22  ;;  %v562_v25 = vsel %vm558_vm3, %v556_v18, %v560_v23  ;;  %vm569_vm4 = vcmp.ge.f32.partialorder %v567_v31, 0.0  ;;  %v1704_v22 = vld [vmem:[%s2293_s3 + $0x38] sm:$0xff]  ;;  %v1710_v23 = vld [vmem:[%s2293_s3 + $0x50] sm:$0xff] }
  0x91   : > { %v1849_v26 = vpack.i.bf16 %v562_v25, %v2101_v24  ;;  %vm570_vm5 = vcmp.ge.f32.partialorder %v568_v32, 0.0  ;;  %v2118_v35 = vsel %vm569_vm4, %v567_v31, %v571_v33  ;;  %1693 = vmatmul.msk.f32.vlgmr.msra.gmra.mxu1 %vm587_vm6, %v575_v38  ;;  %v1698_v25 = vld [vmem:[%s2293_s3 + $0x20] sm:$0xff]  ;;  %v1716_v38 = vld [vmem:[%s2293_s3 + $0x68] sm:$0xff]  ;;  %vm1448_vm0 = vcmask 15360  }
  0x92   : > { %1835 = vrot.lane.b32.xlu0 %v1834_v21, %s1976_s18  ;;  %1825 = vrot.lane.b32.xlu2 %v1834_v21, %s1977_s20  ;;  %v574_v36 = vsel %vm570_vm5, %v568_v32, %v572_v34 }
  0x93   : > { %1815 = vrot.lane.b32.xlu1 %v1834_v21, %s1978_s21  ;;  %v1909_v37 = vpack.i.bf16 %v574_v36, %v2118_v35 }
  0x9a   : > { %1850 = vrot.lane.b32.xlu0 %v1849_v26, %s1979_s22  ;;  %1830 = vrot.lane.b32.xlu2 %v1834_v21, %s1980_s23 }
  0x9b   : > { %1820 = vrot.lane.b32.xlu1 %v1834_v21, %s1979_s22 }
  0xa2   : > { %1865 = vrot.lane.b32.xlu0 %v1849_v26, %s1981_s12  ;;  %1845 = vrot.lane.b32.xlu2 %v1834_v21, %s1981_s12 }
  0xa3   : > { %1840 = vrot.lane.b32.xlu1 %v1834_v21, %s1982_s13 }
  0xaa   : > { %1880 = vrot.lane.b32.xlu0 %v1849_v26, %s1976_s18  ;;  %1860 = vrot.lane.b32.xlu2 %v1849_v26, %s1978_s21 }
  0xab   : > { %1855 = vrot.lane.b32.xlu1 %v1834_v21, %s1983_s19 }
  0xb2   : > { %1895 = vrot.lane.b32.xlu0 %v1849_v26, %s1983_s19  ;;  %1875 = vrot.lane.b32.xlu2 %v1849_v26, %s1980_s23 }
  0xb3   : > { %1870 = vrot.lane.b32.xlu1 %v1849_v26, %s1977_s20 }
  0xba   : > { %1910 = vrot.lane.b32.xlu0 %v1909_v37, %s1981_s12  ;;  %1890 = vrot.lane.b32.xlu2 %v1909_v37, %s1979_s22  ;;  %s1687_s12 = sshll.u32 %s2316_s28, 2 }
  0xbb   : > { %1885 = vrot.lane.b32.xlu1 %v1849_v26, %s1982_s13 }
  0xc2   : > { %1925 = vrot.lane.b32.xlu0 %v1909_v37, %s1980_s23  ;;  %1905 = vrot.lane.b32.xlu2 %v1909_v37, %s1978_s21 }
  0xc3   : > { %1900 = vrot.lane.b32.xlu1 %v1909_v37, %s1976_s18 }
  0xca   : > { %1920 = vrot.lane.b32.xlu2 %v1909_v37, %s1983_s19 }
  0xcb   : > { %1915 = vrot.lane.b32.xlu1 %v1909_v37, %s1977_s20 }
  0xd3   : > { %1930 = vrot.lane.b32.xlu1 %v1909_v37, %s1982_s13  ;;  %s516_s13 = sadd.s32 %s1687_s12, %s2326_s27 }
  0xd4   : > { %s1688_s14 = sshll.u32 %s516_s13, 3 }
  0xd5   : > { %s518_s24 = scalar_lea.vmem %s2297_s7, %s1688_s14  ;;  %s526_s18 = scalar_lea.vmem %s2298_s8, %s1688_s14 }
  0xec   : > { %v1826_v39 = vpop.permute.xlu2 %1825 }
  0xed   : > { %v1828_v40 = vunpack.i.h.bf16 %v1826_v39  ;;  %v1827_v41 = vunpack.i.l.bf16 %v1826_v39  ;;  %v1712_v39 = vld [vmem:[%s2293_s3 + $0x58] sm:$0xff] }
  0xef   : > { %v674_v42 = vsel %vm673_vm7, %v1827_v41, %v1828_v40  ;;  %v1718_v40 = vld [vmem:[%s2293_s3 + $0x70] sm:$0xff] }
  0xf0   : > { %694 = vmatpush.msra.mxu3 %v674_v42  ;;  %v1706_v42 = vld [vmem:[%s2293_s3 + $0x40] sm:$0xff] }
  0xf1   : > { %1697 = vmatmul.msk.f32.vlgmr.msra.gmra.mxu3 %vm587_vm6, %v1696_v43 }
  0xf4   : > { %v1831_v44 = vpop.permute.xlu2 %1830 }
  0xf5   : > { %v1833_v52 = vunpack.i.h.bf16 %v1831_v44  ;;  %v1832_v53 = vunpack.i.l.bf16 %v1831_v44 }
  0xf7   : > { %v773_v60 = vsel %vm772_vm10, %v1832_v53, %v1833_v52  ;;  %v1720_v52 = vld [vmem:[%s2293_s3 + $0x78] sm:$0xff]  ;;  %v1726_v53 = vld [vmem:[%s2293_s3 + $0x90] sm:$0xff] }
  0xfc   : > { %v1846_v45 = vpop.permute.xlu2 %1845 }
  0xfd   : > { %v1848_v46 = vunpack.i.h.bf16 %v1846_v45  ;;  %v1847_v47 = vunpack.i.l.bf16 %v1846_v45 }
  0xff   : > { %v740_v48 = vsel %vm739_vm8, %v1847_v47, %v1848_v46 }
 0x100   : > { %760 = vmatpush.msrb.mxu1 %v740_v48 }
 0x101   : > { %1701 = vmatmul.msk.f32.vlgmr.msrb.gmra.mxu1 %vm587_vm6, %v1700_v49 }
 0x102   : > { %885 = vmatpush.msra.mxu1 %v2101_v24 }
 0x104   : > { %v1836_v50 = vpop.permute.xlu0 %1835  ;;  %v1861_v56 = vpop.permute.xlu2 %1860 }
 0x105   : > { %v1816_v51 = vpop.permute.xlu1 %1815  ;;  %v1838_v62 = vunpack.i.h.bf16 %v1836_v50  ;;  %v1837_v63 = vunpack.i.l.bf16 %v1836_v50  ;;  %v1863_v15 = vunpack.i.h.bf16 %v1861_v56  ;;  %v1862_v16 = vunpack.i.l.bf16 %v1861_v56  ;;  %v1724_v50 = vld [vmem:[%s2293_s3 + $0x88] sm:$0xff]  ;;  %v1714_v56 = vld [vmem:[%s2293_s3 + $0x60] sm:$0xff] }
 0x106   : > { %v1818_v54 = vunpack.i.h.bf16 %v1816_v51  ;;  %v1817_v55 = vunpack.i.l.bf16 %v1816_v51 }
 0x107   : > { %v707_v10 = vsel %vm706_vm12, %v1837_v63, %v1838_v62  ;;  %v931_v26 = vsel %vm640_vm9, %v1862_v16, %v1863_v15  ;;  %v1736_v16 = vld [vmem:[%s2293_s3 + $0xb8] sm:$0xff] }
 0x108   : > { %v641_v59 = vsel %vm640_vm9, %v1817_v55, %v1818_v54 }
 0x109   : > { %661 = vmatpush.msra.mxu2 %v641_v59  ;;  %1709 = vmatmul.msk.f32.vlgmr.msra.gmra.mxu1 %vm587_vm6, %v1708_v58 }
 0x10a   : > { %1695 = vmatmul.msk.f32.vlgmr.msra.gmra.mxu2 %vm587_vm6, %v1694_v57 }
 0x10b   : > { %793 = vmatpush.msrb.mxu2 %v773_v60 }
 0x10c   : > { %v1851_v61 = vpop.permute.xlu0 %1850  ;;  %v1876_v9 = vpop.permute.xlu2 %1875 }
 0x10d   : > { %v1853_v0 = vunpack.i.h.bf16 %v1851_v61  ;;  %v1852_v1 = vunpack.i.l.bf16 %v1851_v61  ;;  %v1821_v2 = vpop.permute.xlu1 %1820  ;;  %v1878_v19 = vunpack.i.h.bf16 %v1876_v9  ;;  %v1877_v20 = vunpack.i.l.bf16 %v1876_v9 }
 0x10e   : > { %v1823_v3 = vunpack.i.h.bf16 %v1821_v2  ;;  %v1822_v4 = vunpack.i.l.bf16 %v1821_v2  ;;  %v1728_v2 = vld [vmem:[%s2293_s3 + $0x98] sm:$0xff] }
 0x10f   : > { %v899_v5 = vsel %vm584_vm11, %v1852_v1, %v1853_v0  ;;  %v1059_v28 = vsel %vm772_vm10, %v1877_v20, %v1878_v19  ;;  %v1730_v20 = vld [vmem:[%s2293_s3 + $0xa0] sm:$0xff] }
 0x110   : > { %v585_v7 = vsel %vm584_vm11, %v1822_v4, %v1823_v3  ;;  %919 = vmatpush.msra.mxu2 %v899_v5  ;;  %v1722_v5 = vld [vmem:[%s2293_s3 + $0x80] sm:$0xff] }
 0x111   : > { %606 = vmatpush.msra.mxu0 %v585_v7 }
 0x112   : > { %1703 = vmatmul.msk.f32.vlgmr.msrb.gmra.mxu2 %vm587_vm6, %v1702_v6  ;;  %1692 = vmatmul.msk.f32.vlgmr.msra.gmra.mxu0 %vm587_vm6, %v1691_v8 }
 0x113   : > { %727 = vmatpush.msrb.mxu0 %v707_v10 }
 0x114   : > { %v1866_v11 = vpop.permute.xlu0 %1865  ;;  %v1891_v27 = vpop.permute.xlu2 %1890 }
 0x115   : > { %v1868_v12 = vunpack.i.h.bf16 %v1866_v11  ;;  %v1867_v13 = vunpack.i.l.bf16 %v1866_v11  ;;  %v1841_v14 = vpop.permute.xlu1 %1840  ;;  %v1893_v33 = vunpack.i.h.bf16 %v1891_v27  ;;  %v1892_v34 = vunpack.i.l.bf16 %v1891_v27  ;;  %v1738_v27 = vld [vmem:[%s2293_s3 + $0xc0] sm:$0xff] }
 0x116   : > { %v1843_v17 = vunpack.i.h.bf16 %v1841_v14  ;;  %v1842_v18 = vunpack.i.l.bf16 %v1841_v14 }
 0x117   : > { %v1027_v21 = vsel %vm739_vm8, %v1867_v13, %v1868_v12  ;;  %v1183_v43 = vsel %vm584_vm11, %v1892_v34, %v1893_v33  ;;  %v631_v33 = vpop.f32.mrf.mxu1 }
 0x118   : > { %v806_v24 = vsel %vm805_vm13, %v1842_v18, %v1843_v17  ;;  %1047 = vmatpush.msrb.mxu2 %v1027_v21  ;;  %v1734_v18 = vld [vmem:[%s2293_s3 + $0xb0] sm:$0xff] }
 0x119   : > { %826 = vmatpush.msrb.mxu3 %v806_v24  ;;  %v1732_v24 = vld [vmem:[%s2293_s3 + $0xa8] sm:$0xff] }
 0x11a   : > { %1705 = vmatmul.msk.f32.vlgmr.msrb.gmra.mxu3 %vm587_vm6, %v1704_v22  ;;  %1711 = vmatmul.msk.f32.vlgmr.msra.gmra.mxu2 %vm587_vm6, %v1710_v23 }
 0x11b   : > { %951 = vmatpush.msra.mxu3 %v931_v26  ;;  %1169 = vmatpush.msra.mxu2 %v2118_v35  ;;  %v1742_v26 = vld [vmem:[%s2293_s3 + $0xd0] sm:$0xff] }
 0x11c   : > { %v1881_v29 = vpop.permute.xlu0 %1880  ;;  %1699 = vmatmul.msk.f32.vlgmr.msrb.gmra.mxu0 %vm587_vm6, %v1698_v25  ;;  %v1906_v54 = vpop.permute.xlu2 %1905 }
 0x11d   : > { %1079 = vmatpush.msrb.mxu3 %v1059_v28  ;;  %v1883_v30 = vunpack.i.h.bf16 %v1881_v29  ;;  %v1882_v31 = vunpack.i.l.bf16 %v1881_v29  ;;  %v1856_v32 = vpop.permute.xlu1 %1855  ;;  %v1908_v58 = vunpack.i.h.bf16 %v1906_v54  ;;  %v1907_v59 = vunpack.i.l.bf16 %v1906_v54 }
 0x11e   : > { %v1858_v36 = vunpack.i.h.bf16 %v1856_v32  ;;  %v1857_v37 = vunpack.i.l.bf16 %v1856_v32 }
 0x11f   : > { %v995_v35 = vsel %vm706_vm12, %v1882_v31, %v1883_v30  ;;  %v1215_v4 = vsel %vm640_vm9, %v1907_v59, %v1908_v58  ;;  %v1740_v31 = vld [vmem:[%s2293_s3 + $0xc8] sm:$0xff] }
 0x120   : > { %v839_v41 = vsel %vm838_vm14, %v1857_v37, %v1858_v36  ;;  %1015 = vmatpush.msrb.mxu1 %v995_v35 }
 0x121   : > { %859 = vmatpush.msra.mxu0 %v839_v41  ;;  %1717 = vmatmul.msk.f32.vlgmr.msrb.gmra.mxu1 %vm587_vm6, %v1716_v38 }
 0x122   : > { %1713 = vmatmul.msk.f32.vlgmr.msra.gmra.mxu3 %vm587_vm6, %v1712_v39  ;;  %1719 = vmatmul.msk.f32.vlgmr.msrb.gmra.mxu2 %vm587_vm6, %v1718_v40 }
 0x123   : > { %1203 = vmatpush.msra.mxu3 %v1183_v43 }
 0x124   : > { %v1896_v44 = vpop.permute.xlu0 %1895  ;;  %1707 = vmatmul.msk.f32.vlgmr.msra.gmra.mxu0 %vm587_vm6, %v1706_v42  ;;  %v1921_v6 = vpop.permute.xlu2 %1920 }
 0x125   : > { %v1898_v45 = vunpack.i.h.bf16 %v1896_v44  ;;  %v1897_v46 = vunpack.i.l.bf16 %v1896_v44  ;;  %v1871_v47 = vpop.permute.xlu1 %1870  ;;  %v1923_v8 = vunpack.i.h.bf16 %v1921_v6  ;;  %v1922_v9 = vunpack.i.l.bf16 %v1921_v6 }
 0x126   : > { %v1873_v48 = vunpack.i.h.bf16 %v1871_v47  ;;  %v1872_v49 = vunpack.i.l.bf16 %v1871_v47 }
 0x127   : > { %v1123_v51 = vsel %vm838_vm14, %v1897_v46, %v1898_v45  ;;  %v1407_v19 = vsel %vm838_vm14, %v1922_v9, %v1923_v8 }
 0x128   : > { %v963_v55 = vsel %vm673_vm7, %v1872_v49, %v1873_v48  ;;  %1143 = vmatpush.msra.mxu1 %v1123_v51 }
 0x129   : > { %983 = vmatpush.msrb.mxu0 %v963_v55  ;;  %1725 = vmatmul.msk.f32.vlgmr.msra.gmra.mxu1 %vm587_vm6, %v1724_v50 }
 0x12a   : > { %1721 = vmatmul.msk.f32.vlgmr.msrb.gmra.mxu3 %vm587_vm6, %v1720_v52  ;;  %1727 = vmatmul.msk.f32.vlgmr.msra.gmra.mxu2 %vm587_vm6, %v1726_v53 }
 0x12c   : > { %v1911_v57 = vpop.permute.xlu0 %1910  ;;  %1715 = vmatmul.msk.f32.vlgmr.msrb.gmra.mxu0 %vm587_vm6, %v1714_v56 }
 0x12d   : > { %v1913_v60 = vunpack.i.h.bf16 %v1911_v57  ;;  %v1912_v61 = vunpack.i.l.bf16 %v1911_v57  ;;  %v1886_v62 = vpop.permute.xlu1 %1885 }
 0x12e   : > { %v1888_v63 = vunpack.i.h.bf16 %v1886_v62  ;;  %v1887_v0 = vunpack.i.l.bf16 %v1886_v62 }
 0x12f   : > { %v1311_v1 = vsel %vm739_vm8, %v1912_v61, %v1913_v60 }
 0x130   : > { %v1091_v3 = vsel %vm805_vm13, %v1887_v0, %v1888_v63  ;;  %1331 = vmatpush.msrb.mxu3 %v1311_v1 }
 0x131   : > { %1111 = vmatpush.msra.mxu0 %v1091_v3 }
 0x132   : > { %1729 = vmatmul.msk.f32.vlgmr.msra.gmra.mxu3 %vm587_vm6, %v1728_v2 }
 0x133   : > { %1235 = vmatpush.msrb.mxu0 %v1215_v4 }
 0x134   : > { %v1926_v7 = vpop.permute.xlu0 %1925  ;;  %1723 = vmatmul.msk.f32.vlgmr.msra.gmra.mxu0 %vm587_vm6, %v1722_v5 }
 0x135   : > { %v1928_v10 = vunpack.i.h.bf16 %v1926_v7  ;;  %v1927_v11 = vunpack.i.l.bf16 %v1926_v7  ;;  %v1901_v12 = vpop.permute.xlu1 %1900 }
 0x136   : > { %v1903_v13 = vunpack.i.h.bf16 %v1901_v12  ;;  %v1902_v14 = vunpack.i.l.bf16 %v1901_v12 }
 0x137   : > { %v1343_v15 = vsel %vm772_vm10, %v1927_v11, %v1928_v10 }
 0x138   : > { %v1279_v17 = vsel %vm706_vm12, %v1902_v14, %v1903_v13  ;;  %1363 = vmatpush.msra.mxu0 %v1343_v15 }
 0x139   : > { %1299 = vmatpush.msrb.mxu2 %v1279_v17 }
 0x13a   : > { %1737 = vmatmul.msk.f32.vlgmr.msrb.gmra.mxu3 %vm587_vm6, %v1736_v16  ;;  %1735 = vmatmul.msk.f32.vlgmr.msrb.gmra.mxu2 %vm587_vm6, %v1734_v18 }
 0x13b   : > { %1427 = vmatpush.msra.mxu2 %v1407_v19 }
 0x13c   : > { %1731 = vmatmul.msk.f32.vlgmr.msrb.gmra.mxu0 %vm587_vm6, %v1730_v20 }
 0x13d   : > { %v1916_v21 = vpop.permute.xlu1 %1915 }
 0x13e   : > { %v1918_v22 = vunpack.i.h.bf16 %v1916_v21  ;;  %v1917_v23 = vunpack.i.l.bf16 %v1916_v21  ;;  %v1934_v21 = vld [vmem:[%s2292_s2] ss:$0 sm:$0xff] }
 0x140   : > { %v1247_v25 = vsel %vm673_vm7, %v1917_v23, %v1918_v22 }
 0x141   : > { %1267 = vmatpush.msrb.mxu1 %v1247_v25  ;;  %v1444_v25 = vlaneseq }
 0x142   : > { %1733 = vmatmul.msk.f32.vlgmr.msrb.gmra.mxu1 %vm587_vm6, %v1732_v24  ;;  %1743 = vmatmul.msk.f32.vlgmr.msra.gmra.mxu2 %vm587_vm6, %v1742_v26 }
 0x143   : > { %v1445_v26 = vand.u32 127, %v1444_v25 }
 0x144   : > { %1739 = vmatmul.msk.f32.vlgmr.msra.gmra.mxu0 %vm587_vm6, %v1738_v27 }
 0x145   : > { %v1931_v28 = vpop.permute.xlu1 %1930  ;;  %vm1446_vm15 = vcmp.eq.s32.totalorder %v1445_v26, 0 }
 0x146   : > { %v1933_v29 = vunpack.i.h.bf16 %v1931_v28  ;;  %v1932_v30 = vunpack.i.l.bf16 %v1931_v28 }
 0x148   : > { %v1375_v32 = vsel %vm805_vm13, %v1932_v30, %v1933_v29 }
 0x149   : > { %1395 = vmatpush.msra.mxu1 %v1375_v32 }
 0x14a   : > { %1741 = vmatmul.msk.f32.vlgmr.msra.gmra.mxu1 %vm587_vm6, %v1740_v31 }
 0x174   : > { %v696_v35 = vpop.f32.mrf.mxu3 }
 0x17e   : > { %v762_v39 = vpop.f32.mrf.mxu1 }
 0x186   : > { %v887_v46 = vpop.f32.mrf.mxu1 }
 0x18d   : > { %v663_v34 = vpop.f32.mrf.mxu2 }
 0x18f   : > { %v608_v36 = vpop.f32.mrf.mxu0 }
 0x190   : > { %v632_v37 = vadd.f32 %v631_v33, %v608_v36 }
 0x192   : > { %v666_v38 = vadd.f32 %v663_v34, %v632_v37 }
 0x194   : > { %v699_v41 = vadd.f32 %v696_v35, %v666_v38 }
 0x195   : > { %v795_v40 = vpop.f32.mrf.mxu2 }
 0x199   : > { %v729_v42 = vpop.f32.mrf.mxu0 }
 0x19a   : > { %v732_v43 = vadd.f32 %v729_v42, %v699_v41 }
 0x19c   : > { %v765_v44 = vadd.f32 %v762_v39, %v732_v43 }
 0x19d   : > { %v828_v45 = vpop.f32.mrf.mxu3  ;;  %v921_v48 = vpop.f32.mrf.mxu2 }
 0x19e   : > { %v798_v47 = vadd.f32 %v795_v40, %v765_v44  ;;  %v1017_v55 = vpop.f32.mrf.mxu1 }
 0x1a0   : > { %v831_v49 = vadd.f32 %v828_v45, %v798_v47 }
 0x1a1   : > { %v861_v50 = vpop.f32.mrf.mxu0 }
 0x1a2   : > { %v864_v51 = vadd.f32 %v861_v50, %v831_v49 }
 0x1a4   : > { %v890_v52 = vadd.f32 %v887_v46, %v864_v51 }
 0x1a5   : > { %v953_v53 = vpop.f32.mrf.mxu3  ;;  %v1049_v58 = vpop.f32.mrf.mxu2 }
 0x1a6   : > { %v924_v54 = vadd.f32 %v921_v48, %v890_v52  ;;  %v1145_v1 = vpop.f32.mrf.mxu1 }
 0x1a8   : > { %v956_v56 = vadd.f32 %v953_v53, %v924_v54 }
 0x1a9   : > { %v985_v57 = vpop.f32.mrf.mxu0 }
 0x1aa   : > { %v988_v59 = vadd.f32 %v985_v57, %v956_v56 }
 0x1ac   : > { %v1020_v60 = vadd.f32 %v1017_v55, %v988_v59 }
 0x1ad   : > { %v1081_v61 = vpop.f32.mrf.mxu3  ;;  %v1171_v3 = vpop.f32.mrf.mxu2 }
 0x1ae   : > { %v1052_v62 = vadd.f32 %v1049_v58, %v1020_v60 }
 0x1b0   : > { %v1084_v63 = vadd.f32 %v1081_v61, %v1052_v62 }
 0x1b1   : > { %v1113_v0 = vpop.f32.mrf.mxu0 }
 0x1b2   : > { %v1116_v2 = vadd.f32 %v1113_v0, %v1084_v63 }
 0x1b4   : > { %v1148_v4 = vadd.f32 %v1145_v1, %v1116_v2 }
 0x1b5   : > { %v1205_v6 = vpop.f32.mrf.mxu3 }
 0x1b6   : > { %v1174_v5 = vadd.f32 %v1171_v3, %v1148_v4 }
 0x1b8   : > { %v1208_v7 = vadd.f32 %v1205_v6, %v1174_v5 }
 0x1b9   : > { %v1237_v8 = vpop.f32.mrf.mxu0 }
 0x1ba   : > { %v1240_v9 = vadd.f32 %v1237_v8, %v1208_v7 }
 0x1bd   : > { %v1301_v10 = vpop.f32.mrf.mxu2  ;;  %v1333_v13 = vpop.f32.mrf.mxu3 }
 0x1bf   : > { %v1269_v11 = vpop.f32.mrf.mxu1 }
 0x1c0   : > { %v1272_v12 = vadd.f32 %v1269_v11, %v1240_v9 }
 0x1c1   : > { %v1365_v15 = vpop.f32.mrf.mxu0 }
 0x1c2   : > { %v1304_v14 = vadd.f32 %v1301_v10, %v1272_v12 }
 0x1c4   : > { %v1336_v16 = vadd.f32 %v1333_v13, %v1304_v14 }
 0x1c5   : > { %v1429_v19 = vpop.f32.mrf.mxu2 }
 0x1c6   : > { %v1368_v17 = vadd.f32 %v1365_v15, %v1336_v16 }
 0x1c7   : > { %v1397_v18 = vpop.f32.mrf.mxu1 }
 0x1c8   : > { %v1400_v20 = vadd.f32 %v1397_v18, %v1368_v17 }
 0x1ca   : > { %v1432_v22 = vadd.f32 %v1429_v19, %v1400_v20 }
 0x1cc   : > { %1433 = vst [vmem:[%s518_s24] sm:$0xff] %v1432_v22  ;;  %v1438_v23 = vmul.f32 %v1934_v21, %v1432_v22 }
 0x1ce   : > { %1439 = vadd.xlane.f32.xlu2 %v1438_v23  ;;  %v1441_v24 = vmul.f32 %v1438_v23, %v1432_v22 }
 0x1d0   : > { %1442 = vadd.xlane.f32.xlu0 %v1441_v24 }
 0x241   : > { %v1440_v27 = vpop.xlane.xlu2 %1439 }
 0x243   : > { %v1443_v28 = vpop.xlane.xlu0 %1442 }
 0x244   : > { %v1447_v29 = vsel %vm1446_vm15, %v1440_v27, %v1443_v28 }
 0x245   : > { %1449 = vst.msk [vmem:[%s526_s18] sm:$0xff] %vm1448_vm0, %v1447_v29 }
 0x246 PF: > { %s19_s9 = sadd.s32 1, %s1973_s9   ;;  %s2299_s27 = smov %s1965_s29 }
 0x247   : > { %p16_p1 = scmp.ge.s32.totalorder %s19_s9, 10   ;;  %s2300_s28 = smov %s1969_s30 }
 0x248   : > { %s2301_s29 = smov %s2304_s10  ;;  %s2302_s30 = smov %s2308_s11 }
 0x249   :  { %18 = sbr.rel (!%p16_p1) target bundleno = 3 (0x3), region = 122 }

// kernel: refine_net_pallas.9
= control target key start
LH: loop header
LB: loop body
LE: loop exit
PB: predicated region body
PF: predicated region fallthrough
CT: control target
= control target key end

     0   :  { %s2020_s27 = smov 0   ;;  %s2022_s28 = smov 0   ;;  %s2285_s0 = inlined_call_operand.vmem [shape: f32[8,1], index: 0, kind: input, shape index: {}]   ;;  %s2286_s1 = inlined_call_operand.vmem [shape: f32[8,1], index: 1, kind: input, shape index: {}]   ;;  %s2287_s2 = inlined_call_operand.vmem [shape: f32[27,3,8], index: 2, kind: input, shape index: {}]   ;;  %s2288_s3 = inlined_call_operand.vmem [shape: f32[3,1], index: 3, kind: input, shape index: {}]   ;;  %s2289_s4 = inlined_call_operand.vmem [shape: f32[2,4,4,256], index: 4, kind: input, shape index: {}]   ;;  %s2290_s5 = inlined_call_operand.vmem [shape: f32[2,4,8,256], index: 5, kind: input, shape index: {}, may-alias: {5,6,7}]   ;;  %s2291_s6 = inlined_call_operand.vmem [shape: f32[2,4,8,256], index: 6, kind: input, shape index: {}, may-alias: {5,6,7}]   ;;  %s2292_s7 = inlined_call_operand.vmem [shape: f32[2,4,8,256], index: 7, kind: input, shape index: {}, may-alias: {5,6,7}]   ;;  %s2293_s8 = inlined_call_operand.vmem [shape: f32[2,4,3,128], index: 8, kind: output, shape index: {}]  }
   0x1   :  { %2294 = sst [smem:[#allocation2_spill]] %s2285_s0  ;;  %s2024_s29 = smov 0  }
   0x2   :  { %2295 = sst [smem:[#allocation3_spill]] %s2286_s1  ;;  %s2026_s30 = smov 0  }
   0x3   :  { %s2028_s9 = smov 0  }
   0x4 LB: > { %s27_s10 = sadd.s32 1, %s1956_s29  ;;  %s30_s11 = sadd.s32 1, %s1960_s30  ;;  %s1964_s9 = sphi %s2028_s9, %s18_s9   ;;  %s1960_s30 = sphi %s2026_s30, %s2301_s30   ;;  %s1956_s29 = sphi %s2024_s29, %s2300_s29   ;;  %s1952_s28 = sphi %s2022_s28, %s2299_s28   ;;  %s1948_s27 = sphi %s2020_s27, %s2298_s27  }
   0x5   : > { %p28_p0 = scmp.ge.s32.totalorder %s27_s10, 4  ;;  %p1652_p1 = scmp.ge.s32.totalorder %s1964_s9, 1 }
   0x6   : > { %p386_p2 = scmp.lt.s32.totalorder %s1964_s9, 9 }
   0x7   : > { %s2303_s10 = smov (%p28_p0, %s27_s10), 0  ;;  %s2305_s11 = smov (!%p28_p0, %s30_s11), %s1960_s30 }
   0x8   : > { %p387_p3 = pnand %p1652_p1, %p386_p2  ;;  %p32_p4 = scmp.ge.s32.totalorder %s2305_s11, 2 }
   0x9   : > { %s2296_s0 = sld [smem:[#allocation2_spill]] (!%p387_p3)  ;;  %p468_p5 = scmp.lt.s32.totalorder (!%p387_p3), %s1952_s28, 1 }
   0xa   : > { %s2307_s11 = smov (%p32_p4, %s2305_s11), 0  ;;  %390 = sbr.rel (%p387_p3) target bundleno = 466 (0x1d2), region = 52 }
   0xb   : > { %s2297_s1 = sld [smem:[#allocation3_spill]] (!%p387_p3)  ;;  %p470_p6 = scmp.lt.s32.totalorder (!%p387_p3), %s1948_s27, 3 }
   0xc   : > { %s477_s24 = sadd.s32 (!%p387_p3), 4294967295, %s1948_s27  ;;  %p496_p9 = scmp.gt.s32.totalorder (!%p387_p3), %s1948_s27, 0 }
   0xd   : > { %p478_p7 = scmp.gt.s32.totalorder (!%p387_p3), %s477_s24, 0  ;;  %p1656_p8 = scmp.lt.s32.totalorder (!%p387_p3), %s477_s24, 3 }
   0xe   : > { %s513_s22 = sadd.s32 (!%p387_p3), 1, %s1948_s27 }
   0xf   : > { %v542_v0 = vld [vmem:[%s2296_s0] sm:$0xff]  ;;  %v1966_v1 = vmov 0   ;;  %s2062_s16 = scalar_select %p470_p6, %s1948_s27, 3  ;;  %vm600_vm6 = vcmask 64512   ;;  %vm686_vm7 = vcmask 965632   ;;  %vm752_vm8 = vcmask 949248  }
  0x10   : > { %1804 = vset.pattern.permute.xlu0 %v1966_v1  ;;  %1925 = vset.pattern.permute.xlu2 %v1966_v1  ;;  %s2309_s28 = smov (!%p468_p5, %s1952_s28), 1  ;;  %s2311_s24 = smov (!%p478_p7, %s477_s24), 0  ;;  %v588_v39 = vld [vmem:[%s2287_s2] sm:$0x7]  ;;  %v1687_v44 = vld [vmem:[%s2287_s2 + $0xc] sm:$0x7] }
  0x11   : > { %545 = vperm.xlu0 %1804, %v542_v0   ;;  %v550_v2 = vld [vmem:[%s2297_s1] sm:$0xff]  ;;  %s1653_s17 = sshll.u32 %s2062_s16, 1  ;;  %s2068_s18 = sshll.u32 %s2309_s28, 3  ;;  %v1691_v50 = vld [vmem:[%s2287_s2 + $0x14] sm:$0x7]  ;;  %vm653_vm9 = vcmask 1031168  }
  0x12   : > { %s474_s19 = sadd.s32 %s2068_s18, %s1653_s17  ;;  %s2313_s24 = smov (!%p1656_p8, %s2311_s24), 3  ;;  %v1685_v58 = vld [vmem:[%s2287_s2 + $0x8] sm:$0x7]  ;;  %vm785_vm10 = vcmask 883712   ;;  %v1699_v59 = vld [vmem:[%s2287_s2 + $0x24] sm:$0x7] }
  0x13   : > { %s1655_s20 = sshll.u32 %s474_s19, 2  ;;  %p484_p10 = scmp.lt.s32.totalorder %s2313_s24, 3  ;;  %vm597_vm11 = vcmask 1039360   ;;  %vm719_vm12 = vcmask 957440   ;;  %vm818_vm13 = vcmask 875520   ;;  %vm851_vm14 = vcmask 867328  }
  0x14   : > { %s476_s23 = scalar_lea.vmem %s2289_s4, %s1655_s20  ;;  %p514_p12 = scmp.gt.s32.totalorder %s513_s22, 0 }
  0x15   : > { %v1446_v3 = vld [vmem:[%s476_s23] sm:$0xff]  ;;  %s497_s25 = scalar_select %p496_p9, %s1948_s27, 0 }
  0x16   : > { %1455 = vst [vmem:[#allocation1] ss:$2 sm:$0xff] %v1446_v3  ;;  %s2317_s24 = smov (!%p484_p10, %s2313_s24), 3  ;;  %p1672_p13 = scmp.lt.s32.totalorder %s513_s22, 3 }
  0x17   : > { %s2315_s25 = smov (!%p470_p6, %s497_s25), 3  ;;  %s1661_s26 = sshll.u32 %s2317_s24, 1 }
  0x18   : > { %p502_p11 = scmp.lt.s32.totalorder %s2315_s25, 3  ;;  %s488_s12 = sadd.s32 %s1661_s26, %s2068_s18 }
  0x19   : > { %553 = vperm.xlu0 %1804, %v550_v2   ;;  %s1663_s14 = sshll.u32 %s488_s12, 3  ;;  %s1967_s0 = smov 117  }
  0x1a   : > { %s2319_s25 = smov (!%p502_p11, %s2315_s25), 3  ;;  %s490_s20 = scalar_lea.vmem %s2290_s5, %s1663_s14 }
  0x1b   : > { %s1669_s13 = sshll.u32 %s2319_s25, 1  ;;  %v540_v5 = vld [vmem:[%s490_s20] sm:$0xff]  ;;  %v541_v6 = vld [vmem:[%s490_s20 + $0x8] sm:$0xff]  ;;  %s1969_s27 = smov 126  }
  0x1c   : > { %s506_s15 = sadd.s32 %s1669_s13, %s2068_s18  ;;  %s1970_s25 = smov 127  }
  0x1d   : > { %s1671_s21 = sshll.u32 %s506_s15, 3  ;;  %s1971_s26 = smov 108  }
  0x1e   : > { %s508_s1 = scalar_lea.vmem %s2291_s6, %s1671_s21  ;;  %s1972_s15 = smov 116  }
  0x1f   : > { %v564_v9 = vld [vmem:[%s508_s1] sm:$0xff]  ;;  %v565_v10 = vld [vmem:[%s508_s1 + $0x8] sm:$0xff]  ;;  %s515_s24 = scalar_select %p514_p12, %s513_s22, 0 }
  0x20   : > { %s1968_s1 = smov 118   ;;  %s1973_s17 = smov 107  }
  0x21   : > { %s2321_s24 = smov (!%p1672_p13, %s515_s24), 3 }
  0x22   : > { %p520_p0 = scmp.lt.s32.totalorder %s2321_s24, 3 }
  0x24   : > { %s2323_s24 = smov (!%p520_p0, %s2321_s24), 3 }
  0x25   : > { %s1677_s12 = sshll.u32 %s2323_s24, 1 }
  0x26   : > { %s524_s13 = sadd.s32 %s1677_s12, %s2068_s18  ;;  %s1974_s18 = smov 106  }
  0x27   : > { %s1679_s14 = sshll.u32 %s524_s13, 3  ;;  %s1680_s12 = sshll.u32 %s2309_s28, 2 }
  0x28   : > { %s526_s21 = scalar_lea.vmem %s2292_s7, %s1679_s14 }
  0x29   : > { %v576_v28 = vld [vmem:[%s526_s21] sm:$0xff]  ;;  %v577_v29 = vld [vmem:[%s526_s21 + $0x8] sm:$0xff] }
  0x83   : > { %v2081_v4 = vpop.permute.xlu0 %545 }
  0x84   : > { %v548_v7 = vmul.f32 %v2081_v4, %v540_v5  ;;  %v549_v8 = vmul.f32 %v2081_v4, %v541_v6  ;;  %v566_v14 = vmul.f32 %v564_v9, %v2081_v4  ;;  %v567_v15 = vmul.f32 %v565_v10, %v2081_v4  ;;  %v1682_v9 = vld [vmem:[%s2287_s2 + $0x4] sm:$0x7] }
  0x85   : > { %v578_v30 = vmul.f32 %v576_v28, %v2081_v4  ;;  %v579_v31 = vmul.f32 %v577_v29, %v2081_v4 }
  0x8b   : > { %v554_v11 = vpop.permute.xlu0 %553 }
  0x8c   : > { %v556_v12 = vadd.f32 %v554_v11, %v548_v7  ;;  %v557_v13 = vadd.f32 %v554_v11, %v549_v8  ;;  %v568_v18 = vadd.f32 %v566_v14, %v554_v11  ;;  %v569_v19 = vadd.f32 %v567_v15, %v554_v11  ;;  %v1693_v7 = vld [vmem:[%s2287_s2 + $0x18] sm:$0x7] }
  0x8d   : > { %v580_v32 = vadd.f32 %v578_v30, %v554_v11  ;;  %v581_v33 = vadd.f32 %v579_v31, %v554_v11 }
  0x8e   : > { %vm558_vm0 = vcmp.ge.f32.partialorder %v556_v12, 0.0  ;;  %vm559_vm1 = vcmp.ge.f32.partialorder %v557_v13, 0.0  ;;  %v560_v16 = vmul.f32 0.01, %v556_v12  ;;  %v561_v17 = vmul.f32 0.01, %v557_v13 }
  0x8f   : > { %v572_v23 = vmul.f32 0.01, %v568_v18  ;;  %v573_v24 = vmul.f32 0.01, %v569_v19  ;;  %vm570_vm2 = vcmp.ge.f32.partialorder %v568_v18, 0.0  ;;  %vm571_vm3 = vcmp.ge.f32.partialorder %v569_v19, 0.0 }
  0x90   : > { %v562_v20 = vsel %vm558_vm0, %v556_v12, %v560_v16  ;;  %v563_v21 = vsel %vm559_vm1, %v557_v13, %v561_v17  ;;  %v584_v34 = vmul.f32 0.01, %v580_v32  ;;  %v585_v35 = vmul.f32 0.01, %v581_v33 }
  0x91   : > { %642 = vmatpush.msra.mxu1 %v562_v20  ;;  %v1825_v22 = vpack.i.bf16 %v563_v21, %v562_v20  ;;  %v2098_v25 = vsel %vm570_vm2, %v568_v18, %v572_v23  ;;  %v575_v26 = vsel %vm571_vm3, %v569_v19, %v573_v24  ;;  %vm582_vm4 = vcmp.ge.f32.partialorder %v580_v32, 0.0  ;;  %v1695_v23 = vld [vmem:[%s2287_s2 + $0x1c] sm:$0x7]  ;;  %v1701_v24 = vld [vmem:[%s2287_s2 + $0x28] sm:$0x7] }
  0x92   : > { %v1840_v27 = vpack.i.bf16 %v575_v26, %v2098_v25  ;;  %vm583_vm5 = vcmp.ge.f32.partialorder %v581_v33, 0.0  ;;  %v2115_v36 = vsel %vm582_vm4, %v580_v32, %v584_v34  ;;  %1684 = vmatmul.msk.f32.vlgmr.msra.gmra.mxu1 %vm600_vm6, %v588_v39  ;;  %v1689_v26 = vld [vmem:[%s2287_s2 + $0x10] sm:$0x7]  ;;  %v1707_v39 = vld [vmem:[%s2287_s2 + $0x34] sm:$0x7] }
  0x93   : > { %1826 = vrot.lane.b32.xlu0 %v1825_v22, %s1967_s0  ;;  %1816 = vrot.lane.b32.xlu2 %v1825_v22, %s1968_s1  ;;  %v587_v37 = vsel %vm583_vm5, %v581_v33, %v585_v35 }
  0x94   : > { %1806 = vrot.lane.b32.xlu1 %v1825_v22, %s1969_s27  ;;  %v1900_v38 = vpack.i.bf16 %v587_v37, %v2115_v36 }
  0x9b   : > { %1841 = vrot.lane.b32.xlu0 %v1840_v27, %s1970_s25  ;;  %1821 = vrot.lane.b32.xlu2 %v1825_v22, %s1971_s26 }
  0x9c   : > { %1811 = vrot.lane.b32.xlu1 %v1825_v22, %s1970_s25 }
  0xa3   : > { %1856 = vrot.lane.b32.xlu0 %v1840_v27, %s1972_s15  ;;  %1836 = vrot.lane.b32.xlu2 %v1825_v22, %s1972_s15 }
  0xa4   : > { %1831 = vrot.lane.b32.xlu1 %v1825_v22, %s1973_s17 }
  0xab   : > { %1871 = vrot.lane.b32.xlu0 %v1840_v27, %s1967_s0  ;;  %1851 = vrot.lane.b32.xlu2 %v1840_v27, %s1969_s27 }
  0xac   : > { %1846 = vrot.lane.b32.xlu1 %v1825_v22, %s1974_s18 }
  0xb3   : > { %1886 = vrot.lane.b32.xlu0 %v1840_v27, %s1974_s18  ;;  %1866 = vrot.lane.b32.xlu2 %v1840_v27, %s1971_s26 }
  0xb4   : > { %1861 = vrot.lane.b32.xlu1 %v1840_v27, %s1968_s1 }
  0xbb   : > { %1901 = vrot.lane.b32.xlu0 %v1900_v38, %s1972_s15  ;;  %1881 = vrot.lane.b32.xlu2 %v1900_v38, %s1970_s25 }
  0xbc   : > { %1876 = vrot.lane.b32.xlu1 %v1840_v27, %s1973_s17 }
  0xc3   : > { %1916 = vrot.lane.b32.xlu0 %v1900_v38, %s1971_s26  ;;  %1896 = vrot.lane.b32.xlu2 %v1900_v38, %s1969_s27 }
  0xc4   : > { %1891 = vrot.lane.b32.xlu1 %v1900_v38, %s1967_s0 }
  0xcb   : > { %1911 = vrot.lane.b32.xlu2 %v1900_v38, %s1974_s18 }
  0xcc   : > { %1906 = vrot.lane.b32.xlu1 %v1900_v38, %s1968_s1 }
  0xd4   : > { %1921 = vrot.lane.b32.xlu1 %v1900_v38, %s1973_s17 }
  0xed   : > { %v1817_v40 = vpop.permute.xlu2 %1816 }
  0xee   : > { %v1819_v41 = vunpack.i.h.bf16 %v1817_v40  ;;  %v1818_v42 = vunpack.i.l.bf16 %v1817_v40  ;;  %v1703_v40 = vld [vmem:[%s2287_s2 + $0x2c] sm:$0x7] }
  0xf0   : > { %v687_v43 = vsel %vm686_vm7, %v1818_v42, %v1819_v41  ;;  %v1709_v41 = vld [vmem:[%s2287_s2 + $0x38] sm:$0x7] }
  0xf1   : > { %707 = vmatpush.msra.mxu3 %v687_v43  ;;  %v1697_v43 = vld [vmem:[%s2287_s2 + $0x20] sm:$0x7] }
  0xf2   : > { %1688 = vmatmul.msk.f32.vlgmr.msra.gmra.mxu3 %vm600_vm6, %v1687_v44 }
  0xf5   : > { %v1822_v45 = vpop.permute.xlu2 %1821 }
  0xf6   : > { %v1824_v53 = vunpack.i.h.bf16 %v1822_v45  ;;  %v1823_v54 = vunpack.i.l.bf16 %v1822_v45 }
  0xf8   : > { %v786_v61 = vsel %vm785_vm10, %v1823_v54, %v1824_v53  ;;  %v1711_v53 = vld [vmem:[%s2287_s2 + $0x3c] sm:$0x7]  ;;  %v1717_v54 = vld [vmem:[%s2287_s2 + $0x48] sm:$0x7] }
  0xfd   : > { %v1837_v46 = vpop.permute.xlu2 %1836 }
  0xfe   : > { %v1839_v47 = vunpack.i.h.bf16 %v1837_v46  ;;  %v1838_v48 = vunpack.i.l.bf16 %v1837_v46 }
 0x100   : > { %v753_v49 = vsel %vm752_vm8, %v1838_v48, %v1839_v47 }
 0x101   : > { %773 = vmatpush.msrb.mxu1 %v753_v49 }
 0x102   : > { %1692 = vmatmul.msk.f32.vlgmr.msrb.gmra.mxu1 %vm600_vm6, %v1691_v50 }
 0x103   : > { %898 = vmatpush.msra.mxu1 %v2098_v25 }
 0x105   : > { %v1827_v51 = vpop.permute.xlu0 %1826  ;;  %v1852_v57 = vpop.permute.xlu2 %1851 }
 0x106   : > { %v1807_v52 = vpop.permute.xlu1 %1806  ;;  %v1829_v63 = vunpack.i.h.bf16 %v1827_v51  ;;  %v1828_v0 = vunpack.i.l.bf16 %v1827_v51  ;;  %v1854_v16 = vunpack.i.h.bf16 %v1852_v57  ;;  %v1853_v17 = vunpack.i.l.bf16 %v1852_v57  ;;  %v1715_v51 = vld [vmem:[%s2287_s2 + $0x44] sm:$0x7]  ;;  %v1705_v57 = vld [vmem:[%s2287_s2 + $0x30] sm:$0x7] }
 0x107   : > { %v1809_v55 = vunpack.i.h.bf16 %v1807_v52  ;;  %v1808_v56 = vunpack.i.l.bf16 %v1807_v52 }
 0x108   : > { %v720_v11 = vsel %vm719_vm12, %v1828_v0, %v1829_v63  ;;  %v944_v27 = vsel %vm653_vm9, %v1853_v17, %v1854_v16 }
 0x109   : > { %v654_v60 = vsel %vm653_vm9, %v1808_v56, %v1809_v55 }
 0x10a   : > { %674 = vmatpush.msra.mxu2 %v654_v60  ;;  %1700 = vmatmul.msk.f32.vlgmr.msra.gmra.mxu1 %vm600_vm6, %v1699_v59  ;;  %v1456_v59 = vld.sshfl [vmem:[#allocation1] sm:$0xff pattern:$0x75316420] }
 0x10b   : > { %1686 = vmatmul.msk.f32.vlgmr.msra.gmra.mxu2 %vm600_vm6, %v1685_v58  ;;  %v1457_v58 = vld.sshfl [vmem:[#allocation1 + $0x8] sm:$0xff pattern:$0x75316420]  ;;  %1458 = vrot.lane.b32.xlu0 %v1456_v59, %s1967_s0  ;;  %v1447_v60 = vld [vmem:[%s2288_s3] sm:$0x7] }
 0x10c   : > { %806 = vmatpush.msrb.mxu2 %v786_v61  ;;  %1460 = vrot.lane.b32.xlu1 %v1457_v58, %s1967_s0  ;;  %s537_s0 = sadd.s32 %s1680_s12, %s2062_s16 }
 0x10d   : > { %v1842_v62 = vpop.permute.xlu0 %1841  ;;  %v1867_v10 = vpop.permute.xlu2 %1866  ;;  %1450 = vperm.xlu2 %1925, %v1447_v60   ;;  %s1681_s13 = sshll.u32 %s537_s0, 2 }
 0x10e   : > { %v1844_v1 = vunpack.i.h.bf16 %v1842_v62  ;;  %v1843_v2 = vunpack.i.l.bf16 %v1842_v62  ;;  %v1812_v3 = vpop.permute.xlu1 %1811  ;;  %v1869_v20 = vunpack.i.h.bf16 %v1867_v10  ;;  %v1868_v21 = vunpack.i.l.bf16 %v1867_v10  ;;  %s539_s17 = scalar_lea.vmem %s2293_s8, %s1681_s13 }
 0x10f   : > { %v1814_v4 = vunpack.i.h.bf16 %v1812_v3  ;;  %v1813_v5 = vunpack.i.l.bf16 %v1812_v3 }
 0x110   : > { %v912_v6 = vsel %vm597_vm11, %v1843_v2, %v1844_v1  ;;  %v1072_v29 = vsel %vm785_vm10, %v1868_v21, %v1869_v20  ;;  %v1727_v20 = vld [vmem:[%s2287_s2 + $0x5c] sm:$0x7] }
 0x111   : > { %v598_v8 = vsel %vm597_vm11, %v1813_v5, %v1814_v4  ;;  %932 = vmatpush.msra.mxu2 %v912_v6  ;;  %v1719_v6 = vld [vmem:[%s2287_s2 + $0x4c] sm:$0x7] }
 0x112   : > { %619 = vmatpush.msra.mxu0 %v598_v8 }
 0x113   : > { %1694 = vmatmul.msk.f32.vlgmr.msrb.gmra.mxu2 %vm600_vm6, %v1693_v7  ;;  %1683 = vmatmul.msk.f32.vlgmr.msra.gmra.mxu0 %vm600_vm6, %v1682_v9  ;;  %v1713_v9 = vld [vmem:[%s2287_s2 + $0x40] sm:$0x7] }
 0x114   : > { %740 = vmatpush.msrb.mxu0 %v720_v11 }
 0x115   : > { %v1857_v12 = vpop.permute.xlu0 %1856  ;;  %v1882_v28 = vpop.permute.xlu2 %1881 }
 0x116   : > { %v1859_v13 = vunpack.i.h.bf16 %v1857_v12  ;;  %v1858_v14 = vunpack.i.l.bf16 %v1857_v12  ;;  %v1832_v15 = vpop.permute.xlu1 %1831  ;;  %v1884_v34 = vunpack.i.h.bf16 %v1882_v28  ;;  %v1883_v35 = vunpack.i.l.bf16 %v1882_v28  ;;  %v1723_v28 = vld [vmem:[%s2287_s2 + $0x54] sm:$0x7] }
 0x117   : > { %v1834_v18 = vunpack.i.h.bf16 %v1832_v15  ;;  %v1833_v19 = vunpack.i.l.bf16 %v1832_v15 }
 0x118   : > { %v1040_v22 = vsel %vm752_vm8, %v1858_v14, %v1859_v13  ;;  %v1196_v44 = vsel %vm597_vm11, %v1883_v35, %v1884_v34  ;;  %v1731_v35 = vld [vmem:[%s2287_s2 + $0x64] sm:$0x7] }
 0x119   : > { %v819_v25 = vsel %vm818_vm13, %v1833_v19, %v1834_v18  ;;  %1060 = vmatpush.msrb.mxu2 %v1040_v22  ;;  %v1725_v22 = vld [vmem:[%s2287_s2 + $0x58] sm:$0x7] }
 0x11a   : > { %839 = vmatpush.msrb.mxu3 %v819_v25 }
 0x11b   : > { %1696 = vmatmul.msk.f32.vlgmr.msrb.gmra.mxu3 %vm600_vm6, %v1695_v23  ;;  %1702 = vmatmul.msk.f32.vlgmr.msra.gmra.mxu2 %vm600_vm6, %v1701_v24  ;;  %v1721_v24 = vld [vmem:[%s2287_s2 + $0x50] sm:$0x7] }
 0x11c   : > { %964 = vmatpush.msra.mxu3 %v944_v27  ;;  %1182 = vmatpush.msra.mxu2 %v2115_v36 }
 0x11d   : > { %v1872_v30 = vpop.permute.xlu0 %1871  ;;  %1690 = vmatmul.msk.f32.vlgmr.msrb.gmra.mxu0 %vm600_vm6, %v1689_v26  ;;  %v1897_v55 = vpop.permute.xlu2 %1896 }
 0x11e   : > { %1092 = vmatpush.msrb.mxu3 %v1072_v29  ;;  %v1874_v31 = vunpack.i.h.bf16 %v1872_v30  ;;  %v1873_v32 = vunpack.i.l.bf16 %v1872_v30  ;;  %v1847_v33 = vpop.permute.xlu1 %1846  ;;  %v1899_v62 = vunpack.i.h.bf16 %v1897_v55  ;;  %v1898_v63 = vunpack.i.l.bf16 %v1897_v55  ;;  %v1733_v30 = vld [vmem:[%s2287_s2 + $0x68] sm:$0x7] }
 0x11f   : > { %v1849_v37 = vunpack.i.h.bf16 %v1847_v33  ;;  %v1848_v38 = vunpack.i.l.bf16 %v1847_v33 }
 0x120   : > { %v1008_v36 = vsel %vm719_vm12, %v1873_v32, %v1874_v31  ;;  %v1228_v8 = vsel %vm653_vm9, %v1898_v63, %v1899_v62  ;;  %v1729_v31 = vld [vmem:[%s2287_s2 + $0x60] sm:$0x7] }
 0x121   : > { %v852_v42 = vsel %vm851_vm14, %v1848_v38, %v1849_v37  ;;  %1028 = vmatpush.msrb.mxu1 %v1008_v36  ;;  %v644_v38 = vpop.f32.mrf.mxu1 }
 0x122   : > { %872 = vmatpush.msra.mxu0 %v852_v42  ;;  %1708 = vmatmul.msk.f32.vlgmr.msrb.gmra.mxu1 %vm600_vm6, %v1707_v39 }
 0x123   : > { %1704 = vmatmul.msk.f32.vlgmr.msra.gmra.mxu3 %vm600_vm6, %v1703_v40  ;;  %1710 = vmatmul.msk.f32.vlgmr.msrb.gmra.mxu2 %vm600_vm6, %v1709_v41 }
 0x124   : > { %1216 = vmatpush.msra.mxu3 %v1196_v44 }
 0x125   : > { %v1887_v45 = vpop.permute.xlu0 %1886  ;;  %1698 = vmatmul.msk.f32.vlgmr.msra.gmra.mxu0 %vm600_vm6, %v1697_v43  ;;  %v1912_v10 = vpop.permute.xlu2 %1911 }
 0x126   : > { %v1889_v46 = vunpack.i.h.bf16 %v1887_v45  ;;  %v1888_v47 = vunpack.i.l.bf16 %v1887_v45  ;;  %v1862_v48 = vpop.permute.xlu1 %1861  ;;  %v1914_v12 = vunpack.i.h.bf16 %v1912_v10  ;;  %v1913_v13 = vunpack.i.l.bf16 %v1912_v10 }
 0x127   : > { %v1864_v49 = vunpack.i.h.bf16 %v1862_v48  ;;  %v1863_v50 = vunpack.i.l.bf16 %v1862_v48 }
 0x128   : > { %v1136_v52 = vsel %vm851_vm14, %v1888_v47, %v1889_v46  ;;  %v1420_v23 = vsel %vm851_vm14, %v1913_v13, %v1914_v12 }
 0x129   : > { %v976_v56 = vsel %vm686_vm7, %v1863_v50, %v1864_v49  ;;  %1156 = vmatpush.msra.mxu1 %v1136_v52 }
 0x12a   : > { %996 = vmatpush.msrb.mxu0 %v976_v56  ;;  %1716 = vmatmul.msk.f32.vlgmr.msra.gmra.mxu1 %vm600_vm6, %v1715_v51 }
 0x12b   : > { %1712 = vmatmul.msk.f32.vlgmr.msrb.gmra.mxu3 %vm600_vm6, %v1711_v53  ;;  %1718 = vmatmul.msk.f32.vlgmr.msra.gmra.mxu2 %vm600_vm6, %v1717_v54 }
 0x12d   : > { %v1902_v61 = vpop.permute.xlu0 %1901  ;;  %1706 = vmatmul.msk.f32.vlgmr.msrb.gmra.mxu0 %vm600_vm6, %v1705_v57 }
 0x12e   : > { %v1904_v0 = vunpack.i.h.bf16 %v1902_v61  ;;  %v1903_v1 = vunpack.i.l.bf16 %v1902_v61  ;;  %v1877_v2 = vpop.permute.xlu1 %1876 }
 0x12f   : > { %v1879_v3 = vunpack.i.h.bf16 %v1877_v2  ;;  %v1878_v4 = vunpack.i.l.bf16 %v1877_v2 }
 0x130   : > { %v1324_v5 = vsel %vm752_vm8, %v1903_v1, %v1904_v0 }
 0x131   : > { %v1104_v7 = vsel %vm818_vm13, %v1878_v4, %v1879_v3  ;;  %1344 = vmatpush.msrb.mxu3 %v1324_v5 }
 0x132   : > { %1124 = vmatpush.msra.mxu0 %v1104_v7 }
 0x133   : > { %1720 = vmatmul.msk.f32.vlgmr.msra.gmra.mxu3 %vm600_vm6, %v1719_v6 }
 0x134   : > { %1248 = vmatpush.msrb.mxu0 %v1228_v8 }
 0x135   : > { %v1917_v11 = vpop.permute.xlu0 %1916  ;;  %1714 = vmatmul.msk.f32.vlgmr.msra.gmra.mxu0 %vm600_vm6, %v1713_v9 }
 0x136   : > { %v1919_v14 = vunpack.i.h.bf16 %v1917_v11  ;;  %v1918_v15 = vunpack.i.l.bf16 %v1917_v11  ;;  %v1892_v16 = vpop.permute.xlu1 %1891 }
 0x137   : > { %v1894_v17 = vunpack.i.h.bf16 %v1892_v16  ;;  %v1893_v18 = vunpack.i.l.bf16 %v1892_v16 }
 0x138   : > { %v1356_v19 = vsel %vm785_vm10, %v1918_v15, %v1919_v14 }
 0x139   : > { %v1292_v21 = vsel %vm719_vm12, %v1893_v18, %v1894_v17  ;;  %1376 = vmatpush.msra.mxu0 %v1356_v19 }
 0x13a   : > { %1312 = vmatpush.msrb.mxu2 %v1292_v21 }
 0x13b   : > { %1728 = vmatmul.msk.f32.vlgmr.msrb.gmra.mxu3 %vm600_vm6, %v1727_v20  ;;  %1726 = vmatmul.msk.f32.vlgmr.msrb.gmra.mxu2 %vm600_vm6, %v1725_v22 }
 0x13c   : > { %1440 = vmatpush.msra.mxu2 %v1420_v23 }
 0x13d   : > { %1722 = vmatmul.msk.f32.vlgmr.msrb.gmra.mxu0 %vm600_vm6, %v1721_v24 }
 0x13e   : > { %v1907_v25 = vpop.permute.xlu1 %1906 }
 0x13f   : > { %v1909_v26 = vunpack.i.h.bf16 %v1907_v25  ;;  %v1908_v27 = vunpack.i.l.bf16 %v1907_v25 }
 0x141   : > { %v1260_v29 = vsel %vm686_vm7, %v1908_v27, %v1909_v26 }
 0x142   : > { %1280 = vmatpush.msrb.mxu1 %v1260_v29 }
 0x143   : > { %1724 = vmatmul.msk.f32.vlgmr.msrb.gmra.mxu1 %vm600_vm6, %v1723_v28  ;;  %1734 = vmatmul.msk.f32.vlgmr.msra.gmra.mxu2 %vm600_vm6, %v1733_v30 }
 0x145   : > { %1730 = vmatmul.msk.f32.vlgmr.msra.gmra.mxu0 %vm600_vm6, %v1729_v31 }
 0x146   : > { %v1922_v32 = vpop.permute.xlu1 %1921 }
 0x147   : > { %v1924_v33 = vunpack.i.h.bf16 %v1922_v32  ;;  %v1923_v34 = vunpack.i.l.bf16 %v1922_v32 }
 0x149   : > { %v1388_v37 = vsel %vm818_vm13, %v1923_v34, %v1924_v33 }
 0x14a   : > { %1408 = vmatpush.msra.mxu1 %v1388_v37 }
 0x14b   : > { %1732 = vmatmul.msk.f32.vlgmr.msra.gmra.mxu1 %vm600_vm6, %v1731_v35 }
 0x167   : > { %v1451_v27 = vpop.permute.xlu2 %1450 }
 0x175   : > { %v709_v42 = vpop.f32.mrf.mxu3 }
 0x17d   : > { %v1459_v26 = vpop.permute.xlu0 %1458 }
 0x17e   : > { %v1461_v25 = vpop.permute.xlu1 %1460 }
 0x17f   : > { %v775_v43 = vpop.f32.mrf.mxu1  ;;  %v1462_v29 = vsel %vm719_vm12, %v1459_v26, %v1461_v25 }
 0x187   : > { %v900_v50 = vpop.f32.mrf.mxu1 }
 0x18e   : > { %v676_v39 = vpop.f32.mrf.mxu2 }
 0x190   : > { %v621_v36 = vpop.f32.mrf.mxu0 }
 0x191   : > { %v645_v40 = vadd.f32 %v644_v38, %v621_v36 }
 0x193   : > { %v679_v41 = vadd.f32 %v676_v39, %v645_v40 }
 0x195   : > { %v712_v45 = vadd.f32 %v709_v42, %v679_v41 }
 0x196   : > { %v808_v44 = vpop.f32.mrf.mxu2 }
 0x19a   : > { %v742_v46 = vpop.f32.mrf.mxu0 }
 0x19b   : > { %v745_v47 = vadd.f32 %v742_v46, %v712_v45 }
 0x19d   : > { %v778_v48 = vadd.f32 %v775_v43, %v745_v47 }
 0x19e   : > { %v841_v49 = vpop.f32.mrf.mxu3  ;;  %v934_v52 = vpop.f32.mrf.mxu2 }
 0x19f   : > { %v811_v51 = vadd.f32 %v808_v44, %v778_v48  ;;  %v1030_v59 = vpop.f32.mrf.mxu1 }
 0x1a1   : > { %v844_v53 = vadd.f32 %v841_v49, %v811_v51 }
 0x1a2   : > { %v874_v54 = vpop.f32.mrf.mxu0 }
 0x1a3   : > { %v877_v55 = vadd.f32 %v874_v54, %v844_v53 }
 0x1a5   : > { %v903_v56 = vadd.f32 %v900_v50, %v877_v55 }
 0x1a6   : > { %v966_v57 = vpop.f32.mrf.mxu3  ;;  %v1062_v62 = vpop.f32.mrf.mxu2 }
 0x1a7   : > { %v937_v58 = vadd.f32 %v934_v52, %v903_v56  ;;  %v1158_v5 = vpop.f32.mrf.mxu1 }
 0x1a9   : > { %v969_v60 = vadd.f32 %v966_v57, %v937_v58 }
 0x1aa   : > { %v998_v61 = vpop.f32.mrf.mxu0 }
 0x1ab   : > { %v1001_v63 = vadd.f32 %v998_v61, %v969_v60 }
 0x1ad   : > { %v1033_v0 = vadd.f32 %v1030_v59, %v1001_v63 }
 0x1ae   : > { %v1094_v1 = vpop.f32.mrf.mxu3  ;;  %v1184_v7 = vpop.f32.mrf.mxu2 }
 0x1af   : > { %v1065_v2 = vadd.f32 %v1062_v62, %v1033_v0 }
 0x1b1   : > { %v1097_v3 = vadd.f32 %v1094_v1, %v1065_v2 }
 0x1b2   : > { %v1126_v4 = vpop.f32.mrf.mxu0 }
 0x1b3   : > { %v1129_v6 = vadd.f32 %v1126_v4, %v1097_v3 }
 0x1b5   : > { %v1161_v8 = vadd.f32 %v1158_v5, %v1129_v6 }
 0x1b6   : > { %v1218_v10 = vpop.f32.mrf.mxu3 }
 0x1b7   : > { %v1187_v9 = vadd.f32 %v1184_v7, %v1161_v8 }
 0x1b9   : > { %v1221_v11 = vadd.f32 %v1218_v10, %v1187_v9 }
 0x1ba   : > { %v1250_v12 = vpop.f32.mrf.mxu0 }
 0x1bb   : > { %v1253_v13 = vadd.f32 %v1250_v12, %v1221_v11 }
 0x1be   : > { %v1314_v14 = vpop.f32.mrf.mxu2  ;;  %v1346_v17 = vpop.f32.mrf.mxu3 }
 0x1c0   : > { %v1282_v15 = vpop.f32.mrf.mxu1 }
 0x1c1   : > { %v1285_v16 = vadd.f32 %v1282_v15, %v1253_v13 }
 0x1c2   : > { %v1378_v19 = vpop.f32.mrf.mxu0 }
 0x1c3   : > { %v1317_v18 = vadd.f32 %v1314_v14, %v1285_v16 }
 0x1c5   : > { %v1349_v20 = vadd.f32 %v1346_v17, %v1317_v18 }
 0x1c6   : > { %v1442_v23 = vpop.f32.mrf.mxu2 }
 0x1c7   : > { %v1381_v21 = vadd.f32 %v1378_v19, %v1349_v20 }
 0x1c8   : > { %v1410_v22 = vpop.f32.mrf.mxu1 }
 0x1c9   : > { %v1413_v24 = vadd.f32 %v1410_v22, %v1381_v21 }
 0x1cb   : > { %v1445_v28 = vadd.f32 %v1442_v23, %v1413_v24 }
 0x1cd   : > { %v1453_v30 = vadd.f32 %v1451_v27, %v1445_v28 }
 0x1cf   : > { %v1464_v31 = vadd.f32 %v1462_v29, %v1453_v30 }
 0x1d1   : > { %1465 = vst [vmem:[%s539_s17] sm:$0x7] %v1464_v31 }
 0x1d2 PF: > { %s18_s9 = sadd.s32 1, %s1964_s9   ;;  %s2298_s27 = smov %s1956_s29 }
 0x1d3   : > { %p15_p1 = scmp.ge.s32.totalorder %s18_s9, 10   ;;  %s2299_s28 = smov %s1960_s30 }
 0x1d4   : > { %s2300_s29 = smov %s2303_s10  ;;  %s2301_s30 = smov %s2307_s11 }
 0x1d5   :  { %17 = sbr.rel (!%p15_p1) target bundleno = 4 (0x4), region = 117 }

</bundles_post_ra>
